<compile_context>
chip_gen: v5e
topology: v5e:2x2
jax: 0.10.0
libtpu: 0.0.40
codegen_flags: <defaults>
</compile_context>

<pallas_src>
import functools
import math

import jax
import jax.numpy as jnp
from jax import lax
from jax.experimental import pallas as pl
from jax.experimental.pallas import tpu as pltpu


def _relu6(x):
    return jnp.clip(x, 0.0, 6.0)


# ----------------------------------------------------------------------------
# Fused kernels (whole image per grid step; grid = (batch,))
# ----------------------------------------------------------------------------
def _ir_kernel_s1(*refs, H, W, Cin, Chid, Cout, has_expand, use_res, cdtype):
    """Fused InvertedResidual, stride 1."""
    refs = list(refs)
    x_ref = refs.pop(0)                      # (1, Cin, H*W)   input dtype (f32, NCHW)
    if has_expand:
        we, be = refs.pop(0), refs.pop(0)
    wd, bd = refs.pop(0), refs.pop(0)
    wp, bp = refs.pop(0), refs.pop(0)
    o_ref = refs.pop(0)                      # (1, Cout, H*W)  channel-major, lane-dense
    hid = refs.pop(0)                        # VMEM scratch (H+2, W+2, Chid)

    M = H * W
    x_px = x_ref[0].T                        # (M, Cin) pixel-major

    # ---- 1x1 expand conv (BN scale folded into we) + bias + ReLU6 ----------------
    if has_expand:
        h = jnp.dot(x_px.astype(cdtype), we[...], preferred_element_type=jnp.float32)
        h = _relu6(h + be[...])
    else:
        h = x_px.astype(jnp.float32)

    # ---- hidden slab in VMEM: zero pad ring, real pixels at [1:H+1, 1:W+1] -------
    hid[...] = jnp.zeros(hid.shape, hid.dtype)
    hid[1:H + 1, 1:W + 1, :] = h.reshape(H, W, Chid).astype(hid.dtype)

    # ---- depthwise 3x3 stride 1 (BN scale folded into wd) + bias + ReLU6 ---------
    hv = hid[...]
    wdv = wd[...]                            # (9, Chid) f32
    acc = jnp.zeros((H, W, Chid), jnp.float32)
    for ky in range(3):
        for kx in range(3):
            acc = acc + hv[ky:ky + H, kx:kx + W, :].astype(jnp.float32) * wdv[3 * ky + kx]
    acc = _relu6(acc + bd[...])

    # ---- 1x1 projection (BN scale folded into wp) + bias (+ residual) ------------
    out = jnp.dot(acc.reshape(M, Chid).astype(cdtype), wp[...],
                  preferred_element_type=jnp.float32)
    out = out + bp[...]
    if use_res:
        out = out + x_px.astype(jnp.float32)     # residual from the resident input block
    # back to channel-major -> lane-dense store, matches NCHW output layout
    o_ref[...] = out.T.reshape(1, Cout, M).astype(o_ref.dtype)


def _ir_kernel_s2(*refs, H, W, Cin, Chid, Cout, Hout, Wout, has_expand, cdtype):
    """Fused InvertedResidual, stride 2 (input columns pre-split by parity)."""
    refs = list(refs)
    xe_ref = refs.pop(0)                     # (1, Cin, H*n_ce)  original even columns
    xo_ref = refs.pop(0)                     # (1, Cin, H*n_co)  original odd  columns
    if has_expand:
        we, be = refs.pop(0), refs.pop(0)
    wd, bd = refs.pop(0), refs.pop(0)
    wp, bp = refs.pop(0), refs.pop(0)
    o_ref = refs.pop(0)                      # (1, Cout, Hout*Wout)
    hidE = refs.pop(0)                       # (R, Wout,     Chid)
    hidO = refs.pop(0)                       # (R, Wout + 1, Chid)

    n_ce = (W + 1) // 2                      # == Wout
    n_co = W // 2

    def expand_cols(xr, ncols):
        xp = xr[0].T                         # (H*ncols, Cin)
        if has_expand:
            hh = jnp.dot(xp.astype(cdtype), we[...], preferred_element_type=jnp.float32)
            hh = _relu6(hh + be[...])
        else:
            hh = xp.astype(jnp.float32)
        return hh.reshape(H, ncols, Chid)

    hidE[...] = jnp.zeros(hidE.shape, hidE.dtype)
    hidO[...] = jnp.zeros(hidO.shape, hidO.dtype)
    hidE[1:H + 1, :, :] = expand_cols(xe_ref, n_ce).astype(hidE.dtype)
    hidO[1:H + 1, 1:n_co + 1, :] = expand_cols(xo_ref, n_co).astype(hidO.dtype)

    hEv = hidE[...]
    hOv = hidO[...]
    wdv = wd[...]                            # (9, Chid) f32

    def rows(hv, ky):
        # padded rows ky, ky+2, ..., ky+2*(Hout-1): leading-dim slice + reshape trick
        return hv[ky:ky + 2 * Hout].reshape(Hout, 2, hv.shape[1], Chid)[:, 0]

    acc = jnp.zeros((Hout, Wout, Chid), jnp.float32)
    for ky in range(3):
        e = rows(hEv, ky).astype(jnp.float32)               # (Hout, Wout,     Chid)
        o = rows(hOv, ky).astype(jnp.float32)               # (Hout, Wout + 1, Chid)
        acc = acc + o[:, 0:Wout, :] * wdv[3 * ky + 0]       # input col 2c-1 -> odd[c-1]
        acc = acc + e * wdv[3 * ky + 1]                     # input col 2c   -> even[c]
        acc = acc + o[:, 1:Wout + 1, :] * wdv[3 * ky + 2]   # input col 2c+1 -> odd[c]
    acc = _relu6(acc + bd[...])

    Mo = Hout * Wout
    out = jnp.dot(acc.reshape(Mo, Chid).astype(cdtype), wp[...],
                  preferred_element_type=jnp.float32)
    out = out + bp[...]
    o_ref[...] = out.T.reshape(1, Cout, Mo).astype(o_ref.dtype)


# ----------------------------------------------------------------------------
# Wrapper
# ----------------------------------------------------------------------------
def inverted_residual_forward(x_nchw, p, *, compute_dtype=jnp.bfloat16, scratch_dtype=None):
    """Forward pass of the InvertedResidual block.  x_nchw: (N, Cin, H, W) float32."""
    N, Cin, H, W = x_nchw.shape
    stride = p["stride"]
    hidden = p["hidden"]
    Cout = p["oup"]
    has_expand = p["expand"]
    use_res = p["use_res"]
    cdtype = compute_dtype
    f32 = jnp.float32
    if scratch_dtype is None:
        # bf16 hidden scratch when computing in bf16 (v6e/v7x); f32 for the f32 check / v5e.
        scratch_dtype = f32 if cdtype == f32 else jnp.bfloat16

    Hout = (H - 1) // stride + 1
    Wout = (W - 1) // stride + 1
    Mout = Hout * Wout

    # ---- fold eval-mode BN into the conv weights: w' = w * scale ------------------
    wd = (p["wd"].reshape(9, hidden) * p["sd"].reshape(1, hidden)).astype(f32)
    bd = p["bd"].reshape(1, hidden).astype(f32)
    wp = (p["wp"] * p["sp"].reshape(1, Cout)).astype(cdtype)
    bp = p["bp"].reshape(1, Cout).astype(f32)
    weights = []
    if has_expand:
        we = (p["we"] * p["se"].reshape(1, hidden)).astype(cdtype)
        be = p["be"].reshape(1, hidden).astype(f32)
        weights += [we, be]
    weights += [wd, bd, wp, bp]

    def wspec(a):                           # all weight operands are 2-D, constant block
        return pl.BlockSpec(a.shape, lambda n: (0, 0))

    wspecs = [wspec(a) for a in weights]

    if stride == 1:
        x_in = [x_nchw.reshape(N, Cin, H * W)]            # free reshape, stays NCHW in HBM
        in_specs = [pl.BlockSpec((1, Cin, H * W), lambda n: (n, 0, 0))] + wspecs
        kernel = functools.partial(
            _ir_kernel_s1, H=H, W=W, Cin=Cin, Chid=hidden, Cout=Cout,
            has_expand=has_expand, use_res=use_res, cdtype=cdtype)
        scratch_defs = [((H + 2, W + 2, hidden), scratch_dtype)]
    else:
        n_ce = (W + 1) // 2
        n_co = W // 2
        R = 2 * Hout + 2
        # Column-parity split on the NCHW input so it fuses with the reshape (one extra
        # read of x, no separate transpose pass).
        # TODO(synk): deinterleaving columns inside the kernel would avoid the second read.
        x_even = x_nchw[:, :, :, 0::2].reshape(N, Cin, H * n_ce)
        x_odd = x_nchw[:, :, :, 1::2].reshape(N, Cin, H * n_co)
        x_in = [x_even, x_odd]
        in_specs = [pl.BlockSpec((1, Cin, H * n_ce), lambda n: (n, 0, 0)),
                    pl.BlockSpec((1, Cin, H * n_co), lambda n: (n, 0, 0))] + wspecs
        kernel = functools.partial(
            _ir_kernel_s2, H=H, W=W, Cin=Cin, Chid=hidden, Cout=Cout,
            Hout=Hout, Wout=Wout, has_expand=has_expand, cdtype=cdtype)
        scratch_defs = [((R, Wout, hidden), scratch_dtype),
                        ((R, Wout + 1, hidden), scratch_dtype)]

    scratch = [pltpu.VMEM(s, d) for s, d in scratch_defs]
    out_spec = pl.BlockSpec((1, Cout, Mout), lambda n: (n, 0, 0))

    # per-step VMEM footprint -> scoped limit (cap at 48 MiB: v7x has 64 MiB per TC)
    def nbytes(shape, dt):
        return math.prod(shape) * jnp.dtype(dt).itemsize

    est = sum(nbytes(s, d) for s, d in scratch_defs)
    est += 2 * sum(nbytes(a.shape[1:], a.dtype) for a in x_in)       # double-buffered inputs
    est += 2 * sum(nbytes(a.shape, a.dtype) for a in weights)
    est += 2 * nbytes((Cout, Mout), cdtype)                          # double-buffered output
    vmem_limit = int(min(48 * 2**20, max(16 * 2**20, 2 * est)))

    y = pl.pallas_call(
        kernel,
        out_shape=jax.ShapeDtypeStruct((N, Cout, Mout), cdtype),
        grid=(N,),                                     # single flattened parallel axis
        in_specs=in_specs,
        out_specs=out_spec,
        scratch_shapes=scratch,
        compiler_params=pltpu.CompilerParams(
            dimension_semantics=("parallel",),
            vmem_limit_bytes=vmem_limit),
    )(*(x_in + weights))

    return y.reshape(N, Cout, Hout, Wout)              # free: already channel-major (NCHW)


# ----------------------------------------------------------------------------
# Parameters (eval-mode BN folded into scale/bias) and pure-JAX reference
# ----------------------------------------------------------------------------
def _fold_bn(key, c, eps=1e-5):
    kg, kb, km, kv = jax.random.split(key, 4)
    gamma = 1.0 + 0.1 * jax.random.normal(kg, (c,), jnp.float32)
    beta = 0.1 * jax.random.normal(kb, (c,), jnp.float32)
    mean = 0.1 * jax.random.normal(km, (c,), jnp.float32)
    var = 1.0 + 0.1 * jnp.abs(jax.random.normal(kv, (c,), jnp.float32))
    scale = gamma / jnp.sqrt(var + eps)
    bias = beta - mean * scale
    return scale, bias


def init_inverted_residual(key, inp, oup, stride, expand_ratio):
    assert stride in (1, 2)
    hidden = int(round(inp * expand_ratio))
    keys = jax.random.split(key, 6)
    p = dict(inp=inp, oup=oup, stride=stride, hidden=hidden,
             expand=(expand_ratio != 1),
             use_res=(stride == 1 and inp == oup))
    if expand_ratio != 1:
        p["we"] = jax.random.normal(keys[0], (inp, hidden), jnp.float32) * (2.0 / hidden) ** 0.5
        p["se"], p["be"] = _fold_bn(keys[1], hidden)
    p["wd"] = jax.random.normal(keys[2], (3, 3, hidden), jnp.float32) * (2.0 / 9.0) ** 0.5
    p["sd"], p["bd"] = _fold_bn(keys[3], hidden)
    p["wp"] = jax.random.normal(keys[4], (hidden, oup), jnp.float32) * (2.0 / oup) ** 0.5
    p["sp"], p["bp"] = _fold_bn(keys[5], oup)
    return p


def inverted_residual_reference(x_nchw, p):
    """Pure-JAX (XLA) reference used to validate the Pallas kernel."""
    x = jnp.transpose(x_nchw, (0, 2, 3, 1)).astype(jnp.float32)
    stride = p["stride"]
    hidden = p["hidden"]
    h = x
    if p["expand"]:
        h = _relu6(jnp.einsum("nhwc,cd->nhwd", x, p["we"],
                              precision=lax.Precision.HIGHEST) * p["se"] + p["be"])
    wd = p["wd"].reshape(3, 3, 1, hidden)
    h = lax.conv_general_dilated(
        h, wd, window_strides=(stride, stride), padding=((1, 1), (1, 1)),
        dimension_numbers=("NHWC", "HWIO", "NHWC"),
        feature_group_count=hidden, precision=lax.Precision.HIGHEST)
    h = _relu6(h * p["sd"] + p["bd"])
    y = jnp.einsum("nhwc,cd->nhwd", h, p["wp"],
                   precision=lax.Precision.HIGHEST) * p["sp"] + p["bp"]
    if p["use_res"]:
        y = y + x
    return jnp.transpose(y, (0, 3, 1, 2))


# ----------------------------------------------------------------------------
# Demo / self-check
# ----------------------------------------------------------------------------
if __name__ == "__main__":
    root = jax.random.PRNGKey(0)
    kx, k1, k2, k3 = jax.random.split(root, 4)

    N, Cin, H, W = 2, 32, 16, 16
    x = jax.random.normal(kx, (N, Cin, H, W), jnp.float32)

    configs = [
        (k1, dict(inp=Cin, oup=32, stride=1, expand_ratio=6)),   # expand + residual
        (k2, dict(inp=Cin, oup=48, stride=2, expand_ratio=6)),   # expand, stride 2
        (k3, dict(inp=Cin, oup=24, stride=1, expand_ratio=1)),   # no expand conv
    ]

    for pkey, cfg in configs:
        p = init_inverted_residual(pkey, **cfg)
        ref = inverted_residual_reference(x, p)

        # f32 compute path: tight numerical check against the XLA reference.
        fwd_f32 = jax.jit(lambda xx, p=p: inverted_residual_forward(
            xx, p, compute_dtype=jnp.float32))
        out = jax.block_until_ready(fwd_f32(x))
        assert out.shape == ref.shape, (cfg, out.shape, ref.shape)
        err = float(jnp.max(jnp.abs(out - ref)) / (jnp.max(jnp.abs(ref)) + 1e-6))
        assert err < 3e-2, (cfg, err)

        # bf16 compute path (recommended on v6e/v7x): loose numerical check.
        fwd_bf16 = jax.jit(lambda xx, p=p: inverted_residual_forward(
            xx, p, compute_dtype=jnp.bfloat16))
        out16 = jax.block_until_ready(fwd_bf16(x))
        assert out16.shape == ref.shape
        err16 = float(jnp.max(jnp.abs(out16.astype(jnp.float32) - ref))
                      / (jnp.max(jnp.abs(ref)) + 1e-6))
        assert err16 < 8e-2, (cfg, err16)

    print("KERNEL_OK")
</pallas_src>

<mosaic_0001>
module attributes {stable_mosaic.version = 11 : i64} {
  func.func @_ir_kernel_s1(%arg0: i32, %arg1: memref<1x32x256xf32, #tpu.memory_space<vmem>>, %arg2: memref<32x192xf32, #tpu.memory_space<vmem>>, %arg3: memref<1x192xf32, #tpu.memory_space<vmem>>, %arg4: memref<9x192xf32, #tpu.memory_space<vmem>>, %arg5: memref<1x192xf32, #tpu.memory_space<vmem>>, %arg6: memref<192x32xf32, #tpu.memory_space<vmem>>, %arg7: memref<1x32xf32, #tpu.memory_space<vmem>>, %arg8: memref<1x32x256xf32, #tpu.memory_space<vmem>>, %arg9: memref<18x18x192xf32, #tpu.memory_space<vmem>>) attributes {dimension_semantics = [#tpu.dimension_semantics<parallel>], iteration_bounds = array<i64: 2>, scalar_prefetch = 0 : i64, scratch_operands = 1 : i64, tpu.core_type = #tpu.core_type<tc>, window_params = [{transform_indices = @transform_0, window_bounds = array<i64: 1, 32, 256>}, {pipeline_mode = #tpu.pipeline_mode<synchronous>, transform_indices = @transform_1, window_bounds = array<i64: 32, 192>}, {pipeline_mode = #tpu.pipeline_mode<synchronous>, transform_indices = @transform_2, window_bounds = array<i64: 1, 192>}, {pipeline_mode = #tpu.pipeline_mode<synchronous>, transform_indices = @transform_3, window_bounds = array<i64: 9, 192>}, {pipeline_mode = #tpu.pipeline_mode<synchronous>, transform_indices = @transform_4, window_bounds = array<i64: 1, 192>}, {pipeline_mode = #tpu.pipeline_mode<synchronous>, transform_indices = @transform_5, window_bounds = array<i64: 192, 32>}, {pipeline_mode = #tpu.pipeline_mode<synchronous>, transform_indices = @transform_6, window_bounds = array<i64: 1, 32>}, {transform_indices = @transform_7, window_bounds = array<i64: 1, 32, 256>}]} {
    %c0 = arith.constant 0 : index
    %c0_0 = arith.constant 0 : index
    %c0_1 = arith.constant 0 : index
    %0 = vector.load %arg1[%c0, %c0_0, %c0_1] : memref<1x32x256xf32, #tpu.memory_space<vmem>>, vector<1x32x256xf32>
    %1 = vector.shape_cast %0 : vector<1x32x256xf32> to vector<32x256xf32>
    %2 = tpu.transpose %1, [1, 0] : vector<32x256xf32> -> vector<256x32xf32>
    %c0_2 = arith.constant 0 : index
    %c0_3 = arith.constant 0 : index
    %3 = vector.load %arg2[%c0_2, %c0_3] : memref<32x192xf32, #tpu.memory_space<vmem>>, vector<32x192xf32>
    %cst = arith.constant dense<0.000000e+00> : vector<256x192xf32>
    %4 = tpu.matmul %2, %3, %cst {dimension_numbers = #tpu.dot_dimension_numbers<[1], [0], [0], [1], [0, 0, 1, 1], [], []>} : vector<256x32xf32>, vector<32x192xf32>, vector<256x192xf32> -> vector<256x192xf32>
    %c0_4 = arith.constant 0 : index
    %c0_5 = arith.constant 0 : index
    %5 = vector.load %arg3[%c0_4, %c0_5] : memref<1x192xf32, #tpu.memory_space<vmem>>, vector<1x192xf32>
    %6 = vector.broadcast %5 : vector<1x192xf32> to vector<256x192xf32>
    %7 = arith.addf %4, %6 : vector<256x192xf32>
    %cst_6 = arith.constant 0.000000e+00 : f32
    %cst_7 = arith.constant 6.000000e+00 : f32
    %8 = vector.broadcast %cst_6 : f32 to vector<256x192xf32>
    %9 = arith.maximumf %8, %7 : vector<256x192xf32>
    %10 = vector.broadcast %cst_7 : f32 to vector<256x192xf32>
    %11 = arith.minimumf %10, %9 : vector<256x192xf32>
    %cst_8 = arith.constant 0.000000e+00 : f32
    %12 = vector.broadcast %cst_8 : f32 to vector<18x18x192xf32>
    %c0_9 = arith.constant 0 : index
    %c0_10 = arith.constant 0 : index
    %c0_11 = arith.constant 0 : index
    %13 = vector.load %arg9[%c0_9, %c0_10, %c0_11] : memref<18x18x192xf32, #tpu.memory_space<vmem>>, vector<18x18x192xf32>
    tpu.vector_store %arg9[%c0_9, %c0_10, %c0_11], %12 {strides = array<i32>} : memref<18x18x192xf32, #tpu.memory_space<vmem>>, vector<18x18x192xf32>,
    %14 = vector.shape_cast %11 : vector<256x192xf32> to vector<16x16x192xf32>
    %c1 = arith.constant 1 : index
    %c1_12 = arith.constant 1 : index
    %c0_13 = arith.constant 0 : index
    %15 = vector.load %arg9[%c1, %c1_12, %c0_13] : memref<18x18x192xf32, #tpu.memory_space<vmem>>, vector<16x16x192xf32>
    tpu.vector_store %arg9[%c1, %c1_12, %c0_13], %14 {strides = array<i32>} : memref<18x18x192xf32, #tpu.memory_space<vmem>>, vector<16x16x192xf32>,
    %c0_14 = arith.constant 0 : index
    %c0_15 = arith.constant 0 : index
    %c0_16 = arith.constant 0 : index
    %16 = vector.load %arg9[%c0_14, %c0_15, %c0_16] : memref<18x18x192xf32, #tpu.memory_space<vmem>>, vector<18x18x192xf32>
    %c0_17 = arith.constant 0 : index
    %c0_18 = arith.constant 0 : index
    %17 = vector.load %arg4[%c0_17, %c0_18] : memref<9x192xf32, #tpu.memory_space<vmem>>, vector<9x192xf32>
    %cst_19 = arith.constant 0.000000e+00 : f32
    %18 = vector.broadcast %cst_19 : f32 to vector<16x16x192xf32>
    %19 = vector.extract_strided_slice %16 {offsets = [0, 0, 0], sizes = [16, 16, 192], strides = [1, 1, 1]} : vector<18x18x192xf32> to vector<16x16x192xf32>
    %20 = vector.extract_strided_slice %17 {offsets = [0, 0], sizes = [1, 192], strides = [1, 1]} : vector<9x192xf32> to vector<1x192xf32>
    %21 = vector.shape_cast %20 : vector<1x192xf32> to vector<192xf32>
    %22 = vector.shape_cast %21 : vector<192xf32> to vector<1x1x192xf32>
    %23 = vector.broadcast %22 : vector<1x1x192xf32> to vector<16x16x192xf32>
    %24 = arith.mulf %19, %23 : vector<16x16x192xf32>
    %25 = arith.addf %18, %24 : vector<16x16x192xf32>
    %26 = vector.extract_strided_slice %16 {offsets = [0, 1, 0], sizes = [16, 16, 192], strides = [1, 1, 1]} : vector<18x18x192xf32> to vector<16x16x192xf32>
    %27 = vector.extract_strided_slice %17 {offsets = [1, 0], sizes = [1, 192], strides = [1, 1]} : vector<9x192xf32> to vector<1x192xf32>
    %28 = vector.shape_cast %27 : vector<1x192xf32> to vector<192xf32>
    %29 = vector.shape_cast %28 : vector<192xf32> to vector<1x1x192xf32>
    %30 = vector.broadcast %29 : vector<1x1x192xf32> to vector<16x16x192xf32>
    %31 = arith.mulf %26, %30 : vector<16x16x192xf32>
    %32 = arith.addf %25, %31 : vector<16x16x192xf32>
    %33 = vector.extract_strided_slice %16 {offsets = [0, 2, 0], sizes = [16, 16, 192], strides = [1, 1, 1]} : vector<18x18x192xf32> to vector<16x16x192xf32>
    %34 = vector.extract_strided_slice %17 {offsets = [2, 0], sizes = [1, 192], strides = [1, 1]} : vector<9x192xf32> to vector<1x192xf32>
    %35 = vector.shape_cast %34 : vector<1x192xf32> to vector<192xf32>
    %36 = vector.shape_cast %35 : vector<192xf32> to vector<1x1x192xf32>
    %37 = vector.broadcast %36 : vector<1x1x192xf32> to vector<16x16x192xf32>
    %38 = arith.mulf %33, %37 : vector<16x16x192xf32>
    %39 = arith.addf %32, %38 : vector<16x16x192xf32>
    %40 = vector.extract_strided_slice %16 {offsets = [1, 0, 0], sizes = [16, 16, 192], strides = [1, 1, 1]} : vector<18x18x192xf32> to vector<16x16x192xf32>
    %41 = vector.extract_strided_slice %17 {offsets = [3, 0], sizes = [1, 192], strides = [1, 1]} : vector<9x192xf32> to vector<1x192xf32>
    %42 = vector.shape_cast %41 : vector<1x192xf32> to vector<192xf32>
    %43 = vector.shape_cast %42 : vector<192xf32> to vector<1x1x192xf32>
    %44 = vector.broadcast %43 : vector<1x1x192xf32> to vector<16x16x192xf32>
    %45 = arith.mulf %40, %44 : vector<16x16x192xf32>
    %46 = arith.addf %39, %45 : vector<16x16x192xf32>
    %47 = vector.extract_strided_slice %16 {offsets = [1, 1, 0], sizes = [16, 16, 192], strides = [1, 1, 1]} : vector<18x18x192xf32> to vector<16x16x192xf32>
    %48 = vector.extract_strided_slice %17 {offsets = [4, 0], sizes = [1, 192], strides = [1, 1]} : vector<9x192xf32> to vector<1x192xf32>
    %49 = vector.shape_cast %48 : vector<1x192xf32> to vector<192xf32>
    %50 = vector.shape_cast %49 : vector<192xf32> to vector<1x1x192xf32>
    %51 = vector.broadcast %50 : vector<1x1x192xf32> to vector<16x16x192xf32>
    %52 = arith.mulf %47, %51 : vector<16x16x192xf32>
    %53 = arith.addf %46, %52 : vector<16x16x192xf32>
    %54 = vector.extract_strided_slice %16 {offsets = [1, 2, 0], sizes = [16, 16, 192], strides = [1, 1, 1]} : vector<18x18x192xf32> to vector<16x16x192xf32>
    %55 = vector.extract_strided_slice %17 {offsets = [5, 0], sizes = [1, 192], strides = [1, 1]} : vector<9x192xf32> to vector<1x192xf32>
    %56 = vector.shape_cast %55 : vector<1x192xf32> to vector<192xf32>
    %57 = vector.shape_cast %56 : vector<192xf32> to vector<1x1x192xf32>
    %58 = vector.broadcast %57 : vector<1x1x192xf32> to vector<16x16x192xf32>
    %59 = arith.mulf %54, %58 : vector<16x16x192xf32>
    %60 = arith.addf %53, %59 : vector<16x16x192xf32>
    %61 = vector.extract_strided_slice %16 {offsets = [2, 0, 0], sizes = [16, 16, 192], strides = [1, 1, 1]} : vector<18x18x192xf32> to vector<16x16x192xf32>
    %62 = vector.extract_strided_slice %17 {offsets = [6, 0], sizes = [1, 192], strides = [1, 1]} : vector<9x192xf32> to vector<1x192xf32>
    %63 = vector.shape_cast %62 : vector<1x192xf32> to vector<192xf32>
    %64 = vector.shape_cast %63 : vector<192xf32> to vector<1x1x192xf32>
    %65 = vector.broadcast %64 : vector<1x1x192xf32> to vector<16x16x192xf32>
    %66 = arith.mulf %61, %65 : vector<16x16x192xf32>
    %67 = arith.addf %60, %66 : vector<16x16x192xf32>
    %68 = vector.extract_strided_slice %16 {offsets = [2, 1, 0], sizes = [16, 16, 192], strides = [1, 1, 1]} : vector<18x18x192xf32> to vector<16x16x192xf32>
    %69 = vector.extract_strided_slice %17 {offsets = [7, 0], sizes = [1, 192], strides = [1, 1]} : vector<9x192xf32> to vector<1x192xf32>
    %70 = vector.shape_cast %69 : vector<1x192xf32> to vector<192xf32>
    %71 = vector.shape_cast %70 : vector<192xf32> to vector<1x1x192xf32>
    %72 = vector.broadcast %71 : vector<1x1x192xf32> to vector<16x16x192xf32>
    %73 = arith.mulf %68, %72 : vector<16x16x192xf32>
    %74 = arith.addf %67, %73 : vector<16x16x192xf32>
    %75 = vector.extract_strided_slice %16 {offsets = [2, 2, 0], sizes = [16, 16, 192], strides = [1, 1, 1]} : vector<18x18x192xf32> to vector<16x16x192xf32>
    %76 = vector.extract_strided_slice %17 {offsets = [8, 0], sizes = [1, 192], strides = [1, 1]} : vector<9x192xf32> to vector<1x192xf32>
    %77 = vector.shape_cast %76 : vector<1x192xf32> to vector<192xf32>
    %78 = vector.shape_cast %77 : vector<192xf32> to vector<1x1x192xf32>
    %79 = vector.broadcast %78 : vector<1x1x192xf32> to vector<16x16x192xf32>
    %80 = arith.mulf %75, %79 : vector<16x16x192xf32>
    %81 = arith.addf %74, %80 : vector<16x16x192xf32>
    %c0_20 = arith.constant 0 : index
    %c0_21 = arith.constant 0 : index
    %82 = vector.load %arg5[%c0_20, %c0_21] : memref<1x192xf32, #tpu.memory_space<vmem>>, vector<1x192xf32>
    %83 = vector.shape_cast %82 : vector<1x192xf32> to vector<1x1x192xf32>
    %84 = vector.broadcast %83 : vector<1x1x192xf32> to vector<16x16x192xf32>
    %85 = arith.addf %81, %84 : vector<16x16x192xf32>
    %cst_22 = arith.constant 0.000000e+00 : f32
    %cst_23 = arith.constant 6.000000e+00 : f32
    %86 = vector.broadcast %cst_22 : f32 to vector<16x16x192xf32>
    %87 = arith.maximumf %86, %85 : vector<16x16x192xf32>
    %88 = vector.broadcast %cst_23 : f32 to vector<16x16x192xf32>
    %89 = arith.minimumf %88, %87 : vector<16x16x192xf32>
    %90 = vector.shape_cast %89 : vector<16x16x192xf32> to vector<256x192xf32>
    %c0_24 = arith.constant 0 : index
    %c0_25 = arith.constant 0 : index
    %91 = vector.load %arg6[%c0_24, %c0_25] : memref<192x32xf32, #tpu.memory_space<vmem>>, vector<192x32xf32>
    %cst_26 = arith.constant dense<0.000000e+00> : vector<256x32xf32>
    %92 = tpu.matmul %90, %91, %cst_26 {dimension_numbers = #tpu.dot_dimension_numbers<[1], [0], [0], [1], [0, 0, 1, 1], [], []>} : vector<256x192xf32>, vector<192x32xf32>, vector<256x32xf32> -> vector<256x32xf32>
    %c0_27 = arith.constant 0 : index
    %c0_28 = arith.constant 0 : index
    %93 = vector.load %arg7[%c0_27, %c0_28] : memref<1x32xf32, #tpu.memory_space<vmem>>, vector<1x32xf32>
    %94 = vector.broadcast %93 : vector<1x32xf32> to vector<256x32xf32>
    %95 = arith.addf %92, %94 : vector<256x32xf32>
    %96 = arith.addf %95, %2 : vector<256x32xf32>
    %97 = tpu.transpose %96, [1, 0] : vector<256x32xf32> -> vector<32x256xf32>
    %98 = vector.shape_cast %97 : vector<32x256xf32> to vector<1x32x256xf32>
    %c0_29 = arith.constant 0 : index
    %c0_30 = arith.constant 0 : index
    %c0_31 = arith.constant 0 : index
    %99 = vector.load %arg8[%c0_29, %c0_30, %c0_31] : memref<1x32x256xf32, #tpu.memory_space<vmem>>, vector<1x32x256xf32>
    tpu.vector_store %arg8[%c0_29, %c0_30, %c0_31], %98 {strides = array<i32>} : memref<1x32x256xf32, #tpu.memory_space<vmem>>, vector<1x32x256xf32>,
    return
  }
  func.func @transform_0(%arg0: i32) -> (i32, i32, i32) {
    %c0_i32 = arith.constant 0 : i32
    %c0_i32_0 = arith.constant 0 : i32
    %c0_i32_1 = arith.constant 0 : i32
    return %arg0, %c0_i32, %c0_i32_0 : i32, i32, i32
  }
  func.func @transform_1(%arg0: i32) -> (i32, i32) {
    %c0_i32 = arith.constant 0 : i32
    %c0_i32_0 = arith.constant 0 : i32
    %c0_i32_1 = arith.constant 0 : i32
    return %c0_i32, %c0_i32_0 : i32, i32
  }
  func.func @transform_2(%arg0: i32) -> (i32, i32) {
    %c0_i32 = arith.constant 0 : i32
    %c0_i32_0 = arith.constant 0 : i32
    %c0_i32_1 = arith.constant 0 : i32
    return %c0_i32, %c0_i32_0 : i32, i32
  }
  func.func @transform_3(%arg0: i32) -> (i32, i32) {
    %c0_i32 = arith.constant 0 : i32
    %c0_i32_0 = arith.constant 0 : i32
    %c0_i32_1 = arith.constant 0 : i32
    return %c0_i32, %c0_i32_0 : i32, i32
  }
  func.func @transform_4(%arg0: i32) -> (i32, i32) {
    %c0_i32 = arith.constant 0 : i32
    %c0_i32_0 = arith.constant 0 : i32
    %c0_i32_1 = arith.constant 0 : i32
    return %c0_i32, %c0_i32_0 : i32, i32
  }
  func.func @transform_5(%arg0: i32) -> (i32, i32) {
    %c0_i32 = arith.constant 0 : i32
    %c0_i32_0 = arith.constant 0 : i32
    %c0_i32_1 = arith.constant 0 : i32
    return %c0_i32, %c0_i32_0 : i32, i32
  }
  func.func @transform_6(%arg0: i32) -> (i32, i32) {
    %c0_i32 = arith.constant 0 : i32
    %c0_i32_0 = arith.constant 0 : i32
    %c0_i32_1 = arith.constant 0 : i32
    return %c0_i32, %c0_i32_0 : i32, i32
  }
  func.func @transform_7(%arg0: i32) -> (i32, i32, i32) {
    %c0_i32 = arith.constant 0 : i32
    %c0_i32_0 = arith.constant 0 : i32
    %c0_i32_1 = arith.constant 0 : i32
    return %arg0, %c0_i32, %c0_i32_0 : i32, i32, i32
  }
}

</mosaic_0001>

<bundles_post_ra>
// kernel: _lambda_.1
= control target key start
LH: loop header
LB: loop body
LE: loop exit
PB: predicated region body
PF: predicated region fallthrough
CT: control target
= control target key end

     0   :  { %s5603_s24 = smov 0   ;;  %s9925_s0 = inlined_call_operand.vmem [shape: f32[2,32,256], index: 0, kind: input, shape index: {}]   ;;  %s9926_s1 = inlined_call_operand.vmem [shape: f32[32,192], index: 1, kind: input, shape index: {}]   ;;  %s9927_s2 = inlined_call_operand.vmem [shape: f32[1,192], index: 2, kind: input, shape index: {}]   ;;  %s9928_s3 = inlined_call_operand.vmem [shape: f32[9,192], index: 3, kind: input, shape index: {}]   ;;  %s9929_s4 = inlined_call_operand.vmem [shape: f32[1,192], index: 4, kind: input, shape index: {}]   ;;  %s9930_s5 = inlined_call_operand.vmem [shape: f32[192,32], index: 5, kind: input, shape index: {}]   ;;  %s9931_s6 = inlined_call_operand.vmem [shape: f32[1,32], index: 6, kind: input, shape index: {}]   ;;  %s9932_s7 = inlined_call_operand.vmem [shape: f32[2,32,256], index: 7, kind: output, shape index: {}]  }
   0x1 LB: > { %s5385_s25 = sadd.s32 4294967295, %s5560_s24   ;;  %p5389_p0 = scmp.ge.s32.totalorder %s5560_s24, 1  ;;  %s5560_s24 = sphi %s5603_s24, %s17_s24  }
   0x2   : > { %p237_p1 = scmp.lt.s32.totalorder %s5560_s24, 3 }
   0x4   : > { %p238_p2 = pnand %p5389_p0, %p237_p1 }
   0x6   : > { %241 = sbr.rel (%p238_p2) target bundleno = 1277 (0x4fd), region = 48 }
   0xb   : > { %p269_p3 = scmp.lt.s32.totalorder %s5385_s25, 1  ;;  %v357_v0 = vld [vmem:[%s9926_s1 + $0x30] sm:$0xff]  ;;  %v355_v1 = vld [vmem:[%s9926_s1 + $0x20] sm:$0xff]  ;;  %vm365_vm0 = vcmask 261120   ;;  %v358_v36 = vld [vmem:[%s9926_s1 + $0x38] sm:$0xff]  ;;  %v5562_v38 = vmov 0.0  }
   0xc   : > { %474 = vmatpush.msra.mxu0 %v357_v0  ;;  %5494 = vmatpush.msra.mxu1 %v357_v0  ;;  %v353_v2 = vld [vmem:[%s9926_s1 + $0x10] sm:$0xff]  ;;  %v351_v3 = vld [vmem:[%s9926_s1] sm:$0xff]  ;;  %v356_v37 = vld [vmem:[%s9926_s1 + $0x28] sm:$0xff]  ;;  %824 = vst [vmem:[#allocation2 + $0x30] sm:$0xff] %v5562_v38  ;;  %vm990_vm1 = vcmask 1040384   ;;  %vm1718_vm2 = vcmask 1046528  }
   0xd   : > { %s10424_s25 = smov (!%p269_p3, %s5385_s25), 1  ;;  %v354_v39 = vld [vmem:[%s9926_s1 + $0x18] sm:$0xff]  ;;  %816 = vst [vmem:[#allocation2] sm:$0xff] %v5562_v38  ;;  %v352_v40 = vld [vmem:[%s9926_s1 + $0x8] sm:$0xff]  ;;  %v359_v49 = vld [vmem:[%s9927_s2] sm:$0x3] }
   0xe   : > { %475 = vmatpush.msra.mxu0 %v355_v1  ;;  %5495 = vmatpush.msra.mxu1 %v355_v1  ;;  %s5492_s9 = sshll.u32 %s10424_s25, 6  ;;  %821 = vst [vmem:[#allocation2 + $0x20] sm:$0x3] %v5562_v38  ;;  %v5744_v50 = vperm.slane %v359_v49, 0  ;;  %v4891_v53 = vld [vmem:[%s9930_s5 + $0x78] sm:$0xff]  ;;  %v4890_v55 = vld [vmem:[%s9930_s5 + $0x70] sm:$0xff] }
   0xf   : > { %s273_s12 = scalar_lea.vmem %s9925_s0, %s5492_s9  ;;  %828 = vst [vmem:[#allocation2 + $0x50] sm:$0x3] %v5562_v38  ;;  %5498 = vmatpush.msra.mxu2 %v4891_v53  ;;  %v4889_v57 = vld [vmem:[%s9930_s5 + $0x68] sm:$0xff]  ;;  %v4888_v59 = vld [vmem:[%s9930_s5 + $0x60] sm:$0xff]  ;;  %v4887_v62 = vld [vmem:[%s9930_s5 + $0x58] sm:$0xff]  ;;  %vm2201_vm3 = vcmask 1045504   ;;  %s9906_s8 = scalar_lea.vmem %s9932_s7, %s5492_s9 }
  0x10   : > { %476 = vmatpush.msra.mxu0 %v353_v2  ;;  %5496 = vmatpush.msra.mxu1 %v353_v2  ;;  %v280_v4 = vld [vmem:[%s273_s12 + $0x8] sm:$0xff]  ;;  %v279_v5 = vld [vmem:[%s273_s12] sm:$0xff]  ;;  %v282_v6 = vld [vmem:[%s273_s12 + $0x18] sm:$0xff]  ;;  %830 = vst [vmem:[#allocation2 + $0x60] sm:$0xff] %v5562_v38  ;;  %vm817_vm4 = vcmask 523264   ;;  %vm1185_vm5 = vcmask 523265  }
  0x11   : > { %319 = vxpose.xlu0.b32.start [1/4] (short) %v280_v4, 128  ;;  %287 = vxpose.xlu1.b32.start [1/4] (short) %v279_v5, 128  ;;  %v281_v7 = vld [vmem:[%s273_s12 + $0x10] sm:$0xff]  ;;  %v284_v8 = vld [vmem:[%s273_s12 + $0x28] sm:$0xff]  ;;  %v283_v9 = vld [vmem:[%s273_s12 + $0x20] sm:$0xff]  ;;  %834 = vst [vmem:[#allocation2 + $0x80] sm:$0x3] %v5562_v38  ;;  %vm822_vm6 = vcmask 517120  }
  0x12   : > { %477 = vmatpush.msra.mxu0 %v351_v3  ;;  %5497 = vmatpush.msra.mxu1 %v351_v3  ;;  %v286_v10 = vld [vmem:[%s273_s12 + $0x38] sm:$0xff]  ;;  %v285_v11 = vld [vmem:[%s273_s12 + $0x30] sm:$0xff]  ;;  %836 = vst [vmem:[#allocation2 + $0x90] sm:$0xff] %v5562_v38  ;;  %v5777_v1 = vld [vmem:[%s9928_s3] sm:$0xff]  ;;  %vm1190_vm7 = vcmask 516096  }
  0x13   : > { %840 = vst [vmem:[#allocation2 + $0xb0] sm:$0x3] %v5562_v38  ;;  %5499 = vmatpush.msra.mxu2 %v4890_v55  ;;  %v4886_v0 = vld [vmem:[%s9930_s5 + $0x50] sm:$0xff]  ;;  %v4885_v3 = vld [vmem:[%s9930_s5 + $0x48] sm:$0xff]  ;;  %v4884_v5 = vld [vmem:[%s9930_s5 + $0x40] sm:$0xff] }
  0x14   : > { %587 = vmatpush.msrb.mxu1 %v358_v36  ;;  %842 = vst [vmem:[#allocation2 + $0xc0] sm:$0xff] %v5562_v38  ;;  %5000 = vmatpush.msrb.mxu0 %v4891_v53  ;;  %v5794_v36 = vperm.slane %v5777_v1, 2 }
  0x15   : > { %846 = vst [vmem:[#allocation2 + $0xe0] sm:$0x3] %v5562_v38  ;;  %5500 = vmatpush.msra.mxu2 %v4889_v57 }
  0x16   : > { %588 = vmatpush.msrb.mxu1 %v356_v37  ;;  %848 = vst [vmem:[#allocation2 + $0xf0] sm:$0xff] %v5562_v38  ;;  %5001 = vmatpush.msrb.mxu0 %v4890_v55 }
  0x17   : > { %852 = vst [vmem:[#allocation2 + $0x110] sm:$0x3] %v5562_v38  ;;  %5501 = vmatpush.msra.mxu2 %v4888_v59 }
  0x18   : > { %589 = vmatpush.msrb.mxu1 %v354_v39  ;;  %854 = vst [vmem:[#allocation2 + $0x120] sm:$0xff] %v5562_v38  ;;  %5002 = vmatpush.msrb.mxu0 %v4889_v57 }
  0x19   : > { %320 = vxpose.xlu0.b32.cont [2/4] (short) %v282_v6, 128  ;;  %288 = vxpose.xlu1.b32.cont [2/4] (short) %v281_v7, 128  ;;  %858 = vst [vmem:[#allocation2 + $0x140] sm:$0x3] %v5562_v38  ;;  %v5786_v6 = vperm.slane %v5777_v1, 1 }
  0x1a   : > { %590 = vmatpush.msrb.mxu1 %v352_v40  ;;  %860 = vst [vmem:[#allocation2 + $0x150] sm:$0xff] %v5562_v38  ;;  %5003 = vmatpush.msrb.mxu0 %v4888_v59 }
  0x1b   : > { %864 = vst [vmem:[#allocation2 + $0x170] sm:$0x3] %v5562_v38  ;;  %5502 = vmatpush.msra.mxu2 %v4887_v62 }
  0x1c   : > { %866 = vst [vmem:[#allocation2 + $0x180] sm:$0xff] %v5562_v38  ;;  %5004 = vmatpush.msrb.mxu0 %v4887_v62  ;;  %v4879_v62 = vld [vmem:[%s9930_s5 + $0x18] sm:$0xff] }
  0x1d   : > { %870 = vst [vmem:[#allocation2 + $0x1a0] sm:$0x3] %v5562_v38  ;;  %5503 = vmatpush.msra.mxu2 %v4886_v0 }
  0x1e   : > { %872 = vst [vmem:[#allocation2 + $0x1b0] sm:$0xff] %v5562_v38  ;;  %5005 = vmatpush.msrb.mxu0 %v4886_v0 }
  0x1f   : > { %876 = vst [vmem:[#allocation2 + $0x1d0] sm:$0x3] %v5562_v38  ;;  %5504 = vmatpush.msra.mxu2 %v4885_v3 }
  0x20   : > { %878 = vst [vmem:[#allocation2 + $0x1e0] sm:$0xff] %v5562_v38  ;;  %5006 = vmatpush.msrb.mxu0 %v4885_v3 }
  0x21   : > { %321 = vxpose.xlu0.b32.cont [3/4] (short) %v284_v8, 128  ;;  %289 = vxpose.xlu1.b32.cont [3/4] (short) %v283_v9, 128  ;;  %882 = vst [vmem:[#allocation2 + $0x200] sm:$0x3] %v5562_v38 }
  0x22   : > { %884 = vst [vmem:[#allocation2 + $0x210] sm:$0xff] %v5562_v38  ;;  %5505 = vmatpush.msra.mxu2 %v4884_v5  ;;  %5007 = vmatpush.msrb.mxu0 %v4884_v5  ;;  %v4878_v5 = vld [vmem:[%s9930_s5 + $0x10] sm:$0xff] }
  0x23   : > { %888 = vst [vmem:[#allocation2 + $0x230] sm:$0x3] %v5562_v38 }
  0x24   : > { %890 = vst [vmem:[#allocation2 + $0x240] sm:$0xff] %v5562_v38 }
  0x25   : > { %894 = vst [vmem:[#allocation2 + $0x260] sm:$0x3] %v5562_v38 }
  0x26   : > { %896 = vst [vmem:[#allocation2 + $0x270] sm:$0xff] %v5562_v38 }
  0x27   : > { %900 = vst [vmem:[#allocation2 + $0x290] sm:$0x3] %v5562_v38 }
  0x28   : > { %902 = vst [vmem:[#allocation2 + $0x2a0] sm:$0xff] %v5562_v38 }
  0x29   : > { %322 = vxpose.xlu0.b32.end [4/4] (short) %v286_v10, 128  ;;  %290 = vxpose.xlu1.b32.end [4/4] (short) %v285_v11, 128  ;;  %906 = vst [vmem:[#allocation2 + $0x2c0] sm:$0x3] %v5562_v38  ;;  %v4883_v11 = vld [vmem:[%s9930_s5 + $0x38] sm:$0xff] }
  0x2a   : > { %908 = vst [vmem:[#allocation2 + $0x2d0] sm:$0xff] %v5562_v38  ;;  %5506 = vmatpush.msra.mxu2 %v4883_v11  ;;  %5008 = vmatpush.msrb.mxu0 %v4883_v11 }
  0x2b   : > { %912 = vst [vmem:[#allocation2 + $0x2f0] sm:$0x3] %v5562_v38 }
  0x2c   : > { %914 = vst [vmem:[#allocation2 + $0x300] sm:$0xff] %v5562_v38 }
  0x2d   : > { %918 = vst [vmem:[#allocation2 + $0x320] sm:$0x3] %v5562_v38 }
  0x2e   : > { %924 = vst [vmem:[#allocation2 + $0x350] sm:$0x3] %v5562_v38  ;;  %v4882_v38 = vld [vmem:[%s9930_s5 + $0x30] sm:$0xff] }
  0x2f   : > { %5507 = vmatpush.msra.mxu2 %v4882_v38  ;;  %5009 = vmatpush.msrb.mxu0 %v4882_v38  ;;  %v5838_v38 = vperm.slane %v5777_v1, 4 }
  0xb5   : > { %v5631_v12 = vpop.trf.xlu0  ;;  %v5633_v13 = vpop.trf.xlu1 }
  0xb6   : > { %10145 = vst [vmem:[#allocation3_spill] sm:$0xff] %v5631_v12  ;;  %5394 = vmatmul.msk.f32.vlgmr.msra.gmra.mxu0 %vm365_vm0, %v5633_v13 }
  0xb7   : > { %10146 = vst [vmem:[#allocation4_spill] sm:$0xff] %v5633_v13 }
  0xbd   : > { %v5637_v14 = vpop.trf.xlu0  ;;  %v5639_v15 = vpop.trf.xlu1 }
  0xbe   : > { %10147 = vst [vmem:[#allocation5_spill] sm:$0xff] %v5637_v14  ;;  %5395 = vmatmul.msk.f32.gmra.mxu0 %vm365_vm0, %v5639_v15 }
  0xbf   : > { %10148 = vst [vmem:[#allocation6_spill] sm:$0xff] %v5639_v15 }
  0xc5   : > { %v5643_v16 = vpop.trf.xlu0  ;;  %v5645_v17 = vpop.trf.xlu1 }
  0xc6   : > { %10149 = vst [vmem:[#allocation7_spill] sm:$0xff] %v5643_v16  ;;  %5396 = vmatmul.msk.f32.gmra.mxu0 %vm365_vm0, %v5645_v17 }
  0xc7   : > { %10150 = vst [vmem:[#allocation8_spill] sm:$0xff] %v5645_v17 }
  0xcd   : > { %v5649_v18 = vpop.trf.xlu0  ;;  %v5651_v19 = vpop.trf.xlu1 }
  0xce   : > { %10151 = vst [vmem:[#allocation9_spill] sm:$0xff] %v5649_v18  ;;  %5397 = vmatmul.msk.f32.gmra.mxu0 %vm365_vm0, %v5651_v19 }
  0xcf   : > { %10152 = vst [vmem:[#allocation10_spill] sm:$0xff] %v5651_v19 }
  0xd5   : > { %v5655_v20 = vpop.trf.xlu0  ;;  %v5657_v21 = vpop.trf.xlu1 }
  0xd6   : > { %10153 = vst [vmem:[#allocation11_spill] sm:$0xff] %v5655_v20  ;;  %5398 = vmatmul.msk.f32.gmra.mxu0 %vm365_vm0, %v5657_v21 }
  0xd7   : > { %10154 = vst [vmem:[#allocation12_spill] sm:$0xff] %v5657_v21 }
  0xdd   : > { %v5661_v22 = vpop.trf.xlu0  ;;  %v5663_v23 = vpop.trf.xlu1 }
  0xde   : > { %10155 = vst [vmem:[#allocation13_spill] sm:$0xff] %v5661_v22  ;;  %5399 = vmatmul.msk.f32.gmra.mxu0 %vm365_vm0, %v5663_v23 }
  0xdf   : > { %10156 = vst [vmem:[#allocation14_spill] sm:$0xff] %v5663_v23 }
  0xe5   : > { %v5667_v24 = vpop.trf.xlu0  ;;  %v5669_v25 = vpop.trf.xlu1 }
  0xe6   : > { %10157 = vst [vmem:[#allocation15_spill] sm:$0xff] %v5667_v24  ;;  %5400 = vmatmul.msk.f32.gmra.mxu0 %vm365_vm0, %v5669_v25 }
  0xe7   : > { %10158 = vst [vmem:[#allocation16_spill] sm:$0xff] %v5669_v25 }
  0xed   : > { %v5673_v26 = vpop.trf.xlu0  ;;  %v5675_v27 = vpop.trf.xlu1 }
  0xee   : > { %10159 = vst [vmem:[#allocation17_spill] sm:$0xff] %v5673_v26  ;;  %5401 = vmatmul.msk.f32.gmra.mxu0 %vm365_vm0, %v5675_v27 }
  0xef   : > { %10160 = vst [vmem:[#allocation18_spill] sm:$0xff] %v5675_v27 }
  0xf5   : > { %v5679_v28 = vpop.trf.xlu0  ;;  %v5681_v29 = vpop.trf.xlu1 }
  0xf6   : > { %10161 = vst [vmem:[#allocation19_spill] sm:$0xff] %v5679_v28  ;;  %5402 = vmatmul.msk.f32.gmra.mxu0 %vm365_vm0, %v5681_v29 }
  0xf7   : > { %10162 = vst [vmem:[#allocation20_spill] sm:$0xff] %v5681_v29 }
  0xfd   : > { %v5685_v30 = vpop.trf.xlu0  ;;  %v5687_v31 = vpop.trf.xlu1 }
  0xfe   : > { %10163 = vst [vmem:[#allocation21_spill] sm:$0xff] %v5685_v30  ;;  %5403 = vmatmul.msk.f32.gmra.mxu0 %vm365_vm0, %v5687_v31 }
  0xff   : > { %10164 = vst [vmem:[#allocation22_spill] sm:$0xff] %v5687_v31 }
 0x105   : > { %v5691_v32 = vpop.trf.xlu0  ;;  %v5693_v33 = vpop.trf.xlu1 }
 0x106   : > { %10165 = vst [vmem:[#allocation23_spill] sm:$0xff] %v5691_v32  ;;  %5404 = vmatmul.msk.f32.gmra.mxu0 %vm365_vm0, %v5693_v33 }
 0x107   : > { %10166 = vst [vmem:[#allocation24_spill] sm:$0xff] %v5693_v33 }
 0x10d   : > { %v5697_v34 = vpop.trf.xlu0  ;;  %v5699_v35 = vpop.trf.xlu1 }
 0x10e   : > { %10167 = vst [vmem:[#allocation25_spill] sm:$0xff] %v5697_v34  ;;  %5405 = vmatmul.msk.f32.gmra.mxu0 %vm365_vm0, %v5699_v35 }
 0x10f   : > { %10168 = vst [vmem:[#allocation26_spill] sm:$0xff] %v5699_v35 }
 0x115   : > { %v5715_v41 = vpop.trf.xlu0  ;;  %v5717_v42 = vpop.trf.xlu1 }
 0x116   : > { %10169 = vst [vmem:[#allocation27_spill] sm:$0xff] %v5715_v41  ;;  %5406 = vmatmul.msk.f32.gmra.mxu0 %vm365_vm0, %v5717_v42 }
 0x117   : > { %10170 = vst [vmem:[#allocation28_spill] sm:$0xff] %v5717_v42 }
 0x11d   : > { %v5721_v43 = vpop.trf.xlu0  ;;  %v5723_v44 = vpop.trf.xlu1 }
 0x11e   : > { %10171 = vst [vmem:[#allocation29_spill] sm:$0xff] %v5721_v43  ;;  %5407 = vmatmul.msk.f32.gmra.mxu0 %vm365_vm0, %v5723_v44 }
 0x11f   : > { %10172 = vst [vmem:[#allocation30_spill] sm:$0xff] %v5723_v44 }
 0x125   : > { %v5727_v45 = vpop.trf.xlu0  ;;  %v5729_v46 = vpop.trf.xlu1 }
 0x126   : > { %10173 = vst [vmem:[#allocation31_spill] sm:$0xff] %v5727_v45  ;;  %5408 = vmatmul.msk.f32.gmra.mxu0 %vm365_vm0, %v5729_v46 }
 0x127   : > { %10174 = vst [vmem:[#allocation32_spill] sm:$0xff] %v5729_v46 }
 0x12d   : > { %v5733_v47 = vpop.trf.xlu0  ;;  %v5735_v48 = vpop.trf.xlu1 }
 0x12e   : > { %10175 = vst [vmem:[#allocation33_spill] sm:$0xff] %v5733_v47  ;;  %5409 = vmatmul.msk.f32.gmra.mxu0 %vm365_vm0, %v5735_v48  ;;  %5425 = vmatmul.msk.f32.vlgmr.msra.gmra.mxu1 %vm365_vm0, %v5733_v47 }
 0x12f   : > { %10176 = vst [vmem:[#allocation34_spill] sm:$0xff] %v5735_v48 }
 0x133   : > { %v479_v51 = vpop.f32.mrf.mxu0 }
 0x134   : > { %v480_v52 = vadd.f32 %v479_v51, %v5744_v50  ;;  %v4881_v51 = vld [vmem:[%s9930_s5 + $0x28] sm:$0xff] }
 0x135   : > { %5508 = vmatpush.msra.mxu2 %v4881_v51  ;;  %5010 = vmatpush.msrb.mxu0 %v4881_v51 }
 0x136   : > { %v688_v54 = vmax.f32 %v480_v52, 0.0  ;;  %5410 = vmatmul.msk.f32.gmra.mxu0 %vm365_vm0, %v5631_v12  ;;  %5426 = vmatmul.msk.f32.vlgmr.msrb.gmra.mxu1 %vm365_vm0, %v5633_v13  ;;  %v5809_v52 = vperm.slane %v5777_v1, 0 }
 0x138   : > { %v752_v56 = vmin.f32 %v688_v54, 6.0 }
 0x13a   : > { %v991_v58 = vrot.slane %v752_v56, 7  ;;  %v4880_v56 = vld [vmem:[%s9930_s5 + $0x20] sm:$0xff] }
 0x13b   : > { %v482_v60 = vpop.f32.mrf.mxu0  ;;  %5509 = vmatpush.msra.mxu2 %v4880_v56  ;;  %5011 = vmatpush.msrb.mxu0 %v4880_v56 }
 0x13c   : > { %1184 = vst [vmem:[#allocation2 + $0x30] sm:$0xfe] %v991_v58  ;;  %v483_v61 = vadd.f32 %v482_v60, %v5744_v50 }
 0x13d   : > { %5510 = vmatpush.msra.mxu2 %v4879_v62  ;;  %5012 = vmatpush.msrb.mxu0 %v4879_v62 }
 0x13e   : > { %v690_v63 = vmax.f32 %v483_v61, 0.0  ;;  %5411 = vmatmul.msk.f32.gmra.mxu0 %vm365_vm0, %v5637_v14  ;;  %5427 = vmatmul.msk.f32.gmra.mxu1 %vm365_vm0, %v5639_v15 }
 0x13f   : > { %5511 = vmatpush.msra.mxu2 %v4878_v5  ;;  %5013 = vmatpush.msrb.mxu0 %v4878_v5 }
 0x140   : > { %v754_v2 = vmin.f32 %v690_v63, 6.0 }
 0x142   : > { %v993_v4 = vrot.slane %v754_v2, 7 }
 0x143   : > { %v485_v7 = vpop.f32.mrf.mxu0  ;;  %v1288_v8 = vld [vmem:[#allocation2 + $0x30] sm:$0xff] }
 0x144   : > { %v994_v9 = vsel %vm990_vm1, %v991_v58, %v993_v4  ;;  %1189 = vst [vmem:[#allocation2 + $0x50] sm:$0x1] %v993_v4  ;;  %v486_v10 = vadd.f32 %v485_v7, %v5744_v50  ;;  %v1532_v39 = vmul.f32 %v5786_v6, %v1288_v8  ;;  %v2015_v53 = vmul.f32 %v5794_v36, %v1288_v8 }
 0x145   : > { %1187 = vst [vmem:[#allocation2 + $0x40] sm:$0xff] %v994_v9  ;;  %v1534_v40 = vmul.f32 %v5786_v6, %v994_v9  ;;  %v5813_v54 = vmul.f32 %v5794_v36, %v994_v9  ;;  %v1400_v0 = vmul.f32 %v5809_v52, %v1288_v8 }
 0x146   : > { %v692_v37 = vmax.f32 %v486_v10, 0.0  ;;  %5412 = vmatmul.msk.f32.gmra.mxu0 %vm365_vm0, %v5643_v16  ;;  %5428 = vmatmul.msk.f32.gmra.mxu1 %vm365_vm0, %v5645_v17  ;;  %v1729_v57 = vrot.slane %v1532_v39, 1  ;;  %v2212_v2 = vrot.slane %v2015_v53, 2  ;;  %v4876_v53 = vld [vmem:[%s9930_s5] sm:$0xff] }
 0x147   : > { %v1730_v58 = vrot.slane %v1534_v40, 1  ;;  %v2213_v3 = vrot.slane %v5813_v54, 2  ;;  %v5841_v40 = vperm.slane %v5777_v1, 3 }
 0x148   : > { %v756_v49 = vmin.f32 %v692_v37, 6.0  ;;  %v4877_v37 = vld [vmem:[%s9930_s5 + $0x8] sm:$0xff] }
 0x149   : > { %v1731_v7 = vsel %vm1718_vm2, %v1729_v57, %v1730_v58  ;;  %5512 = vmatpush.msra.mxu2 %v4877_v37  ;;  %v2214_v54 = vsel %vm2201_vm3, %v2212_v2, %v2213_v3  ;;  %5014 = vmatpush.msrb.mxu0 %v4877_v37 }
 0x14a   : > { %v997_v55 = vrot.slane %v756_v49, 7  ;;  %v1947_v39 = vadd.f32 %v1731_v7, %v1400_v0  ;;  %v1402_v49 = vmul.f32 %v5809_v52, %v994_v9  ;;  %v5869_v7 = vperm.slane %v5777_v1, 7 }
 0x14b   : > { %v488_v59 = vpop.f32.mrf.mxu0  ;;  %v1292_v60 = vld [vmem:[#allocation2 + $0x50] sm:$0x3]  ;;  %5513 = vmatpush.msra.mxu2 %v4876_v53  ;;  %5015 = vmatpush.msrb.mxu0 %v4876_v53 }
 0x14c   : > { %1192 = vst [vmem:[#allocation2 + $0x60] sm:$0xfe] %v997_v55  ;;  %v489_v61 = vadd.f32 %v488_v59, %v5744_v50  ;;  %v1536_v63 = vmul.f32 %v5786_v6, %v1292_v60  ;;  %v2019_v8 = vmul.f32 %v5794_v36, %v1292_v60  ;;  %v2430_v0 = vadd.f32 %v2214_v54, %v1947_v39 }
 0x14e   : > { %v694_v4 = vmax.f32 %v489_v61, 0.0  ;;  %5413 = vmatmul.msk.f32.gmra.mxu0 %vm365_vm0, %v5649_v18  ;;  %5429 = vmatmul.msk.f32.gmra.mxu1 %vm365_vm0, %v5651_v19  ;;  %v1735_v10 = vrot.slane %v1536_v63, 1  ;;  %v2218_v57 = vrot.slane %v2019_v8, 2  ;;  %v5850_v61 = vperm.slane %v5777_v1, 5 }
 0x150   : > { %v758_v11 = vmin.f32 %v694_v4, 6.0  ;;  %v1736_v56 = vsel %vm1718_vm2, %v1730_v58, %v1735_v10  ;;  %v2219_v10 = vsel %vm2201_vm3, %v2213_v3, %v2218_v57 }
 0x151   : > { %v1949_v4 = vadd.f32 %v1736_v56, %v1402_v49 }
 0x152   : > { %v999_v51 = vrot.slane %v758_v11, 7 }
 0x153   : > { %v491_v59 = vpop.f32.mrf.mxu0  ;;  %v1294_v60 = vld [vmem:[#allocation2 + $0x60] sm:$0xff] }
 0x154   : > { %v5853_v9 = vsel %vm990_vm1, %v997_v55, %v999_v51  ;;  %1196 = vst [vmem:[#allocation2 + $0x80] sm:$0x1] %v999_v51  ;;  %v492_v62 = vadd.f32 %v491_v59, %v5744_v50  ;;  %v2628_v63 = vmul.f32 %v5838_v38, %v1294_v60  ;;  %v2496_v58 = vmul.f32 %v5841_v40, %v1294_v60 }
 0x155   : > { %1194 = vst [vmem:[#allocation2 + $0x70] sm:$0xff] %v5853_v9  ;;  %v2630_v2 = vmul.f32 %v5838_v38, %v5853_v9  ;;  %v5866_v55 = vperm.slane %v5777_v1, 6  ;;  %v3110_v37 = vmul.f32 %v5850_v61, %v1294_v60  ;;  %v3112_v39 = vmul.f32 %v5850_v61, %v5853_v9 }
 0x156   : > { %v696_v5 = vmax.f32 %v492_v62, 0.0  ;;  %5414 = vmatmul.msk.f32.gmra.mxu0 %vm365_vm0, %v5655_v20  ;;  %5430 = vmatmul.msk.f32.gmra.mxu1 %vm365_vm0, %v5657_v21  ;;  %v2824_v8 = vrot.slane %v2628_v63, 1  ;;  %v1538_v51 = vmul.f32 %v5786_v6, %v1294_v60  ;;  %v1540_v54 = vmul.f32 %v5786_v6, %v5853_v9 }
 0x157   : > { %v2825_v11 = vrot.slane %v2630_v2, 1  ;;  %v2021_v56 = vmul.f32 %v5794_v36, %v1294_v60  ;;  %v2560_v1 = vadd.f32 %v2496_v58, %v2430_v0  ;;  %v2432_v59 = vadd.f32 %v2219_v10, %v1949_v4 }
 0x158   : > { %v760_v49 = vmin.f32 %v696_v5, 6.0  ;;  %v2498_v3 = vmul.f32 %v5841_v40, %v5853_v9  ;;  %v2023_v57 = vmul.f32 %v5794_v36, %v5853_v9  ;;  %v1404_v63 = vmul.f32 %v5809_v52, %v1294_v60 }
 0x159   : > { %v1739_v53 = vrot.slane %v1538_v51, 1  ;;  %v1740_v2 = vrot.slane %v1540_v54, 1  ;;  %v2826_v21 = vsel %vm1718_vm2, %v2824_v8, %v2825_v11  ;;  %v3306_v19 = vrot.slane %v3110_v37, 2 }
 0x15a   : > { %v1003_v62 = vrot.slane %v760_v49, 7  ;;  %v3307_v17 = vrot.slane %v3112_v39, 2  ;;  %v2222_v13 = vrot.slane %v2021_v56, 2  ;;  %v2223_v10 = vrot.slane %v2023_v57, 2 }
 0x15b   : > { %v494_v5 = vpop.f32.mrf.mxu0  ;;  %v1298_v15 = vld [vmem:[#allocation2 + $0x80] sm:$0x3]  ;;  %v2562_v49 = vadd.f32 %v2498_v3, %v2432_v59  ;;  %v1741_v60 = vsel %vm1718_vm2, %v1739_v53, %v1740_v2  ;;  %v3042_v37 = vadd.f32 %v2826_v21, %v2560_v1  ;;  %v5905_v21 = vld [vmem:[%s9928_s3 + $0x10] ss:$0 sm:$0xff]  ;;  %v1406_v1 = vmul.f32 %v5809_v52, %v5853_v9 }
 0x15c   : > { %1198 = vst [vmem:[#allocation2 + $0x90] sm:$0xfe] %v1003_v62  ;;  %v495_v0 = vadd.f32 %v494_v5, %v5744_v50  ;;  %v2632_v58 = vmul.f32 %v5838_v38, %v1298_v15  ;;  %v3114_v4 = vmul.f32 %v5850_v61, %v1298_v15  ;;  %v1542_v51 = vmul.f32 %v5786_v6, %v1298_v15 }
 0x15d   : > { %v2025_v54 = vmul.f32 %v5794_v36, %v1298_v15  ;;  %v3308_v5 = vsel %vm2201_vm3, %v3306_v19, %v3307_v17  ;;  %v1951_v57 = vadd.f32 %v1741_v60, %v1404_v63  ;;  %v4678_v15 = vld [vmem:[%s9929_s4] sm:$0x3] }
 0x15e   : > { %v698_v8 = vmax.f32 %v495_v0, 0.0  ;;  %5415 = vmatmul.msk.f32.gmra.mxu0 %vm365_vm0, %v5661_v22  ;;  %5431 = vmatmul.msk.f32.gmra.mxu1 %vm365_vm0, %v5663_v23  ;;  %v2830_v39 = vrot.slane %v2632_v58, 1  ;;  %v3312_v56 = vrot.slane %v3114_v4, 2  ;;  %v1745_v59 = vrot.slane %v1542_v51, 1 }
 0x15f   : > { %v2228_v3 = vrot.slane %v2025_v54, 2  ;;  %v2224_v22 = vsel %vm2201_vm3, %v2222_v13, %v2223_v10  ;;  %v3524_v58 = vadd.f32 %v3308_v5, %v3042_v37 }
 0x160   : > { %v762_v53 = vmin.f32 %v698_v8, 6.0  ;;  %v2831_v0 = vsel %vm1718_vm2, %v2825_v11, %v2830_v39  ;;  %v3313_v47 = vsel %vm2201_vm3, %v3307_v17, %v3312_v56  ;;  %v1746_v4 = vsel %vm1718_vm2, %v1740_v2, %v1745_v59 }
 0x161   : > { %v3044_v19 = vadd.f32 %v2831_v0, %v2562_v49  ;;  %v5912_v11 = vperm.slane %v4678_v15, 0  ;;  %v2434_v13 = vadd.f32 %v2224_v22, %v1951_v57  ;;  %v2229_v54 = vsel %vm2201_vm3, %v2223_v10, %v2228_v3 }
 0x162   : > { %v1005_v63 = vrot.slane %v762_v53, 7 }
 0x163   : > { %v497_v60 = vpop.f32.mrf.mxu0  ;;  %v5910_v51 = vld [vmem:[#allocation2 + $0x90] sm:$0xff]  ;;  %10177 = vst [vmem:[#allocation35_spill] sm:$0xff] %v5912_v11  ;;  %v3526_v17 = vadd.f32 %v3313_v47, %v3044_v19 }
 0x164   : > { %v5916_v8 = vsel %vm990_vm1, %v1003_v62, %v1005_v63  ;;  %1202 = vst [vmem:[#allocation2 + $0xb0] sm:$0x1] %v1005_v63  ;;  %v498_v49 = vadd.f32 %v497_v60, %v5744_v50  ;;  %v3590_v9 = vmul.f32 %v5866_v55, %v5910_v51  ;;  %v3722_v2 = vmul.f32 %v5869_v7, %v5910_v51 }
 0x165   : > { %v3724_v37 = vmul.f32 %v5869_v7, %v5916_v8  ;;  %v4204_v22 = vmul.f32 %v5905_v21, %v5910_v51  ;;  %v4206_v47 = vmul.f32 %v5905_v21, %v5916_v8  ;;  %v1953_v62 = vadd.f32 %v1746_v4, %v1406_v1 }
 0x166   : > { %v700_v10 = vmax.f32 %v498_v49, 0.0  ;;  %5416 = vmatmul.msk.f32.gmra.mxu0 %vm365_vm0, %v5667_v24  ;;  %5432 = vmatmul.msk.f32.gmra.mxu1 %vm365_vm0, %v5669_v25  ;;  %v3654_v39 = vadd.f32 %v3590_v9, %v3524_v58  ;;  %v3918_v56 = vrot.slane %v3722_v2, 1  ;;  %v3592_v5 = vmul.f32 %v5866_v55, %v5916_v8 }
 0x167   : > { %v3919_v57 = vrot.slane %v3724_v37, 1  ;;  %v4400_v59 = vrot.slane %v4204_v22, 2  ;;  %v4401_v3 = vrot.slane %v4206_v47, 2  ;;  %v2500_v53 = vmul.f32 %v5841_v40, %v5910_v51 }
 0x168   : > { %v764_v15 = vmin.f32 %v700_v10, 6.0  ;;  %v3656_v0 = vadd.f32 %v3592_v5, %v3526_v17  ;;  %v2634_v19 = vmul.f32 %v5838_v38, %v5910_v51  ;;  %v2636_v1 = vmul.f32 %v5838_v38, %v5916_v8 }
 0x169   : > { %v3920_v63 = vsel %vm1718_vm2, %v3918_v56, %v3919_v57  ;;  %v4402_v58 = vsel %vm2201_vm3, %v4400_v59, %v4401_v3  ;;  %v2564_v4 = vadd.f32 %v2500_v53, %v2434_v13  ;;  %v3116_v60 = vmul.f32 %v5850_v61, %v5910_v51 }
 0x16a   : > { %v1009_v49 = vrot.slane %v764_v15, 7  ;;  %v4136_v9 = vadd.f32 %v3920_v63, %v3654_v39  ;;  %v2834_v2 = vrot.slane %v2634_v19, 1  ;;  %v2835_v37 = vrot.slane %v2636_v1, 1 }
 0x16b   : > { %v500_v22 = vpop.f32.mrf.mxu0  ;;  %v5945_v17 = vld [vmem:[#allocation2 + $0xb0] sm:$0x3]  ;;  %v3118_v47 = vmul.f32 %v5850_v61, %v5916_v8  ;;  %v3316_v10 = vrot.slane %v3116_v60, 2  ;;  %v2436_v5 = vadd.f32 %v2229_v54, %v1953_v62  ;;  %v2502_v56 = vmul.f32 %v5841_v40, %v5916_v8 }
 0x16c   : > { %1204 = vst [vmem:[#allocation2 + $0xc0] sm:$0xfe] %v1009_v49  ;;  %v501_v13 = vadd.f32 %v500_v22, %v5744_v50  ;;  %v4618_v59 = vadd.f32 %v4402_v58, %v4136_v9  ;;  %v3726_v39 = vmul.f32 %v5869_v7, %v5945_v17  ;;  %v4208_v53 = vmul.f32 %v5905_v21, %v5945_v17 }
 0x16d   : > { %v2836_v15 = vsel %vm1718_vm2, %v2834_v2, %v2835_v37  ;;  %v3317_v19 = vrot.slane %v3118_v47, 2  ;;  %v2566_v1 = vadd.f32 %v2502_v56, %v2436_v5  ;;  %v2638_v54 = vmul.f32 %v5838_v38, %v5945_v17 }
 0x16e   : > { %v702_v62 = vmax.f32 %v501_v13, 0.0  ;;  %5417 = vmatmul.msk.f32.gmra.mxu0 %vm365_vm0, %v5673_v26  ;;  %5433 = vmatmul.msk.f32.gmra.mxu1 %vm365_vm0, %v5675_v27  ;;  %v4688_v63 = vadd.f32 %v5912_v11, %v4618_v59  ;;  %v3924_v58 = vrot.slane %v3726_v39, 1  ;;  %v4406_v60 = vrot.slane %v4208_v53, 2 }
 0x16f   : > { %v3046_v9 = vadd.f32 %v2836_v15, %v2564_v4  ;;  %v3318_v22 = vsel %vm2201_vm3, %v3316_v10, %v3317_v19  ;;  %v2840_v2 = vrot.slane %v2638_v54, 1  ;;  %v3120_v47 = vmul.f32 %v5850_v61, %v5945_v17 }
 0x170   : > { %v766_v5 = vmin.f32 %v702_v62, 6.0  ;;  %v4752_v56 = vmax.f32 %v4688_v63, 0.0  ;;  %v3925_v13 = vsel %vm1718_vm2, %v3919_v57, %v3924_v58  ;;  %v4407_v25 = vsel %vm2201_vm3, %v4401_v3, %v4406_v60 }
 0x171   : > { %v4138_v23 = vadd.f32 %v3925_v13, %v3656_v0  ;;  %v3528_v26 = vadd.f32 %v3318_v22, %v3046_v9  ;;  %v2841_v27 = vsel %vm1718_vm2, %v2835_v37, %v2840_v2  ;;  %v3322_v59 = vrot.slane %v3120_v47, 2 }
 0x172   : > { %v1011_v39 = vrot.slane %v766_v5, 7  ;;  %v4816_v53 = vmin.f32 %v4752_v56, 6.0  ;;  %v3048_v4 = vadd.f32 %v2841_v27, %v2566_v1  ;;  %v1408_v10 = vmul.f32 %v5809_v52, %v5910_v51 }
 0x173   : > { %v503_v15 = vpop.f32.mrf.mxu0  ;;  %v4620_v54 = vadd.f32 %v4407_v25, %v4138_v23  ;;  %v5972_v24 = vld [vmem:[#allocation2 + $0xc0] sm:$0xff]  ;;  %v3323_v62 = vsel %vm2201_vm3, %v3317_v19, %v3322_v59  ;;  %v1544_v57 = vmul.f32 %v5786_v6, %v5910_v51  ;;  %v5979_v3 = vmul.f32 %v5786_v6, %v5916_v8 }
 0x174   : > { %v5982_v0 = vsel %vm990_vm1, %v1009_v49, %v1011_v39  ;;  %1208 = vst [vmem:[#allocation2 + $0xe0] sm:$0x1] %v1011_v39  ;;  %v504_v27 = vadd.f32 %v503_v15, %v5744_v50  ;;  %5022 = vmatmul.f32.vlgmr.msra.gmra.mxu2 %v4816_v53  ;;  %v3594_v23 = vmul.f32 %v5866_v55, %v5972_v24 }
 0x175   : > { %v4690_v25 = vadd.f32 %v5912_v11, %v4620_v54  ;;  %v3728_v37 = vmul.f32 %v5869_v7, %v5972_v24  ;;  %v3730_v19 = vmul.f32 %v5869_v7, %v5982_v0  ;;  %v4210_v1 = vmul.f32 %v5905_v21, %v5972_v24 }
 0x176   : > { %v704_v49 = vmax.f32 %v504_v27, 0.0  ;;  %5418 = vmatmul.msk.f32.gmra.mxu0 %vm365_vm0, %v5679_v28  ;;  %5434 = vmatmul.msk.f32.gmra.mxu1 %vm365_vm0, %v5681_v29  ;;  %v3658_v63 = vadd.f32 %v3594_v23, %v3528_v26  ;;  %v4212_v58 = vmul.f32 %v5905_v21, %v5982_v0  ;;  %v3530_v60 = vadd.f32 %v3323_v62, %v3048_v4 }
 0x177   : > { %v4754_v9 = vmax.f32 %v4690_v25, 0.0  ;;  %v3928_v22 = vrot.slane %v3728_v37, 1  ;;  %v3929_v2 = vrot.slane %v3730_v19, 1  ;;  %v4410_v47 = vrot.slane %v4210_v1, 2 }
 0x178   : > { %v768_v5 = vmin.f32 %v704_v49, 6.0  ;;  %v4411_v56 = vrot.slane %v4212_v58, 2  ;;  %v3596_v13 = vmul.f32 %v5866_v55, %v5982_v0  ;;  %v1749_v59 = vrot.slane %v1544_v57, 1 }
 0x179   : > { %v4818_v39 = vmin.f32 %v4754_v9, 6.0  ;;  %v3930_v53 = vsel %vm1718_vm2, %v3928_v22, %v3929_v2  ;;  %v9949_v15 = vrot.slane %v5979_v3, 1  ;;  %v2027_v26 = vmul.f32 %v5794_v36, %v5910_v51 }
 0x17a   : > { %v1015_v54 = vrot.slane %v768_v5, 7  ;;  %v4140_v4 = vadd.f32 %v3930_v53, %v3658_v63  ;;  %v4412_v62 = vsel %vm2201_vm3, %v4410_v47, %v4411_v56  ;;  %v3660_v27 = vadd.f32 %v3596_v13, %v3530_v60 }
 0x17b   : > { %v506_v23 = vpop.f32.mrf.mxu0  ;;  %v6007_v25 = vld [vmem:[#allocation2 + $0xe0] sm:$0x3]  ;;  %v1751_v57 = vsel %vm1718_vm2, %v1749_v59, %v9949_v15  ;;  %v6014_v37 = vmul.f32 %v5794_v36, %v5916_v8  ;;  %v2232_v19 = vrot.slane %v2027_v26, 2  ;;  %v2504_v51 = vmul.f32 %v5841_v40, %v5972_v24 }
 0x17c   : > { %1210 = vst [vmem:[#allocation2 + $0xf0] sm:$0xfe] %v1015_v54  ;;  %v507_v1 = vadd.f32 %v506_v23, %v5744_v50  ;;  %5025 = vmatmul.f32.gmra.mxu2 %v4818_v39  ;;  %v4622_v49 = vadd.f32 %v4412_v62, %v4140_v4  ;;  %v3732_v63 = vmul.f32 %v5869_v7, %v6007_v25 }
 0x17d   : > { %v4214_v58 = vmul.f32 %v5905_v21, %v6007_v25  ;;  %v1955_v60 = vadd.f32 %v1751_v57, %v1408_v10  ;;  %v9950_v9 = vrot.slane %v6014_v37, 2  ;;  %v2640_v22 = vmul.f32 %v5838_v38, %v5972_v24 }
 0x17e   : > { %v706_v47 = vmax.f32 %v507_v1, 0.0  ;;  %5419 = vmatmul.msk.f32.gmra.mxu0 %vm365_vm0, %v5685_v30  ;;  %5435 = vmatmul.msk.f32.gmra.mxu1 %vm365_vm0, %v5687_v31  ;;  %v4692_v5 = vadd.f32 %v5912_v11, %v4622_v49  ;;  %v3934_v13 = vrot.slane %v3732_v63, 1  ;;  %v6033_v59 = vmul.f32 %v5838_v38, %v5982_v0 }
 0x17f   : > { %v4416_v10 = vrot.slane %v4214_v58, 2  ;;  %v2234_v39 = vsel %vm2201_vm3, %v2232_v19, %v9950_v9  ;;  %v2844_v53 = vrot.slane %v2640_v22, 1  ;;  %v3122_v26 = vmul.f32 %v5850_v61, %v5972_v24 }
 0x180   : > { %v770_v4 = vmin.f32 %v706_v47, 6.0  ;;  %v4756_v62 = vmax.f32 %v4692_v5, 0.0  ;;  %v3935_v23 = vsel %vm1718_vm2, %v3929_v2, %v3934_v13  ;;  %v2438_v57 = vadd.f32 %v2234_v39, %v1955_v60 }
 0x181   : > { %v4142_v1 = vadd.f32 %v3935_v23, %v3660_v27  ;;  %v4417_v49 = vsel %vm2201_vm3, %v4411_v56, %v4416_v10  ;;  %v2845_v63 = vrot.slane %v6033_v59, 1  ;;  %v6045_v58 = vmul.f32 %v5850_v61, %v5982_v0 }
 0x182   : > { %v1017_v15 = vrot.slane %v770_v4, 7  ;;  %v4820_v19 = vmin.f32 %v4756_v62, 6.0  ;;  %v2568_v22 = vadd.f32 %v2504_v51, %v2438_v57  ;;  %v3326_v9 = vrot.slane %v3122_v26, 2 }
 0x183   : > { %v509_v31 = vpop.f32.mrf.mxu0  ;;  %v4624_v29 = vadd.f32 %v4417_v49, %v4142_v1  ;;  %v6047_v47 = vld [vmem:[#allocation2 + $0xf0] sm:$0xff]  ;;  %v2846_v2 = vsel %vm1718_vm2, %v2844_v53, %v2845_v63  ;;  %v3327_v56 = vrot.slane %v6045_v58, 2  ;;  %v1410_v27 = vmul.f32 %v5809_v52, %v5916_v8 }
 0x184   : > { %v6056_v60 = vsel %vm990_vm1, %v1015_v54, %v1017_v15  ;;  %1214 = vst [vmem:[#allocation2 + $0x110] sm:$0x1] %v1017_v15  ;;  %v510_v51 = vadd.f32 %v509_v31, %v5744_v50  ;;  %5028 = vmatmul.f32.gmra.mxu2 %v4820_v19  ;;  %v3050_v5 = vadd.f32 %v2846_v2, %v2568_v22 }
 0x185   : > { %v4694_v13 = vadd.f32 %v5912_v11, %v4624_v29  ;;  %v3328_v10 = vsel %vm2201_vm3, %v3326_v9, %v3327_v56  ;;  %v3598_v39 = vmul.f32 %v5866_v55, %v6047_v47  ;;  %v3734_v53 = vmul.f32 %v5869_v7, %v6047_v47 }
 0x186   : > { %v708_v26 = vmax.f32 %v510_v51, 0.0  ;;  %5420 = vmatmul.msk.f32.gmra.mxu0 %vm365_vm0, %v5691_v32  ;;  %5436 = vmatmul.msk.f32.gmra.mxu1 %vm365_vm0, %v5693_v33  ;;  %v3532_v31 = vadd.f32 %v3328_v10, %v3050_v5  ;;  %v3736_v8 = vmul.f32 %v5869_v7, %v6056_v60  ;;  %v4216_v29 = vmul.f32 %v5905_v21, %v6047_v47 }
 0x187   : > { %v4758_v15 = vmax.f32 %v4694_v13, 0.0  ;;  %v3938_v54 = vrot.slane %v3734_v53, 1  ;;  %v4218_v9 = vmul.f32 %v5905_v21, %v6056_v60  ;;  %v1548_v4 = vmul.f32 %v5786_v6, %v5945_v17 }
 0x188   : > { %v772_v62 = vmin.f32 %v708_v26, 6.0  ;;  %v3662_v23 = vadd.f32 %v3598_v39, %v3532_v31  ;;  %v3939_v57 = vrot.slane %v3736_v8, 1  ;;  %v4420_v1 = vrot.slane %v4216_v29, 2 }
 0x189   : > { %v4822_v49 = vmin.f32 %v4758_v15, 6.0  ;;  %v4421_v58 = vrot.slane %v4218_v9, 2  ;;  %v1755_v19 = vrot.slane %v1548_v4, 1  ;;  %v2031_v22 = vmul.f32 %v5794_v36, %v5945_v17 }
 0x18a   : > { %v1021_v2 = vrot.slane %v772_v62, 7  ;;  %v3940_v51 = vsel %vm1718_vm2, %v3938_v54, %v3939_v57  ;;  %v2506_v5 = vmul.f32 %v5841_v40, %v5982_v0  ;;  %v2644_v13 = vmul.f32 %v5838_v38, %v6007_v25 }
 0x18b   : > { %v512_v10 = vpop.f32.mrf.mxu0  ;;  %v4144_v53 = vadd.f32 %v3940_v51, %v3662_v23  ;;  %v4422_v39 = vsel %vm2201_vm3, %v4420_v1, %v4421_v58  ;;  %v6085_v26 = vld [vmem:[#allocation2 + $0x110] sm:$0x3]  ;;  %v10178_v31 = vrot.slane %v5979_v3, 1  ;;  %v2238_v17 = vrot.slane %v2031_v22, 2 }
 0x18c   : > { %1216 = vst [vmem:[#allocation2 + $0x120] sm:$0xfe] %v1021_v2  ;;  %v513_v29 = vadd.f32 %v512_v10, %v5744_v50  ;;  %5031 = vmatmul.f32.gmra.mxu2 %v4822_v49  ;;  %v2850_v54 = vrot.slane %v2644_v13, 1  ;;  %v3126_v9 = vmul.f32 %v5850_v61, %v6007_v25  ;;  %v10179_v62 = vrot.slane %v6014_v37, 2 }
 0x18d   : > { %v1756_v8 = vsel %vm1718_vm2, %v10178_v31, %v1755_v19  ;;  %v4626_v4 = vadd.f32 %v4422_v39, %v4144_v53  ;;  %v3600_v3 = vmul.f32 %v5866_v55, %v6056_v60  ;;  %v3738_v1 = vmul.f32 %v5869_v7, %v6085_v26 }
 0x18e   : > { %v1957_v15 = vadd.f32 %v1756_v8, %v1410_v27  ;;  %v2239_v23 = vsel %vm2201_vm3, %v10179_v62, %v2238_v17  ;;  %v710_v19 = vmax.f32 %v513_v29, 0.0  ;;  %5421 = vmatmul.msk.f32.gmra.mxu0 %vm365_vm0, %v5697_v34  ;;  %5437 = vmatmul.msk.f32.gmra.mxu1 %vm365_vm0, %v5699_v35  ;;  %v2851_v37 = vsel %vm1718_vm2, %v2845_v63, %v2850_v54 }
 0x18f   : > { %v3332_v49 = vrot.slane %v3126_v9, 2  ;;  %v4696_v22 = vadd.f32 %v5912_v11, %v4626_v4  ;;  %v3944_v51 = vrot.slane %v3738_v1, 1  ;;  %v4220_v13 = vmul.f32 %v5905_v21, %v6085_v26 }
 0x190   : > { %v2440_v27 = vadd.f32 %v2239_v23, %v1957_v15  ;;  %v1412_v10 = vmul.f32 %v5809_v52, %v5972_v24  ;;  %v774_v53 = vmin.f32 %v710_v19, 6.0  ;;  %v1550_v8 = vmul.f32 %v5786_v6, %v5972_v24 }
 0x191   : > { %v3333_v31 = vsel %vm2201_vm3, %v3327_v56, %v3332_v49  ;;  %v4760_v59 = vmax.f32 %v4696_v22, 0.0  ;;  %v3945_v63 = vsel %vm1718_vm2, %v3939_v57, %v3944_v51  ;;  %v4426_v17 = vrot.slane %v4220_v13, 2 }
 0x192   : > { %v2570_v39 = vadd.f32 %v2506_v5, %v2440_v27  ;;  %v6118_v29 = vmul.f32 %v5786_v6, %v5982_v0  ;;  %v1023_v15 = vrot.slane %v774_v53, 7  ;;  %v1759_v9 = vrot.slane %v1550_v8, 1 }
 0x193   : > { %v2033_v4 = vmul.f32 %v5794_v36, %v5972_v24  ;;  %v515_v5 = vpop.f32.mrf.mxu0  ;;  %v4824_v62 = vmin.f32 %v4760_v59, 6.0  ;;  %v4427_v56 = vsel %vm2201_vm3, %v4421_v58, %v4426_v17  ;;  %v6126_v57 = vmul.f32 %v5794_v36, %v5982_v0  ;;  %v6144_v13 = vld [vmem:[#allocation2 + $0x120] sm:$0xff] }
 0x194   : > { %v3052_v54 = vadd.f32 %v2851_v37, %v2570_v39  ;;  %v1760_v23 = vrot.slane %v6118_v29, 1  ;;  %v6129_v1 = vsel %vm990_vm1, %v1021_v2, %v1023_v15  ;;  %1220 = vst [vmem:[#allocation2 + $0x140] sm:$0x1] %v1023_v15  ;;  %v516_v19 = vadd.f32 %v515_v5, %v5744_v50 }
 0x195   : > { %v2242_v37 = vrot.slane %v2033_v4, 2  ;;  %5034 = vmatmul.f32.gmra.mxu2 %v4824_v62  ;;  %v2243_v58 = vrot.slane %v6126_v57, 2  ;;  %v2508_v49 = vmul.f32 %v5841_v40, %v6047_v47  ;;  %v2646_v22 = vmul.f32 %v5838_v38, %v6047_v47 }
 0x196   : > { %v3534_v27 = vadd.f32 %v3333_v31, %v3052_v54  ;;  %v1761_v24 = vsel %vm1718_vm2, %v1759_v9, %v1760_v23  ;;  %v712_v2 = vmax.f32 %v516_v19, 0.0  ;;  %5422 = vmatmul.msk.f32.gmra.mxu0 %vm365_vm0, %v5715_v41  ;;  %5438 = vmatmul.msk.f32.gmra.mxu1 %vm365_vm0, %v5717_v42  ;;  %v6148_v39 = vmul.f32 %v5838_v38, %v6056_v60 }
 0x197   : > { %v1959_v53 = vadd.f32 %v1761_v24, %v1412_v10  ;;  %v2244_v31 = vsel %vm2201_vm3, %v2242_v37, %v2243_v58  ;;  %v2854_v8 = vrot.slane %v2646_v22, 1  ;;  %v3128_v59 = vmul.f32 %v5850_v61, %v6047_v47 }
 0x198   : > { %v3664_v51 = vadd.f32 %v3600_v3, %v3534_v27  ;;  %v6157_v17 = vmul.f32 %v5850_v61, %v6056_v60  ;;  %v776_v3 = vmin.f32 %v712_v2, 6.0  ;;  %v9956_v10 = vrot.slane %v6148_v39, 1 }
 0x199   : > { %v2442_v54 = vadd.f32 %v2244_v31, %v1959_v53  ;;  %v3336_v9 = vrot.slane %v3128_v59, 2  ;;  %v3602_v5 = vmul.f32 %v5866_v55, %v6144_v13  ;;  %v3740_v62 = vmul.f32 %v5869_v7, %v6144_v13 }
 0x19a   : > { %v4146_v15 = vadd.f32 %v3945_v63, %v3664_v51  ;;  %v9955_v4 = vrot.slane %v6157_v17, 2  ;;  %v1027_v19 = vrot.slane %v776_v3, 7  ;;  %v2856_v24 = vsel %vm1718_vm2, %v2854_v8, %v9956_v10 }
 0x19b   : > { %v2572_v37 = vadd.f32 %v2508_v49, %v2442_v54  ;;  %v518_v63 = vpop.f32.mrf.mxu0  ;;  %v6173_v2 = vmul.f32 %v5869_v7, %v6129_v1  ;;  %v3948_v51 = vrot.slane %v3740_v62, 1  ;;  %v4222_v53 = vmul.f32 %v5905_v21, %v6144_v13 }
 0x19c   : > { %v4628_v27 = vadd.f32 %v4427_v56, %v4146_v15  ;;  %v3338_v22 = vsel %vm2201_vm3, %v3336_v9, %v9955_v4  ;;  %1222 = vst [vmem:[#allocation2 + $0x150] sm:$0xfe] %v1027_v19  ;;  %v519_v56 = vadd.f32 %v518_v63, %v5744_v50  ;;  %v6181_v8 = vmul.f32 %v5905_v21, %v6129_v1 }
 0x19d   : > { %v3054_v31 = vadd.f32 %v2856_v24, %v2572_v37  ;;  %v9954_v59 = vrot.slane %v6173_v2, 1  ;;  %v4430_v3 = vrot.slane %v4222_v53, 2  ;;  %v1554_v24 = vmul.f32 %v5786_v6, %v6007_v25 }
 0x19e   : > { %v4698_v49 = vadd.f32 %v5912_v11, %v4628_v27  ;;  %v714_v15 = vmax.f32 %v519_v56, 0.0  ;;  %5423 = vmatmul.msk.f32.gmra.mxu0 %vm365_vm0, %v5721_v43  ;;  %5439 = vmatmul.msk.f32.gmra.mxu1 %vm365_vm0, %v5723_v44  ;;  %v9953_v62 = vrot.slane %v6181_v8, 2  ;;  %v6189_v27 = vld [vmem:[#allocation2] sm:$0xff]  ;;  %v10180_v29 = vrot.slane %v6148_v39, 1 }
 0x19f   : > { %v3536_v9 = vadd.f32 %v3338_v22, %v3054_v31  ;;  %825 = vst.msk [vmem:[#allocation2 + $0x38] sm:$0xff] %vm817_vm4, %v6189_v27  ;;  %v3950_v37 = vsel %vm1718_vm2, %v3948_v51, %v9954_v59  ;;  %v6202_v56 = vld [vmem:[#allocation2 + $0x140] sm:$0x3]  ;;  %v1765_v31 = vrot.slane %v1554_v24, 1 }
 0x1a0   : > { %v4762_v54 = vmax.f32 %v4698_v49, 0.0  ;;  %818 = vst.msk [vmem:[#allocation2 + $0x8] sm:$0xff] %vm817_vm4, %v6189_v27  ;;  %v778_v63 = vmin.f32 %v714_v15, 6.0  ;;  %v1414_v49 = vmul.f32 %v5809_v52, %v5982_v0  ;;  %v4432_v51 = vsel %vm2201_vm3, %v4430_v3, %v9953_v62 }
 0x1a1   : > { %v3666_v22 = vadd.f32 %v3602_v5, %v3536_v9  ;;  %820 = vst.msk [vmem:[#allocation2 + $0x18] sm:$0xff] %vm817_vm4, %v6189_v27  ;;  %v2037_v15 = vmul.f32 %v5794_v36, %v6007_v25  ;;  %v2650_v5 = vmul.f32 %v5838_v38, %v6085_v26  ;;  %v2510_v0 = vmul.f32 %v5841_v40, %v6056_v60 }
 0x1a2   : > { %v4826_v53 = vmin.f32 %v4762_v54, 6.0  ;;  %827 = vst.msk [vmem:[#allocation2 + $0x48] sm:$0xff] %vm817_vm4, %v6189_v27  ;;  %v1029_v54 = vrot.slane %v778_v63, 7  ;;  %v3132_v3 = vmul.f32 %v5850_v61, %v6085_v26  ;;  %v1766_v25 = vsel %vm1718_vm2, %v1760_v23, %v1765_v31 }
 0x1a3   : > { %v4148_v9 = vadd.f32 %v3950_v37, %v3666_v22  ;;  %831 = vst.msk [vmem:[#allocation2 + $0x68] sm:$0xff] %vm817_vm4, %v6189_v27  ;;  %v521_v62 = vpop.f32.mrf.mxu0  ;;  %v2248_v24 = vrot.slane %v2037_v15, 2  ;;  %v2860_v63 = vrot.slane %v2650_v5, 1  ;;  %v3744_v37 = vmul.f32 %v5869_v7, %v6202_v56 }
 0x1a4   : > { %5037 = vmatmul.f32.gmra.mxu2 %v4826_v53  ;;  %833 = vst.msk [vmem:[#allocation2 + $0x78] sm:$0xff] %vm817_vm4, %v6189_v27  ;;  %v6229_v53 = vsel %vm990_vm1, %v1027_v19, %v1029_v54  ;;  %v522_v22 = vadd.f32 %v521_v62, %v5744_v50  ;;  %v1961_v4 = vadd.f32 %v1766_v25, %v1414_v49  ;;  %v3342_v31 = vrot.slane %v3132_v3, 2 }
 0x1a5   : > { %1226 = vst [vmem:[#allocation2 + $0x170] sm:$0x1] %v1029_v54  ;;  %v4630_v59 = vadd.f32 %v4432_v51, %v4148_v9  ;;  %v2249_v10 = vsel %vm2201_vm3, %v2243_v58, %v2248_v24  ;;  %v2861_v23 = vsel %vm1718_vm2, %v10180_v29, %v2860_v63  ;;  %v3604_v15 = vmul.f32 %v5866_v55, %v6129_v1 }
 0x1a6   : > { %v716_v5 = vmax.f32 %v522_v22, 0.0  ;;  %5424 = vmatmul.msk.f32.gmra.mxu0 %vm365_vm0, %v5727_v45  ;;  %5440 = vmatmul.msk.f32.gmra.mxu1 %vm365_vm0, %v5729_v46  ;;  %837 = vst.msk [vmem:[#allocation2 + $0x98] sm:$0xff] %vm817_vm4, %v6189_v27  ;;  %v2444_v57 = vadd.f32 %v2249_v10, %v1961_v4  ;;  %v10181_v58 = vrot.slane %v6157_v17, 2  ;;  %v3954_v62 = vrot.slane %v3744_v37, 1 }
 0x1a7   : > { %v4700_v19 = vadd.f32 %v5912_v11, %v4630_v59  ;;  %839 = vst.msk [vmem:[#allocation2 + $0xa8] sm:$0xff] %vm817_vm4, %v6189_v27  ;;  %v4226_v49 = vmul.f32 %v5905_v21, %v6202_v56  ;;  %v1416_v51 = vmul.f32 %v5809_v52, %v6047_v47  ;;  %v1556_v4 = vmul.f32 %v5786_v6, %v6047_v47 }
 0x1a8   : > { %v3343_v39 = vsel %vm2201_vm3, %v10181_v58, %v3342_v31  ;;  %v6256_v54 = vmin.f32 %v716_v5, 6.0  ;;  %843 = vst.msk [vmem:[#allocation2 + $0xc8] sm:$0xff] %vm817_vm4, %v6189_v27  ;;  %v2574_v10 = vadd.f32 %v2510_v0, %v2444_v57  ;;  %v6266_v9 = vmul.f32 %v5786_v6, %v6056_v60  ;;  %v5527_v31 = vld [vmem:[%s9927_s2] sm:$0x3] }
 0x1a9   : > { %v4764_v59 = vmax.f32 %v4700_v19, 0.0  ;;  %845 = vst.msk [vmem:[#allocation2 + $0xd8] sm:$0xff] %vm817_vm4, %v6189_v27  ;;  %v4436_v17 = vrot.slane %v4226_v49, 2  ;;  %v2039_v3 = vmul.f32 %v5794_v36, %v6047_v47  ;;  %v6272_v25 = vmul.f32 %v5794_v36, %v6056_v60 }
 0x1aa   : > { %v1033_v0 = vrot.slane %v6256_v54, 7  ;;  %849 = vst.msk [vmem:[#allocation2 + $0xf8] sm:$0xff] %vm817_vm4, %v6189_v27  ;;  %v3056_v63 = vadd.f32 %v2861_v23, %v2574_v10  ;;  %v1769_v37 = vrot.slane %v1556_v4, 1  ;;  %v6280_v5 = vperm.slane %v5527_v31, 1 }
 0x1ab   : > { %v4828_v24 = vmin.f32 %v4764_v59, 6.0  ;;  %v524_v22 = vpop.f32.mrf.mxu0  ;;  %v572_v29 = vpop.f32.mrf.mxu1  ;;  %851 = vst.msk [vmem:[#allocation2 + $0x108] sm:$0xff] %vm817_vm4, %v6189_v27  ;;  %v10182_v47 = vrot.slane %v6173_v2, 1  ;;  %v9959_v57 = vrot.slane %v6266_v9, 1  ;;  %v2252_v58 = vrot.slane %v2039_v3, 2 }
 0x1ac   : > { %1228 = vst [vmem:[#allocation2 + $0x180] sm:$0xfe] %v1033_v0  ;;  %v525_v23 = vadd.f32 %v524_v22, %v5744_v50  ;;  %v573_v49 = vadd.f32 %v572_v29, %v5744_v50  ;;  %v3538_v54 = vadd.f32 %v3343_v39, %v3056_v63  ;;  %v9958_v59 = vrot.slane %v6272_v25, 2 }
 0x1ad   : > { %v3955_v19 = vsel %vm1718_vm2, %v10182_v47, %v3954_v62  ;;  %5040 = vmatmul.f32.gmra.mxu2 %v4828_v24  ;;  %855 = vst.msk [vmem:[#allocation2 + $0x128] sm:$0xff] %vm817_vm4, %v6189_v27  ;;  %v10183_v10 = vrot.slane %v6181_v8, 2  ;;  %v1771_v62 = vsel %vm1718_vm2, %v1769_v37, %v9959_v57  ;;  %v2512_v4 = vmul.f32 %v5841_v40, %v6144_v13 }
 0x1ae   : > { %v2652_v3 = vmul.f32 %v5838_v38, %v6144_v13  ;;  %v718_v39 = vmax.f32 %v525_v23, 0.0  ;;  %v750_v24 = vmax.f32 %v573_v49, 0.0  ;;  %5441 = vmatmul.msk.f32.gmra.mxu1 %vm365_vm0, %v5735_v48  ;;  %857 = vst.msk [vmem:[#allocation2 + $0x138] sm:$0xff] %vm817_vm4, %v6189_v27  ;;  %v3668_v8 = vadd.f32 %v3604_v15, %v3538_v54 }
 0x1af   : > { %v4437_v2 = vsel %vm2201_vm3, %v10183_v10, %v4436_v17  ;;  %v6307_v17 = vld [vmem:[#allocation2 + $0x150] sm:$0xff]  ;;  %v1963_v63 = vadd.f32 %v1771_v62, %v1416_v51  ;;  %861 = vst.msk [vmem:[#allocation2 + $0x158] sm:$0xff] %vm817_vm4, %v6189_v27  ;;  %v2254_v37 = vsel %vm2201_vm3, %v2252_v58, %v9958_v59  ;;  %v6316_v22 = vmul.f32 %v5838_v38, %v6129_v1 }
 0x1b0   : > { %v2864_v29 = vrot.slane %v2652_v3, 1  ;;  %v3134_v31 = vmul.f32 %v5850_v61, %v6144_v13  ;;  %v782_v47 = vmin.f32 %v718_v39, 6.0  ;;  %v6320_v15 = vmin.f32 %v750_v24, 6.0  ;;  %863 = vst.msk [vmem:[#allocation2 + $0x168] sm:$0xff] %vm817_vm4, %v6189_v27 }
 0x1b1   : > { %v4150_v51 = vadd.f32 %v3955_v19, %v3668_v8  ;;  %v2446_v23 = vadd.f32 %v2254_v37, %v1963_v63  ;;  %867 = vst.msk [vmem:[#allocation2 + $0x188] sm:$0xff] %vm817_vm4, %v6189_v27  ;;  %v9957_v58 = vrot.slane %v6316_v22, 1  ;;  %v6329_v49 = vmul.f32 %v5850_v61, %v6129_v1 }
 0x1b2   : > { %10184 = vst [vmem:[#allocation36_spill] sm:$0xff] %v6320_v15  ;;  %v3346_v54 = vrot.slane %v3134_v31, 2  ;;  %v3606_v10 = vmul.f32 %v5866_v55, %v6307_v17  ;;  %v1035_v62 = vrot.slane %v782_v47, 7  ;;  %v9960_v3 = vrot.slane %v6320_v15, 7 }
 0x1b3   : > { %869 = vst.msk [vmem:[#allocation2 + $0x198] sm:$0xff] %vm817_vm4, %v6189_v27  ;;  %v4632_v19 = vadd.f32 %v4437_v2, %v4150_v51  ;;  %v2576_v39 = vadd.f32 %v2512_v4, %v2446_v23  ;;  %v527_v24 = vpop.f32.mrf.mxu0  ;;  %v592_v8 = vpop.f32.mrf.mxu1  ;;  %v2866_v63 = vsel %vm1718_vm2, %v2864_v29, %v9957_v58  ;;  %v9962_v37 = vrot.slane %v6329_v49, 2 }
 0x1b4   : > { %873 = vst.msk [vmem:[#allocation2 + $0x1b8] sm:$0xff] %vm817_vm4, %v6189_v27  ;;  %v3746_v31 = vmul.f32 %v5869_v7, %v6307_v17  ;;  %v6346_v47 = vmul.f32 %v5869_v7, %v6229_v53  ;;  %v6349_v2 = vsel %vm990_vm1, %v1033_v0, %v1035_v62  ;;  %v528_v4 = vadd.f32 %v527_v24, %v5744_v50 }
 0x1b5   : > { %1232 = vst [vmem:[#allocation2 + $0x1a0] sm:$0x1] %v1035_v62  ;;  %v593_v51 = vadd.f32 %v592_v8, %v6280_v5  ;;  %v4702_v23 = vadd.f32 %v5912_v11, %v4632_v19  ;;  %v3058_v29 = vadd.f32 %v2866_v63, %v2576_v39  ;;  %v3348_v58 = vsel %vm2201_vm3, %v3346_v54, %v9962_v37 }
 0x1b6   : > { %1230 = vst [vmem:[#allocation2 + $0x190] sm:$0xff] %v6349_v2  ;;  %v3958_v59 = vrot.slane %v3746_v31, 1  ;;  %v9961_v57 = vrot.slane %v6346_v47, 1  ;;  %v720_v0 = vmax.f32 %v528_v4, 0.0  ;;  %5442 = vmatmul.msk.f32.gmra.mxu1 %vm365_vm0, %v5631_v12  ;;  %v4228_v19 = vmul.f32 %v5905_v21, %v6307_v17 }
 0x1b7   : > { %1280 = vst [vmem:[#allocation2 + $0x320] sm:$0x1] %v9960_v3  ;;  %v689_v62 = vmax.f32 %v593_v51, 0.0  ;;  %v4766_v24 = vmax.f32 %v4702_v23, 0.0  ;;  %v3540_v39 = vadd.f32 %v3348_v58, %v3058_v29  ;;  %v6372_v8 = vmul.f32 %v5905_v21, %v6229_v53 }
 0x1b8   : > { %875 = vst.msk [vmem:[#allocation2 + $0x1c8] sm:$0xff] %vm817_vm4, %v6189_v27  ;;  %v3960_v54 = vsel %vm1718_vm2, %v3958_v59, %v9961_v57  ;;  %v1418_v63 = vmul.f32 %v5809_v52, %v6056_v60  ;;  %v6376_v31 = vmin.f32 %v720_v0, 6.0  ;;  %v4440_v58 = vrot.slane %v4228_v19, 2  ;;  %v6402_v57 = vld [vmem:[#allocation2 + $0x170] sm:$0x3] }
 0x1b9   : > { %v6378_v4 = vmin.f32 %v689_v62, 6.0  ;;  %879 = vst.msk [vmem:[#allocation2 + $0x1e8] sm:$0xff] %vm817_vm4, %v6189_v27  ;;  %v4830_v51 = vmin.f32 %v4766_v24, 6.0  ;;  %v3670_v59 = vadd.f32 %v3606_v10, %v3540_v39  ;;  %v4441_v23 = vrot.slane %v6372_v8, 2 }
 0x1ba   : > { %881 = vst.msk [vmem:[#allocation2 + $0x1f8] sm:$0xff] %vm817_vm4, %v6189_v27  ;;  %v1560_v29 = vmul.f32 %v5786_v6, %v6085_v26  ;;  %v2043_v60 = vmul.f32 %v5794_v36, %v6085_v26  ;;  %v1039_v0 = vrot.slane %v6376_v31, 7  ;;  %v2514_v24 = vmul.f32 %v5841_v40, %v6129_v1 }
 0x1bb   : > { %v992_v62 = vrot.slane %v6378_v4, 7  ;;  %885 = vst.msk [vmem:[#allocation2 + $0x218] sm:$0xff] %vm817_vm4, %v6189_v27  ;;  %5043 = vmatmul.f32.gmra.mxu2 %v4830_v51  ;;  %v2656_v10 = vmul.f32 %v5838_v38, %v6202_v56  ;;  %v530_v19 = vpop.f32.mrf.mxu0  ;;  %v595_v39 = vpop.f32.mrf.mxu1  ;;  %v4152_v26 = vadd.f32 %v3960_v54, %v3670_v59  ;;  %v4442_v8 = vsel %vm2201_vm3, %v4440_v58, %v4441_v23 }
 0x1bc   : > { %887 = vst.msk [vmem:[#allocation2 + $0x228] sm:$0xff] %vm817_vm4, %v6189_v27  ;;  %v1775_v31 = vrot.slane %v1560_v29, 1  ;;  %v2258_v4 = vrot.slane %v2043_v60, 2  ;;  %v531_v3 = vadd.f32 %v530_v19, %v5744_v50  ;;  %v596_v51 = vadd.f32 %v595_v39, %v6280_v5 }
 0x1bd   : > { %1234 = vst [vmem:[#allocation2 + $0x1b0] sm:$0xfe] %v1039_v0  ;;  %v2870_v37 = vrot.slane %v2656_v10, 1  ;;  %v3138_v48 = vmul.f32 %v5850_v61, %v6202_v56  ;;  %v4634_v12 = vadd.f32 %v4442_v8, %v4152_v26  ;;  %v10185_v54 = vrot.slane %v6266_v9, 1 }
 0x1be   : > { %1186 = vst.msk [vmem:[#allocation2 + $0x38] sm:$0xfe] %vm1185_vm5, %v992_v62  ;;  %v10186_v59 = vrot.slane %v6272_v25, 2  ;;  %v6415_v60 = vmul.f32 %v5866_v55, %v6229_v53  ;;  %v722_v10 = vmax.f32 %v531_v3, 0.0  ;;  %v691_v19 = vmax.f32 %v596_v51, 0.0  ;;  %5443 = vmatmul.msk.f32.gmra.mxu1 %vm365_vm0, %v5637_v14 }
 0x1bf   : > { %v1776_v58 = vsel %vm1718_vm2, %v10185_v54, %v1775_v31  ;;  %891 = vst.msk [vmem:[#allocation2 + $0x248] sm:$0xff] %vm817_vm4, %v6189_v27  ;;  %v10187_v9 = vrot.slane %v6316_v22, 1  ;;  %v4704_v25 = vadd.f32 %v5912_v11, %v4634_v12  ;;  %v3352_v8 = vrot.slane %v3138_v48, 2 }
 0x1c0   : > { %v2259_v29 = vsel %vm2201_vm3, %v10186_v59, %v2258_v4  ;;  %v1965_v39 = vadd.f32 %v1776_v58, %v1418_v63  ;;  %893 = vst.msk [vmem:[#allocation2 + $0x258] sm:$0xff] %vm817_vm4, %v6189_v27  ;;  %v3750_v31 = vmul.f32 %v5869_v7, %v6402_v57  ;;  %v4232_v3 = vmul.f32 %v5905_v21, %v6402_v57 }
 0x1c1   : > { %v2871_v26 = vsel %vm1718_vm2, %v10187_v9, %v2870_v37  ;;  %897 = vst.msk [vmem:[#allocation2 + $0x278] sm:$0xff] %vm817_vm4, %v6189_v27  ;;  %v786_v63 = vmin.f32 %v722_v10, 6.0  ;;  %v6433_v4 = vmin.f32 %v691_v19, 6.0  ;;  %v1420_v37 = vmul.f32 %v5809_v52, %v6144_v13 }
 0x1c2   : > { %v2448_v22 = vadd.f32 %v2259_v29, %v1965_v39  ;;  %899 = vst.msk [vmem:[#allocation2 + $0x288] sm:$0xff] %vm817_vm4, %v6189_v27  ;;  %v4768_v12 = vmax.f32 %v4704_v25, 0.0  ;;  %v10188_v48 = vrot.slane %v6329_v49, 2  ;;  %v3964_v54 = vrot.slane %v3750_v31, 1 }
 0x1c3   : > { %v4446_v21 = vrot.slane %v4232_v3, 2  ;;  %903 = vst.msk [vmem:[#allocation2 + $0x2a8] sm:$0xff] %vm817_vm4, %v6189_v27  ;;  %v1041_v58 = vrot.slane %v786_v63, 7  ;;  %v9966_v59 = vrot.slane %v6433_v4, 7  ;;  %v1562_v10 = vmul.f32 %v5786_v6, %v6144_v13  ;;  %v533_v19 = vpop.f32.mrf.mxu0  ;;  %v598_v39 = vpop.f32.mrf.mxu1 }
 0x1c4   : > { %v3353_v51 = vsel %vm2201_vm3, %v10188_v48, %v3352_v8  ;;  %v2578_v29 = vadd.f32 %v2514_v24, %v2448_v22  ;;  %905 = vst.msk [vmem:[#allocation2 + $0x2b8] sm:$0xff] %vm817_vm4, %v6189_v27  ;;  %v4832_v49 = vmin.f32 %v4768_v12, 6.0  ;;  %v10189_v9 = vrot.slane %v6346_v47, 1 }
 0x1c5   : > { %v4447_v8 = vsel %vm2201_vm3, %v4441_v23, %v4446_v21  ;;  %v6455_v24 = vmul.f32 %v5786_v6, %v6129_v1  ;;  %909 = vst.msk [vmem:[#allocation2 + $0x2d8] sm:$0xff] %vm817_vm4, %v6189_v27  ;;  %v6460_v31 = vsel %vm990_vm1, %v1039_v0, %v1041_v58  ;;  %v996_v3 = vsel %vm990_vm1, %v992_v62, %v9966_v59 }
 0x1c6   : > { %v3965_v25 = vsel %vm1718_vm2, %v10189_v9, %v3964_v54  ;;  %v534_v47 = vadd.f32 %v533_v19, %v5744_v50  ;;  %v599_v63 = vadd.f32 %v598_v39, %v6280_v5  ;;  %911 = vst.msk [vmem:[#allocation2 + $0x2e8] sm:$0xff] %vm817_vm4, %v6189_v27  ;;  %5046 = vmatmul.f32.gmra.mxu2 %v4832_v49  ;;  %v1779_v22 = vrot.slane %v1562_v10, 1 }
 0x1c7   : > { %v3060_v23 = vadd.f32 %v2871_v26, %v2578_v29  ;;  %v9965_v12 = vrot.slane %v6455_v24, 1  ;;  %v2045_v0 = vmul.f32 %v5794_v36, %v6144_v13  ;;  %915 = vst.msk [vmem:[#allocation2 + $0x308] sm:$0xff] %vm817_vm4, %v6189_v27  ;;  %5444 = vmatmul.msk.f32.gmra.mxu1 %vm365_vm0, %v5643_v16  ;;  %v6478_v54 = vmul.f32 %v5794_v36, %v6129_v1 }
 0x1c8   : > { %v724_v48 = vmax.f32 %v534_v47, 0.0  ;;  %v693_v62 = vmax.f32 %v599_v63, 0.0  ;;  %v2516_v26 = vmul.f32 %v5841_v40, %v6307_v17  ;;  %917 = vst.msk [vmem:[#allocation2 + $0x318] sm:$0xff] %vm817_vm4, %v6189_v27  ;;  %v2658_v10 = vmul.f32 %v5838_v38, %v6307_v17  ;;  %v6499_v47 = vld [vmem:[#allocation2 + $0x180] sm:$0xff] }
 0x1c9   : > { %v3542_v21 = vadd.f32 %v3353_v51, %v3060_v23  ;;  %v1781_v13 = vsel %vm1718_vm2, %v1779_v22, %v9965_v12  ;;  %v2262_v29 = vrot.slane %v2045_v0, 2  ;;  %921 = vst.msk [vmem:[#allocation2 + $0x338] sm:$0xff] %vm817_vm4, %v6189_v27  ;;  %v9967_v9 = vrot.slane %v6478_v54, 2 }
 0x1ca   : > { %v6491_v49 = vmin.f32 %v724_v48, 6.0  ;;  %v6493_v19 = vmin.f32 %v693_v62, 6.0  ;;  %v1967_v39 = vadd.f32 %v1781_v13, %v1420_v37  ;;  %923 = vst.msk [vmem:[#allocation2 + $0x348] sm:$0xff] %vm817_vm4, %v6189_v27  ;;  %v6503_v63 = vmul.f32 %v5838_v38, %v6229_v53 }
 0x1cb   : > { %v3672_v51 = vadd.f32 %v6415_v60, %v3542_v21  ;;  %v2874_v23 = vrot.slane %v2658_v10, 1  ;;  %v3140_v22 = vmul.f32 %v5850_v61, %v6307_v17  ;;  %1236 = vst [vmem:[#allocation2 + $0x1c0] sm:$0xff] %v6460_v31  ;;  %v2264_v60 = vsel %vm2201_vm3, %v2262_v29, %v9967_v9  ;;  %v536_v21 = vpop.f32.mrf.mxu0  ;;  %v601_v13 = vpop.f32.mrf.mxu1 }
 0x1cc   : > { %v6515_v48 = vmul.f32 %v5850_v61, %v6229_v53  ;;  %1238 = vst [vmem:[#allocation2 + $0x1d0] sm:$0x1] %v1041_v58  ;;  %v2450_v10 = vadd.f32 %v2264_v60, %v1967_v39  ;;  %v9970_v12 = vrot.slane %v6503_v63, 1  ;;  %v537_v0 = vadd.f32 %v536_v21, %v5744_v50 }
 0x1cd   : > { %v4154_v62 = vadd.f32 %v3965_v25, %v3672_v51  ;;  %v3356_v59 = vrot.slane %v3140_v22, 2  ;;  %829 = vst.msk [vmem:[#allocation2 + $0x58] sm:$0x3] %vm822_vm6, %v6189_v27  ;;  %v602_v37 = vadd.f32 %v601_v13, %v6280_v5  ;;  %v3610_v9 = vmul.f32 %v5866_v55, %v6499_v47 }
 0x1ce   : > { %v9968_v29 = vrot.slane %v6515_v48, 2  ;;  %1188 = vst.msk [vmem:[#allocation2 + $0x48] sm:$0xff] %vm817_vm4, %v996_v3  ;;  %v2580_v25 = vadd.f32 %v2516_v26, %v2450_v10  ;;  %v2876_v39 = vsel %vm1718_vm2, %v2874_v23, %v9970_v12  ;;  %v3752_v51 = vmul.f32 %v5869_v7, %v6499_v47  ;;  %v6549_v23 = vld [vmem:[%s9928_s3 + $0x10] ss:$0 sm:$0xff] }
 0x1cf   : > { %v4636_v58 = vadd.f32 %v4447_v8, %v4154_v62  ;;  %v10190_v22 = vrot.slane %v6433_v4, 7  ;;  %v726_v60 = vmax.f32 %v537_v0, 0.0  ;;  %v695_v21 = vmax.f32 %v602_v37, 0.0  ;;  %5445 = vmatmul.msk.f32.gmra.mxu1 %vm365_vm0, %v5649_v18  ;;  %823 = vst.msk [vmem:[#allocation2 + $0x28] sm:$0x3] %vm822_vm6, %v6189_v27  ;;  %v5529_v12 = vld [vmem:[#allocation2 + $0x30] sm:$0xff] }
 0x1d0   : > { %v3358_v13 = vsel %vm2201_vm3, %v3356_v59, %v9968_v29  ;;  %v6539_v8 = vmul.f32 %v5869_v7, %v6349_v2  ;;  %v3062_v3 = vadd.f32 %v2876_v39, %v2580_v25  ;;  %v3968_v26 = vrot.slane %v3752_v51, 1  ;;  %835 = vst.msk [vmem:[#allocation2 + $0x88] sm:$0x3] %vm822_vm6, %v6189_v27 }
 0x1d1   : > { %1191 = vst.msk [vmem:[#allocation2 + $0x58] sm:$0x1] %vm1190_vm7, %v10190_v22  ;;  %v4706_v4 = vadd.f32 %v5912_v11, %v4636_v58  ;;  %v4234_v59 = vmul.f32 %v6549_v23, %v6499_v47  ;;  %v6555_v37 = vmin.f32 %v726_v60, 6.0  ;;  %v6557_v0 = vmin.f32 %v695_v21, 6.0 }
 0x1d2   : > { %v9969_v62 = vrot.slane %v6539_v8, 1  ;;  %v6562_v10 = vmul.f32 %v6549_v23, %v6349_v2  ;;  %841 = vst.msk [vmem:[#allocation2 + $0xb8] sm:$0x3] %vm822_vm6, %v6189_v27  ;;  %v3544_v25 = vadd.f32 %v3358_v13, %v3062_v3  ;;  %v6568_v51 = vmul.f32 %v6189_v27, %v5809_v52 }
 0x1d3   : > { %v4770_v58 = vmax.f32 %v4706_v4, 0.0  ;;  %v4450_v39 = vrot.slane %v4234_v59, 2  ;;  %847 = vst.msk [vmem:[#allocation2 + $0xe8] sm:$0x3] %vm822_vm6, %v6189_v27  ;;  %v9972_v22 = vrot.slane %v6555_v37, 7  ;;  %v9976_v60 = vrot.slane %v6557_v0, 7  ;;  %v539_v35 = vpop.f32.mrf.mxu0  ;;  %v604_v46 = vpop.f32.mrf.mxu1 }
 0x1d4   : > { %v3970_v21 = vsel %vm1718_vm2, %v3968_v26, %v9969_v62  ;;  %v9975_v29 = vrot.slane %v6562_v10, 2  ;;  %853 = vst.msk [vmem:[#allocation2 + $0x118] sm:$0x3] %vm822_vm6, %v6189_v27  ;;  %v3674_v4 = vadd.f32 %v3610_v9, %v3544_v25  ;;  %v6582_v3 = vmul.f32 %v6189_v27, %v5786_v6 }
 0x1d5   : > { %v4834_v13 = vmin.f32 %v4770_v58, 6.0  ;;  %v6586_v59 = vmul.f32 %v6189_v27, %v5794_v36  ;;  %859 = vst.msk [vmem:[#allocation2 + $0x148] sm:$0x3] %vm822_vm6, %v6189_v27  ;;  %v10191_v26 = vrot.slane %v6491_v49, 7  ;;  %v10192_v9 = vrot.slane %v6493_v19, 7 }
 0x1d6   : > { %v4452_v25 = vsel %vm2201_vm3, %v4450_v39, %v9975_v29  ;;  %v2492_v18 = vmul.f32 %v5529_v12, %v5841_v40  ;;  %865 = vst.msk [vmem:[#allocation2 + $0x178] sm:$0x3] %vm822_vm6, %v6189_v27  ;;  %v2622_v14 = vmul.f32 %v5529_v12, %v5838_v38  ;;  %v3104_v29 = vmul.f32 %v5529_v12, %v5850_v61 }
 0x1d7   : > { %v6595_v62 = vsel %vm990_vm1, %v10191_v26, %v9972_v22  ;;  %v6602_v58 = vsel %vm990_vm1, %v10192_v9, %v9976_v60  ;;  %5049 = vmatmul.f32.gmra.mxu2 %v4834_v13  ;;  %v4156_v26 = vadd.f32 %v3970_v21, %v3674_v4  ;;  %v9981_v22 = vrot.slane %v6582_v3, 1  ;;  %871 = vst.msk [vmem:[#allocation2 + $0x1a8] sm:$0x3] %vm822_vm6, %v6189_v27  ;;  %v6615_v9 = vld [vmem:[#allocation2 + $0x40] sm:$0xff] }
 0x1d8   : > { %v6619_v39 = vmul.f32 %v6615_v9, %v5838_v38  ;;  %v6624_v21 = vmul.f32 %v6615_v9, %v5850_v61  ;;  %v5531_v13 = vld [vmem:[#allocation2 + $0x60] sm:$0xff]  ;;  %877 = vst.msk [vmem:[#allocation2 + $0x1d8] sm:$0x3] %vm822_vm6, %v6189_v27  ;;  %v2814_v16 = vrot.slane %v2622_v14, 1  ;;  %5446 = vmatmul.msk.f32.gmra.mxu1 %vm365_vm0, %v5655_v20  ;;  %v3296_v44 = vrot.slane %v3104_v29, 2 }
 0x1d9   : > { %v6627_v4 = vmul.f32 %v5531_v13, %v5866_v55  ;;  %v4638_v60 = vadd.f32 %v4452_v25, %v4156_v26  ;;  %883 = vst.msk [vmem:[#allocation2 + $0x208] sm:$0x3] %vm822_vm6, %v6189_v27  ;;  %v1943_v12 = vadd.f32 %v9981_v22, %v6568_v51  ;;  %v3716_v25 = vmul.f32 %v5531_v13, %v5869_v7  ;;  %v6644_v26 = vld [vmem:[#allocation2 + $0x70] sm:$0xff] }
 0x1da   : > { %889 = vst.msk [vmem:[#allocation2 + $0x238] sm:$0x3] %vm822_vm6, %v6189_v27  ;;  %v6648_v20 = vmul.f32 %v6644_v26, %v5869_v7  ;;  %v4198_v22 = vmul.f32 %v5531_v13, %v6549_v23  ;;  %v10193_v29 = vrot.slane %v6586_v59, 2  ;;  %v10195_v15 = vrot.slane %v6624_v21, 2 }
 0x1db   : > { %v4708_v14 = vadd.f32 %v5912_v11, %v4638_v60  ;;  %895 = vst.msk [vmem:[#allocation2 + $0x268] sm:$0x3] %vm822_vm6, %v6189_v27  ;;  %v10194_v60 = vrot.slane %v6619_v39, 1  ;;  %v6663_v43 = vmul.f32 %v6644_v26, %v6549_v23  ;;  %v3908_v41 = vrot.slane %v3716_v25, 1 }
 0x1dc   : > { %v2426_v42 = vadd.f32 %v10193_v29, %v1943_v12  ;;  %v3298_v45 = vsel %vm2201_vm3, %v3296_v44, %v10195_v15  ;;  %901 = vst.msk [vmem:[#allocation2 + $0x298] sm:$0x3] %vm822_vm6, %v6189_v27  ;;  %v9994_v34 = vrot.slane %v6648_v20, 1  ;;  %v4390_v12 = vrot.slane %v4198_v22, 2 }
 0x1dd   : > { %v2816_v33 = vsel %vm1718_vm2, %v2814_v16, %v10194_v60  ;;  %v4772_v13 = vmax.f32 %v4708_v14, 0.0  ;;  %907 = vst.msk [vmem:[#allocation2 + $0x2c8] sm:$0x3] %vm822_vm6, %v6189_v27  ;;  %v9993_v29 = vrot.slane %v6663_v43, 2  ;;  %v540_v44 = vadd.f32 %v539_v35, %v5744_v50 }
 0x1de   : > { %v2556_v16 = vadd.f32 %v2492_v18, %v2426_v42  ;;  %v605_v15 = vadd.f32 %v604_v46, %v6280_v5  ;;  %913 = vst.msk [vmem:[#allocation2 + $0x2f8] sm:$0x3] %vm822_vm6, %v6189_v27  ;;  %v3910_v14 = vsel %vm1718_vm2, %v3908_v41, %v9994_v34  ;;  %v1422_v22 = vmul.f32 %v5809_v52, %v6129_v1 }
 0x1df   : > { %v4836_v60 = vmin.f32 %v4772_v13, 6.0  ;;  %v1566_v18 = vmul.f32 %v5786_v6, %v6202_v56  ;;  %919 = vst.msk [vmem:[#allocation2 + $0x328] sm:$0x3] %vm822_vm6, %v6189_v27  ;;  %v4392_v42 = vsel %vm2201_vm3, %v4390_v12, %v9993_v29  ;;  %v728_v46 = vmax.f32 %v540_v44, 0.0 }
 0x1e0   : > { %v3038_v35 = vadd.f32 %v2816_v33, %v2556_v16  ;;  %v697_v25 = vmax.f32 %v605_v15, 0.0  ;;  %925 = vst.msk [vmem:[#allocation2 + $0x358] sm:$0x3] %vm822_vm6, %v6189_v27  ;;  %v2049_v1 = vmul.f32 %v5794_v36, %v6202_v56  ;;  %v2518_v13 = vmul.f32 %v5841_v40, %v6229_v53  ;;  %v6701_v27 = vld [vmem:[#allocation2 + $0x1a0] sm:$0x3]  ;;  %v10197_v56 = vld [vmem:[#allocation13_spill] sm:$0xff] }
 0x1e1   : > { %5052 = vmatmul.f32.gmra.mxu2 %v4836_v60  ;;  %v1785_v41 = vrot.slane %v1566_v18, 1  ;;  %v2662_v33 = vmul.f32 %v5838_v38, %v6402_v57  ;;  %v10196_v16 = vrot.slane %v6491_v49, 7  ;;  %v6697_v44 = vmin.f32 %v728_v46, 6.0  ;;  %5447 = vmatmul.msk.f32.gmra.mxu1 %vm365_vm0, %v10197_v56  ;;  %1242 = vst [vmem:[#allocation2 + $0x1f0] sm:$0xff] %v6595_v62 }
 0x1e2   : > { %v3520_v12 = vadd.f32 %v3298_v45, %v3038_v35  ;;  %v6699_v15 = vmin.f32 %v697_v25, 6.0  ;;  %v3144_v60 = vmul.f32 %v5850_v61, %v6402_v57  ;;  %v10198_v18 = vrot.slane %v6493_v19, 7  ;;  %1195 = vst.msk [vmem:[#allocation2 + $0x78] sm:$0xff] %vm817_vm4, %v6602_v58 }
 0x1e3   : > { %1240 = vst [vmem:[#allocation2 + $0x1e0] sm:$0xfe] %v10196_v16  ;;  %v10199_v49 = vrot.slane %v6455_v24, 1  ;;  %v2268_v35 = vrot.slane %v2049_v1, 2  ;;  %v2880_v46 = vrot.slane %v2662_v33, 1  ;;  %v3612_v25 = vmul.f32 %v5866_v55, %v6349_v2 }
 0x1e4   : > { %1193 = vst.msk [vmem:[#allocation2 + $0x68] sm:$0xfe] %vm1185_vm5, %v10198_v18  ;;  %v1286_v16 = vld [vmem:[#allocation2 + $0x20] sm:$0x3]  ;;  %v3650_v29 = vadd.f32 %v6627_v4, %v3520_v12  ;;  %v1051_v34 = vrot.slane %v6697_v44, 7  ;;  %v1004_v19 = vrot.slane %v6699_v15, 7  ;;  %v3756_v4 = vmul.f32 %v5869_v7, %v6701_v27 }
 0x1e5   : > { %v1786_v45 = vsel %vm1718_vm2, %v10199_v49, %v1785_v41  ;;  %v10200_v18 = vrot.slane %v6555_v37, 7  ;;  %v10201_v24 = vrot.slane %v6478_v54, 2  ;;  %v10202_v1 = vrot.slane %v6503_v63, 1 }
 0x1e6   : > { %v1969_v56 = vadd.f32 %v1786_v45, %v1422_v22  ;;  %v3362_v49 = vrot.slane %v3144_v60, 2  ;;  %v4132_v12 = vadd.f32 %v3910_v14, %v3650_v29  ;;  %v4238_v37 = vmul.f32 %v6549_v23, %v6701_v27  ;;  %1246 = vst [vmem:[#allocation2 + $0x210] sm:$0xfe] %v1051_v34 }
 0x1e7   : > { %1244 = vst [vmem:[#allocation2 + $0x200] sm:$0x1] %v10200_v18  ;;  %v2269_v41 = vsel %vm2201_vm3, %v10201_v24, %v2268_v35  ;;  %v2881_v33 = vsel %vm1718_vm2, %v10202_v1, %v2880_v46  ;;  %v1530_v54 = vmul.f32 %v5786_v6, %v1286_v16  ;;  %v10203_v45 = vrot.slane %v6557_v0, 7 }
 0x1e8   : > { %v2452_v22 = vadd.f32 %v2269_v41, %v1969_v56  ;;  %v10204_v63 = vrot.slane %v6515_v48, 2  ;;  %v3974_v35 = vrot.slane %v3756_v4, 1  ;;  %v2013_v46 = vmul.f32 %v5794_v36, %v1286_v16  ;;  %1199 = vst.msk [vmem:[#allocation2 + $0x98] sm:$0xfe] %vm1185_vm5, %v1004_v19  ;;  %v5533_v16 = vld [vmem:[#allocation2 + $0x50] sm:$0x3] }
 0x1e9   : > { %1197 = vst.msk [vmem:[#allocation2 + $0x88] sm:$0x1] %vm1190_vm7, %v10203_v45  ;;  %v2494_v58 = vmul.f32 %v6615_v9, %v5841_v40  ;;  %v4614_v29 = vadd.f32 %v4392_v42, %v4132_v12  ;;  %v4456_v56 = vrot.slane %v4238_v37, 2  ;;  %v1725_v18 = vrot.slane %v1530_v54, 1 }
 0x1ea   : > { %v3363_v60 = vsel %vm2201_vm3, %v10204_v63, %v3362_v49  ;;  %v2582_v14 = vadd.f32 %v2518_v13, %v2452_v22  ;;  %v10205_v48 = vrot.slane %v6539_v8, 1  ;;  %v2208_v24 = vrot.slane %v2013_v46, 2  ;;  %v10208_v8 = vld [vmem:[#allocation15_spill] sm:$0xff] }
 0x1eb   : > { %v2626_v41 = vmul.f32 %v5533_v16, %v5838_v38  ;;  %v3108_v9 = vmul.f32 %v5533_v16, %v5850_v61  ;;  %v4684_v42 = vadd.f32 %v5912_v11, %v4614_v29  ;;  %v10206_v13 = vrot.slane %v6562_v10, 2  ;;  %5448 = vmatmul.msk.f32.gmra.mxu1 %vm365_vm0, %v10208_v8 }
 0x1ec   : > { %v3975_v0 = vsel %vm1718_vm2, %v10205_v48, %v3974_v35  ;;  %v3064_v1 = vadd.f32 %v2881_v33, %v2582_v14  ;;  %v10207_v4 = vrot.slane %v6582_v3, 1  ;;  %v10209_v37 = vrot.slane %v6586_v59, 2  ;;  %v542_v33 = vpop.f32.mrf.mxu0  ;;  %v5534_v3 = vld [vmem:[#allocation2 + $0x80] sm:$0x3]  ;;  %v607_v14 = vpop.f32.mrf.mxu1  ;;  %v4898_v59 = vld [vmem:[%s9930_s5 + $0xb0] sm:$0xff] }
 0x1ed   : > { %v4457_v49 = vsel %vm2201_vm3, %v10206_v13, %v4456_v56  ;;  %v2820_v45 = vrot.slane %v2626_v41, 1  ;;  %v3302_v63 = vrot.slane %v3108_v9, 2  ;;  %v4748_v35 = vmax.f32 %v4684_v42, 0.0 }
 0x1ee   : > { %v1726_v12 = vsel %vm1718_vm2, %v10207_v4, %v1725_v18  ;;  %v2209_v54 = vsel %vm2201_vm3, %v10209_v37, %v2208_v24  ;;  %v3546_v10 = vadd.f32 %v3363_v60, %v3064_v1  ;;  %v3588_v46 = vmul.f32 %v6644_v26, %v5866_v55  ;;  %v4897_v1 = vld [vmem:[%s9930_s5 + $0xa8] sm:$0xff] }
 0x1ef   : > { %v1945_v22 = vadd.f32 %v1726_v12, %v6568_v51  ;;  %v3720_v29 = vmul.f32 %v5534_v3, %v5869_v7  ;;  %v4899_v51 = vld [vmem:[%s9930_s5 + $0xb8] sm:$0xff]  ;;  %v10210_v18 = vrot.slane %v6619_v39, 1  ;;  %v10211_v48 = vrot.slane %v6624_v21, 2 }
 0x1f0   : > { %v4202_v24 = vmul.f32 %v5534_v3, %v6549_v23  ;;  %5121 = vmatpush.msra.mxu3 %v4899_v51  ;;  %v4812_v16 = vmin.f32 %v4748_v35, 6.0  ;;  %v3676_v41 = vadd.f32 %v3612_v25, %v3546_v10  ;;  %v543_v42 = vadd.f32 %v542_v33, %v5744_v50 }
 0x1f1   : > { %v2428_v56 = vadd.f32 %v2209_v54, %v1945_v22  ;;  %v2821_v60 = vsel %vm1718_vm2, %v10210_v18, %v2820_v45  ;;  %v3303_v26 = vsel %vm2201_vm3, %v10211_v48, %v3302_v63  ;;  %v3914_v9 = vrot.slane %v3720_v29, 1 }
 0x1f2   : > { %v4396_v39 = vrot.slane %v4202_v24, 2  ;;  %v608_v4 = vadd.f32 %v607_v14, %v6280_v5  ;;  %v1424_v21 = vmul.f32 %v5809_v52, %v6307_v17  ;;  %5122 = vmatpush.msra.mxu3 %v4898_v59  ;;  %5016 = vmatmul.f32.vlgmr.msrb.gmra.mxu0 %v4812_v16  ;;  %v4158_v12 = vadd.f32 %v3975_v0, %v3676_v41  ;;  %v10214_v14 = vld [vmem:[#allocation17_spill] sm:$0xff] }
 0x1f3   : > { %v2558_v13 = vadd.f32 %v2494_v58, %v2428_v56  ;;  %v10212_v22 = vrot.slane %v6648_v20, 1  ;;  %v730_v37 = vmax.f32 %v543_v42, 0.0  ;;  %v1568_v54 = vmul.f32 %v5786_v6, %v6307_v17  ;;  %v4896_v58 = vld [vmem:[%s9930_s5 + $0xa0] sm:$0xff]  ;;  %5449 = vmatmul.msk.f32.gmra.mxu1 %vm365_vm0, %v10214_v14  ;;  %v6825_v42 = vld [vmem:[#allocation2 + $0x1b0] sm:$0xff] }
 0x1f4   : > { %v10213_v63 = vrot.slane %v6663_v43, 2  ;;  %v699_v35 = vmax.f32 %v608_v4, 0.0  ;;  %v6802_v0 = vmul.f32 %v5786_v6, %v6229_v53  ;;  %5123 = vmatpush.msra.mxu3 %v4897_v1  ;;  %v4640_v20 = vadd.f32 %v4457_v49, %v4158_v12 }
 0x1f5   : > { %v3915_v25 = vsel %vm1718_vm2, %v10212_v22, %v3914_v9  ;;  %v3040_v45 = vadd.f32 %v2821_v60, %v2558_v13  ;;  %v794_v10 = vmin.f32 %v730_v37, 6.0  ;;  %v1789_v3 = vrot.slane %v1568_v54, 1  ;;  %v545_v54 = vpop.f32.mrf.mxu0 }
 0x1f6   : > { %v4397_v33 = vsel %vm2201_vm3, %v10213_v63, %v4396_v39  ;;  %v2051_v29 = vmul.f32 %v5794_v36, %v6307_v17  ;;  %v763_v59 = vmin.f32 %v699_v35, 6.0  ;;  %v1790_v43 = vrot.slane %v6802_v0, 1  ;;  %5124 = vmatpush.msra.mxu3 %v4896_v58  ;;  %v610_v58 = vpop.f32.mrf.mxu1 }
 0x1f7   : > { %v3522_v51 = vadd.f32 %v3303_v26, %v3040_v45  ;;  %v6811_v56 = vmul.f32 %v5794_v36, %v6229_v53  ;;  %v4710_v18 = vadd.f32 %v5912_v11, %v4640_v20  ;;  %v1053_v49 = vrot.slane %v794_v10, 7  ;;  %v4895_v20 = vld [vmem:[%s9930_s5 + $0x98] sm:$0xff]  ;;  %v4894_v10 = vld [vmem:[%s9930_s5 + $0x90] sm:$0xff] }
 0x1f8   : > { %v2272_v60 = vrot.slane %v2051_v29, 2  ;;  %v2520_v48 = vmul.f32 %v5841_v40, %v6499_v47  ;;  %v1007_v24 = vrot.slane %v763_v59, 7  ;;  %v1791_v26 = vsel %vm1718_vm2, %v1789_v3, %v1790_v43  ;;  %5125 = vmatpush.msra.mxu3 %v4895_v20 }
 0x1f9   : > { %v3652_v17 = vadd.f32 %v3588_v46, %v3522_v51  ;;  %v2273_v16 = vrot.slane %v6811_v56, 2  ;;  %v4774_v41 = vmax.f32 %v4710_v18, 0.0  ;;  %v6823_v9 = vsel %vm990_vm1, %v1051_v34, %v1053_v49  ;;  %1250 = vst [vmem:[#allocation2 + $0x230] sm:$0x1] %v1053_v49 }
 0x1fa   : > { %10215 = vst [vmem:[#allocation37_spill] sm:$0xff] %v6823_v9  ;;  %v1971_v1 = vadd.f32 %v1791_v26, %v1424_v21  ;;  %v2664_v46 = vmul.f32 %v5838_v38, %v6499_v47  ;;  %v1008_v39 = vsel %vm990_vm1, %v1004_v19, %v1007_v24  ;;  %v6838_v34 = vmul.f32 %v5838_v38, %v6349_v2 }
 0x1fb   : > { %v4134_v13 = vadd.f32 %v3915_v25, %v3652_v17  ;;  %1248 = vst [vmem:[#allocation2 + $0x220] sm:$0xff] %v6823_v9  ;;  %v2274_v44 = vsel %vm2201_vm3, %v2272_v60, %v2273_v16  ;;  %v4838_v4 = vmin.f32 %v4774_v41, 6.0  ;;  %v3146_v22 = vmul.f32 %v5850_v61, %v6499_v47  ;;  %5450 = vmatmul.msk.f32.gmra.mxu1 %vm365_vm0, %v5679_v28  ;;  %v4893_v17 = vld [vmem:[%s9930_s5 + $0x88] sm:$0xff] }
 0x1fc   : > { %1201 = vst.msk [vmem:[#allocation2 + $0xa8] sm:$0xff] %vm817_vm4, %v1008_v39  ;;  %v2454_v21 = vadd.f32 %v2274_v44, %v1971_v1  ;;  %v2884_v12 = vrot.slane %v2664_v46, 1  ;;  %v2885_v15 = vrot.slane %v6838_v34, 1  ;;  %v6847_v19 = vmul.f32 %v5850_v61, %v6349_v2  ;;  %5126 = vmatpush.msra.mxu3 %v4894_v10  ;;  %v5535_v46 = vld [vmem:[%s9929_s4] sm:$0x3] }
 0x1fd   : > { %v4616_v25 = vadd.f32 %v4397_v33, %v4134_v13  ;;  %1203 = vst.msk [vmem:[#allocation2 + $0xb8] sm:$0x1] %vm1190_vm7, %v1007_v24  ;;  %v3614_v37 = vmul.f32 %v5866_v55, %v6825_v42  ;;  %5055 = vmatmul.f32.gmra.mxu2 %v4838_v4  ;;  %v3366_v63 = vrot.slane %v3146_v22, 2  ;;  %v3758_v35 = vmul.f32 %v5869_v7, %v6825_v42 }
 0x1fe   : > { %v2584_v45 = vadd.f32 %v2520_v48, %v2454_v21  ;;  %v6855_v33 = vmul.f32 %v5869_v7, %v6460_v31  ;;  %v2886_v29 = vsel %vm1718_vm2, %v2884_v12, %v2885_v15  ;;  %v3367_v51 = vrot.slane %v6847_v19, 2  ;;  %v4892_v21 = vld [vmem:[%s9930_s5 + $0x80] sm:$0xff]  ;;  %5127 = vmatpush.msra.mxu3 %v4893_v17 }
 0x1ff   : > { %v4686_v3 = vadd.f32 %v5912_v11, %v4616_v25  ;;  %v4240_v59 = vmul.f32 %v6549_v23, %v6825_v42  ;;  %v3978_v49 = vrot.slane %v3758_v35, 1  ;;  %v6875_v48 = vmul.f32 %v6549_v23, %v6460_v31 }
 0x200   : > { %v3066_v18 = vadd.f32 %v2886_v29, %v2584_v45  ;;  %v3979_v60 = vrot.slane %v6855_v33, 1  ;;  %v3368_v26 = vsel %vm2201_vm3, %v3366_v63, %v3367_v51  ;;  %v546_v1 = vadd.f32 %v545_v54, %v5744_v50  ;;  %5128 = vmatpush.msra.mxu3 %v4892_v21 }
 0x201   : > { %v4750_v24 = vmax.f32 %v4686_v3, 0.0  ;;  %v4460_v41 = vrot.slane %v4240_v59, 2  ;;  %v6885_v13 = vperm.slane %v5535_v46, 1  ;;  %v4461_v44 = vrot.slane %v6875_v48, 2  ;;  %v6908_v59 = vld [vmem:[#allocation2 + $0x1d0] sm:$0x3] }
 0x202   : > { %v3548_v39 = vadd.f32 %v3368_v26, %v3066_v18  ;;  %v611_v4 = vadd.f32 %v610_v58, %v6280_v5  ;;  %v3980_v22 = vsel %vm1718_vm2, %v3978_v49, %v3979_v60  ;;  %v732_v25 = vmax.f32 %v546_v1, 0.0  ;;  %10216 = vst [vmem:[#allocation38_spill] sm:$0xff] %v6908_v59  ;;  %v548_v26 = vpop.f32.mrf.mxu0 }
 0x203   : > { %v4814_v12 = vmin.f32 %v4750_v24, 6.0  ;;  %v1572_v19 = vmul.f32 %v5786_v6, %v6402_v57  ;;  %v1426_v63 = vmul.f32 %v5809_v52, %v6229_v53  ;;  %v2055_v58 = vmul.f32 %v5794_v36, %v6402_v57  ;;  %5451 = vmatmul.msk.f32.gmra.mxu1 %vm365_vm0, %v5685_v30 }
 0x204   : > { %v3678_v54 = vadd.f32 %v3614_v37, %v3548_v39  ;;  %v701_v45 = vmax.f32 %v611_v4, 0.0  ;;  %v4462_v35 = vsel %vm2201_vm3, %v4460_v41, %v4461_v44  ;;  %v6904_v20 = vmin.f32 %v732_v25, 6.0  ;;  %v613_v41 = vpop.f32.mrf.mxu1 }
 0x205   : > { %5019 = vmatmul.f32.gmra.mxu0 %v4814_v12  ;;  %v1795_v10 = vrot.slane %v1572_v19, 1  ;;  %v2668_v3 = vmul.f32 %v5838_v38, %v6701_v27  ;;  %v2278_v53 = vrot.slane %v2055_v58, 2  ;;  %v3150_v57 = vmul.f32 %v5850_v61, %v6701_v27 }
 0x206   : > { %v4160_v37 = vadd.f32 %v3980_v22, %v3678_v54  ;;  %v765_v29 = vmin.f32 %v701_v45, 6.0  ;;  %v1057_v18 = vrot.slane %v6904_v20, 7  ;;  %v2522_v17 = vmul.f32 %v5841_v40, %v6349_v2 }
 0x207   : > { %v1796_v49 = vsel %vm1718_vm2, %v1790_v43, %v1795_v10  ;;  %v2890_v24 = vrot.slane %v2668_v3, 1  ;;  %v2279_v4 = vsel %vm2201_vm3, %v2273_v16, %v2278_v53  ;;  %v3372_v21 = vrot.slane %v3150_v57, 2 }
 0x208   : > { %v4642_v1 = vadd.f32 %v4462_v35, %v4160_v37  ;;  %v1010_v46 = vrot.slane %v765_v29, 7  ;;  %v1973_v39 = vadd.f32 %v1796_v49, %v1426_v63  ;;  %1252 = vst [vmem:[#allocation2 + $0x240] sm:$0xfe] %v1057_v18  ;;  %v3616_v0 = vmul.f32 %v5866_v55, %v6460_v31 }
 0x209   : > { %v3762_v43 = vmul.f32 %v5869_v7, %v6908_v59  ;;  %v4244_v12 = vmul.f32 %v6549_v23, %v6908_v59  ;;  %v549_v56 = vadd.f32 %v548_v26, %v5744_v50  ;;  %v614_v16 = vadd.f32 %v613_v41, %v6280_v5 }
 0x20a   : > { %v4712_v22 = vadd.f32 %v5912_v11, %v4642_v1  ;;  %1205 = vst.msk [vmem:[#allocation2 + $0xc8] sm:$0xfe] %vm1185_vm5, %v1010_v46  ;;  %v2456_v25 = vadd.f32 %v2279_v4, %v1973_v39  ;;  %v2891_v19 = vsel %vm1718_vm2, %v2885_v15, %v2890_v24  ;;  %v3373_v54 = vsel %vm2201_vm3, %v3367_v51, %v3372_v21 }
 0x20b   : > { %v3984_v45 = vrot.slane %v3762_v43, 1  ;;  %v4466_v63 = vrot.slane %v4244_v12, 2  ;;  %v734_v20 = vmax.f32 %v549_v56, 0.0  ;;  %v703_v10 = vmax.f32 %v614_v16, 0.0  ;;  %5452 = vmatmul.msk.f32.gmra.mxu1 %vm365_vm0, %v5691_v32  ;;  %v551_v32 = vpop.f32.mrf.mxu0 }
 0x20c   : > { %v4776_v58 = vmax.f32 %v4712_v22, 0.0  ;;  %v2586_v35 = vadd.f32 %v2522_v17, %v2456_v25  ;;  %v1428_v37 = vmul.f32 %v5809_v52, %v6499_v47  ;;  %v1574_v34 = vmul.f32 %v5786_v6, %v6499_v47  ;;  %v6969_v22 = vld [vmem:[#allocation2 + $0x1e0] sm:$0xff] }
 0x20d   : > { %v3985_v3 = vsel %vm1718_vm2, %v3979_v60, %v3984_v45  ;;  %v6946_v15 = vmul.f32 %v5786_v6, %v6349_v2  ;;  %v798_v53 = vmin.f32 %v734_v20, 6.0  ;;  %v767_v57 = vmin.f32 %v703_v10, 6.0  ;;  %10218 = vst [vmem:[#allocation40_spill] sm:$0xff] %v6969_v22 }
 0x20e   : > { %v4840_v51 = vmin.f32 %v4776_v58, 6.0  ;;  %v3068_v29 = vadd.f32 %v2891_v19, %v2586_v35  ;;  %v1799_v33 = vrot.slane %v1574_v34, 1  ;;  %v2057_v49 = vmul.f32 %v5794_v36, %v6499_v47  ;;  %v10219_v34 = vld [vmem:[#allocation25_spill] sm:$0xff] }
 0x20f   : > { %v10001_v60 = vrot.slane %v6946_v15, 1  ;;  %v6955_v17 = vmul.f32 %v5794_v36, %v6349_v2  ;;  %v1059_v26 = vrot.slane %v798_v53, 7  ;;  %v1013_v41 = vrot.slane %v767_v57, 7 }
 0x210   : > { %5058 = vmatmul.f32.gmra.mxu2 %v4840_v51  ;;  %v3550_v24 = vadd.f32 %v3373_v54, %v3068_v29  ;;  %v2524_v1 = vmul.f32 %v5841_v40, %v6825_v42  ;;  %v2282_v4 = vrot.slane %v2057_v49, 2  ;;  %v2670_v47 = vmul.f32 %v5838_v38, %v6825_v42 }
 0x211   : > { %v1801_v39 = vsel %vm1718_vm2, %v1799_v33, %v10001_v60  ;;  %v10000_v21 = vrot.slane %v6955_v17, 2  ;;  %v6966_v2 = vsel %vm990_vm1, %v1057_v18, %v1059_v26  ;;  %1256 = vst [vmem:[#allocation2 + $0x260] sm:$0x1] %v1059_v26  ;;  %v1014_v12 = vsel %vm990_vm1, %v1010_v46, %v1013_v41 }
 0x212   : > { %v3680_v43 = vadd.f32 %v3616_v0, %v3550_v24  ;;  %10217 = vst [vmem:[#allocation39_spill] sm:$0xff] %v6966_v2  ;;  %v1975_v25 = vadd.f32 %v1801_v39, %v1428_v37  ;;  %v6977_v16 = vmul.f32 %v5838_v38, %v6460_v31  ;;  %v2894_v0 = vrot.slane %v2670_v47, 1  ;;  %v1391_v37 = vld [vmem:[%s9928_s3 + $0x8] sm:$0xff] }
 0x213   : > { %1254 = vst [vmem:[#allocation2 + $0x250] sm:$0xff] %v6966_v2  ;;  %v2284_v56 = vsel %vm2201_vm3, %v2282_v4, %v10000_v21  ;;  %v3152_v18 = vmul.f32 %v5850_v61, %v6825_v42  ;;  %v4467_v46 = vsel %vm2201_vm3, %v4461_v44, %v4466_v63  ;;  %v6987_v45 = vmul.f32 %v5850_v61, %v6460_v31  ;;  %v10225_v2 = vld [vmem:[#allocation29_spill] sm:$0xff] }
 0x214   : > { %v4162_v19 = vadd.f32 %v3985_v3, %v3680_v43  ;;  %1207 = vst.msk [vmem:[#allocation2 + $0xd8] sm:$0xff] %vm817_vm4, %v1014_v12  ;;  %v2458_v54 = vadd.f32 %v2284_v56, %v1975_v25  ;;  %v9999_v58 = vrot.slane %v6977_v16, 1  ;;  %v3764_v20 = vmul.f32 %v5869_v7, %v6969_v22  ;;  %5453 = vmatmul.msk.f32.gmra.mxu1 %vm365_vm0, %v10219_v34 }
 0x215   : > { %1209 = vst.msk [vmem:[#allocation2 + $0xe8] sm:$0x1] %vm1190_vm7, %v1013_v41  ;;  %v3376_v35 = vrot.slane %v3152_v18, 2  ;;  %v6995_v48 = vmul.f32 %v5869_v7, %v6595_v62  ;;  %v9996_v10 = vrot.slane %v6987_v45, 2  ;;  %v4246_v3 = vmul.f32 %v6549_v23, %v6969_v22  ;;  %v1283_v41 = vld [vmem:[#allocation2 + $0x8] sm:$0xff] }
 0x216   : > { %v4644_v44 = vadd.f32 %v4467_v46, %v4162_v19  ;;  %v2588_v63 = vadd.f32 %v2524_v1, %v2458_v54  ;;  %v2896_v51 = vsel %vm1718_vm2, %v2894_v0, %v9999_v58  ;;  %v3988_v29 = vrot.slane %v3764_v20, 1  ;;  %v7019_v1 = vld [vmem:[#allocation2 + $0x18] sm:$0xff] }
 0x217   : > { %v9995_v53 = vrot.slane %v6995_v48, 1  ;;  %v7011_v57 = vmul.f32 %v6549_v23, %v6595_v62  ;;  %v3378_v24 = vsel %vm2201_vm3, %v3376_v35, %v9996_v10  ;;  %v3618_v26 = vmul.f32 %v5866_v55, %v6969_v22 }
 0x218   : > { %v4714_v33 = vadd.f32 %v5912_v11, %v4644_v44  ;;  %v3070_v49 = vadd.f32 %v2896_v51, %v2588_v63  ;;  %v4470_v39 = vrot.slane %v4246_v3, 2  ;;  %v7022_v47 = vperm.slane %v1391_v37, 0  ;;  %v7039_v44 = vld [vmem:[#allocation2 + $0x38] sm:$0xff]  ;;  %v7041_v63 = vld [vmem:[#allocation2 + $0x48] sm:$0xff] }
 0x219   : > { %v9997_v4 = vrot.slane %v7011_v57, 2  ;;  %v7024_v43 = vperm.slane %v1391_v37, 1  ;;  %v3990_v56 = vsel %vm1718_vm2, %v3988_v29, %v9995_v53  ;;  %v7029_v0 = vperm.slane %v1391_v37, 2  ;;  %10220 = vst [vmem:[#allocation41_spill] sm:$0xff] %v7039_v44 }
 0x21a   : > { %v4778_v12 = vmax.f32 %v4714_v33, 0.0  ;;  %v3552_v25 = vadd.f32 %v3378_v24, %v3070_v49  ;;  %v1397_v18 = vmul.f32 %v7022_v47, %v1283_v41  ;;  %v7037_v54 = vperm.slane %v1391_v37, 3 }
 0x21b   : > { %v1527_v19 = vmul.f32 %v7024_v43, %v1283_v41  ;;  %v7035_v46 = vmul.f32 %v7024_v43, %v7019_v1  ;;  %v2010_v3 = vmul.f32 %v7029_v0, %v1283_v41  ;;  %v7046_v51 = vmul.f32 %v7029_v0, %v7019_v1  ;;  %v10221_v41 = vld [vmem:[#allocation27_spill] sm:$0xff] }
 0x21c   : > { %v4842_v35 = vmin.f32 %v4778_v12, 6.0  ;;  %v3682_v20 = vadd.f32 %v3618_v26, %v3552_v25  ;;  %v4472_v29 = vsel %vm2201_vm3, %v4470_v39, %v9997_v4  ;;  %v7052_v24 = vperm.slane %v1391_v37, 4  ;;  %5454 = vmatmul.msk.f32.gmra.mxu1 %vm365_vm0, %v10221_v41  ;;  %v7077_v4 = vld [vmem:[#allocation2 + $0x78] sm:$0xff] }
 0x21d   : > { %v1722_v33 = vrot.slane %v1527_v19, 1  ;;  %v9998_v49 = vrot.slane %v7035_v46, 1  ;;  %v2205_v12 = vrot.slane %v2010_v3, 2  ;;  %v10003_v25 = vrot.slane %v7046_v51, 2  ;;  %v7075_v3 = vld [vmem:[#allocation2 + $0x68] sm:$0xff] }
 0x21e   : > { %5061 = vmatmul.f32.gmra.mxu2 %v4842_v35  ;;  %v4164_v26 = vadd.f32 %v3990_v56, %v3682_v20  ;;  %v7055_v53 = vperm.slane %v1391_v37, 5  ;;  %v2493_v39 = vmul.f32 %v7037_v54, %v7039_v44  ;;  %v2623_v19 = vmul.f32 %v7052_v24, %v7039_v44  ;;  %v7073_v35 = vld [vmem:[%s9928_s3 + $0x18] ss:$0 sm:$0xff]  ;;  %10223 = vst [vmem:[#allocation43_spill] sm:$0xff] %v7075_v3 }
 0x21f   : > { %v1724_v10 = vsel %vm1718_vm2, %v1722_v33, %v9998_v49  ;;  %v7068_v56 = vmul.f32 %v7052_v24, %v7041_v63  ;;  %10222 = vst [vmem:[#allocation42_spill] sm:$0xff] %v7073_v35  ;;  %v2207_v49 = vsel %vm2201_vm3, %v2205_v12, %v10003_v25  ;;  %v4199_v25 = vmul.f32 %v7073_v35, %v7075_v3 }
 0x220   : > { %v4646_v20 = vadd.f32 %v4472_v29, %v4164_v26  ;;  %v1944_v33 = vadd.f32 %v1724_v10, %v1397_v18  ;;  %v3105_v58 = vmul.f32 %v7055_v53, %v7039_v44  ;;  %v2817_v21 = vrot.slane %v2623_v19, 1 }
 0x221   : > { %v10006_v60 = vrot.slane %v7068_v56, 1  ;;  %v7087_v41 = vmul.f32 %v7055_v53, %v7041_v63  ;;  %v7089_v29 = vperm.slane %v1391_v37, 6  ;;  %v7092_v18 = vperm.slane %v1391_v37, 7 }
 0x222   : > { %v4716_v26 = vadd.f32 %v5912_v11, %v4646_v20  ;;  %v2427_v34 = vadd.f32 %v2207_v49, %v1944_v33  ;;  %v3299_v10 = vrot.slane %v3105_v58, 2  ;;  %v7102_v30 = vmul.f32 %v7073_v35, %v7077_v4  ;;  %v616_v49 = vpop.f32.mrf.mxu1 }
 0x223   : > { %v2819_v12 = vsel %vm1718_vm2, %v2817_v21, %v10006_v60  ;;  %v3717_v58 = vmul.f32 %v7092_v18, %v7075_v3  ;;  %v7108_v37 = vmul.f32 %v7092_v18, %v7077_v4  ;;  %v3587_v21 = vmul.f32 %v7089_v29, %v7075_v3 }
 0x224   : > { %v4780_v28 = vmax.f32 %v4716_v26, 0.0  ;;  %v2557_v20 = vadd.f32 %v2493_v39, %v2427_v34  ;;  %v4393_v33 = vrot.slane %v4199_v25, 2  ;;  %v10015_v60 = vrot.slane %v7102_v30, 2  ;;  %5455 = vmatmul.msk.f32.gmra.mxu1 %vm365_vm0, %v10225_v2  ;;  %v1287_v2 = vld [vmem:[#allocation2 + $0x28] sm:$0x3] }
 0x225   : > { %v552_v19 = vadd.f32 %v551_v32, %v5744_v50  ;;  %v10224_v34 = vrot.slane %v7087_v41, 2  ;;  %v10016_v26 = vrot.slane %v7108_v37, 1  ;;  %v3911_v44 = vrot.slane %v3717_v58, 1  ;;  %v5536_v32 = vld [vmem:[#allocation2 + $0x190] sm:$0xff] }
 0x226   : > { %v4844_v14 = vmin.f32 %v4780_v28, 6.0  ;;  %v3039_v8 = vadd.f32 %v2819_v12, %v2557_v20  ;;  %v4395_v25 = vsel %vm2201_vm3, %v4393_v33, %v10015_v60  ;;  %v617_v9 = vadd.f32 %v616_v49, %v6280_v5  ;;  %v7136_v49 = vld [vmem:[#allocation2 + $0x200] sm:$0x3] }
 0x227   : > { %v3301_v39 = vsel %vm2201_vm3, %v3299_v10, %v10224_v34  ;;  %v736_v3 = vmax.f32 %v552_v19, 0.0  ;;  %v1430_v12 = vmul.f32 %v5536_v32, %v5809_v52  ;;  %v1578_v10 = vmul.f32 %v5786_v6, %v6701_v27 }
 0x228   : > { %5064 = vmatmul.f32.gmra.mxu2 %v4844_v14  ;;  %v3521_v28 = vadd.f32 %v3301_v39, %v3039_v8  ;;  %v2061_v20 = vmul.f32 %v5794_v36, %v6701_v27  ;;  %v3913_v58 = vsel %vm1718_vm2, %v3911_v44, %v10016_v26  ;;  %v705_v19 = vmax.f32 %v617_v9, 0.0 }
 0x229   : > { %v7132_v34 = vmin.f32 %v736_v3, 6.0  ;;  %v2674_v14 = vmul.f32 %v5838_v38, %v6908_v59  ;;  %v1805_v33 = vrot.slane %v1578_v10, 1  ;;  %v3156_v32 = vmul.f32 %v5850_v61, %v6908_v59 }
 0x22a   : > { %v3651_v8 = vadd.f32 %v3587_v21, %v3521_v28  ;;  %v2288_v39 = vrot.slane %v2061_v20, 2  ;;  %v7141_v60 = vmin.f32 %v705_v19, 6.0  ;;  %v2526_v44 = vmul.f32 %v5841_v40, %v6460_v31 }
 0x22b   : > { %v10020_v27 = vrot.slane %v7132_v34, 7  ;;  %v2900_v3 = vrot.slane %v2674_v14, 1  ;;  %v10226_v26 = vrot.slane %v6946_v15, 1  ;;  %v10227_v28 = vrot.slane %v6955_v17, 2 }
 0x22c   : > { %v4133_v9 = vadd.f32 %v3913_v58, %v3651_v8  ;;  %v3382_v20 = vrot.slane %v3156_v32, 2  ;;  %v10019_v19 = vrot.slane %v7141_v60, 7  ;;  %v3620_v31 = vmul.f32 %v5866_v55, %v6595_v62  ;;  %v7158_v58 = vld [vmem:[#allocation2 + $0x58] sm:$0x3] }
 0x22d   : > { %v1806_v21 = vsel %vm1718_vm2, %v10226_v26, %v1805_v33  ;;  %v2289_v10 = vsel %vm2201_vm3, %v10227_v28, %v2288_v39  ;;  %1258 = vst [vmem:[#allocation2 + $0x270] sm:$0xfe] %v10020_v27  ;;  %v3768_v15 = vmul.f32 %v5869_v7, %v7136_v49  ;;  %v10228_v17 = vrot.slane %v6977_v16, 1  ;;  %v10230_v39 = vld [vmem:[#allocation31_spill] sm:$0xff] }
 0x22e   : > { %v1977_v59 = vadd.f32 %v1806_v21, %v1430_v12  ;;  %v4615_v26 = vadd.f32 %v4395_v25, %v4133_v9  ;;  %v10229_v8 = vrot.slane %v6987_v45, 2  ;;  %v4250_v12 = vmul.f32 %v6549_v23, %v7136_v49  ;;  %5456 = vmatmul.msk.f32.gmra.mxu1 %vm365_vm0, %v10230_v39  ;;  %1211 = vst.msk [vmem:[#allocation2 + $0xf8] sm:$0xfe] %vm1185_vm5, %v10019_v19 }
 0x22f   : > { %v2901_v14 = vsel %vm1718_vm2, %v10228_v17, %v2900_v3  ;;  %v3994_v25 = vrot.slane %v3768_v15, 1  ;;  %v1531_v16 = vmul.f32 %v7024_v43, %v1287_v2  ;;  %v2014_v3 = vmul.f32 %v7029_v0, %v1287_v2 }
 0x230   : > { %v3383_v33 = vsel %vm2201_vm3, %v10229_v8, %v3382_v20  ;;  %v2460_v32 = vadd.f32 %v2289_v10, %v1977_v59  ;;  %v4685_v45 = vadd.f32 %v6885_v13, %v4615_v26  ;;  %v4476_v9 = vrot.slane %v4250_v12, 2  ;;  %v7185_v8 = vld [vmem:[#allocation2 + $0x88] sm:$0x3]  ;;  %v554_v12 = vpop.f32.mrf.mxu0 }
 0x231   : > { %v1399_v21 = vmul.f32 %v7022_v47, %v7019_v1  ;;  %v2627_v23 = vmul.f32 %v7052_v24, %v7158_v58  ;;  %v1727_v20 = vrot.slane %v1531_v16, 1  ;;  %v2210_v17 = vrot.slane %v2014_v3, 2 }
 0x232   : > { %v2590_v28 = vadd.f32 %v2526_v44, %v2460_v32  ;;  %v2495_v59 = vmul.f32 %v7037_v54, %v7041_v63  ;;  %v4749_v10 = vmax.f32 %v4685_v45, 0.0  ;;  %v10231_v15 = vrot.slane %v6995_v48, 1  ;;  %v619_v45 = vpop.f32.mrf.mxu1 }
 0x233   : > { %v2822_v26 = vrot.slane %v2627_v23, 1  ;;  %v3109_v1 = vmul.f32 %v7055_v53, %v7158_v58  ;;  %v10232_v44 = vrot.slane %v7011_v57, 2  ;;  %v10233_v16 = vrot.slane %v7035_v46, 1 }
 0x234   : > { %v3995_v2 = vsel %vm1718_vm2, %v10231_v15, %v3994_v25  ;;  %v3072_v19 = vadd.f32 %v2901_v14, %v2590_v28  ;;  %v10234_v48 = vrot.slane %v7046_v51, 2  ;;  %v4813_v15 = vmin.f32 %v4749_v10, 6.0 }
 0x235   : > { %v4477_v32 = vsel %vm2201_vm3, %v10232_v44, %v4476_v9  ;;  %v1728_v3 = vsel %vm1718_vm2, %v10233_v16, %v1727_v20  ;;  %v3304_v27 = vrot.slane %v3109_v1, 2  ;;  %v3589_v39 = vmul.f32 %v7089_v29, %v7077_v4 }
 0x236   : > { %v2211_v25 = vsel %vm2201_vm3, %v10234_v48, %v2210_v17  ;;  %v1946_v23 = vadd.f32 %v1728_v3, %v1399_v21  ;;  %v3554_v14 = vadd.f32 %v3383_v33, %v3072_v19  ;;  %v3721_v57 = vmul.f32 %v7092_v18, %v7185_v8  ;;  %5458 = vmatmul.msk.f32.vlgmr.msra.gmra.mxu3 %vm817_vm4, %v4813_v15 }
 0x237   : > { %v4203_v46 = vmul.f32 %v7073_v35, %v7185_v8  ;;  %v555_v9 = vadd.f32 %v554_v12, %v5744_v50  ;;  %v10235_v28 = vrot.slane %v7068_v56, 1  ;;  %v10236_v20 = vrot.slane %v7087_v41, 2  ;;  %v10237_v12 = vld [vmem:[#allocation33_spill] sm:$0xff] }
 0x238   : > { %v2429_v51 = vadd.f32 %v2211_v25, %v1946_v23  ;;  %v620_v19 = vadd.f32 %v619_v45, %v6280_v5  ;;  %v3684_v33 = vadd.f32 %v3620_v31, %v3554_v14  ;;  %v3916_v10 = vrot.slane %v3721_v57, 1  ;;  %5457 = vmatmul.msk.f32.gmra.mxu1 %vm365_vm0, %v10237_v12 }
 0x239   : > { %v2823_v21 = vsel %vm1718_vm2, %v10235_v28, %v2822_v26  ;;  %v3305_v17 = vsel %vm2201_vm3, %v10236_v20, %v3304_v27  ;;  %v738_v1 = vmax.f32 %v555_v9, 0.0  ;;  %v1432_v44 = vmul.f32 %v5809_v52, %v6825_v42  ;;  %v7219_v26 = vld [vmem:[#allocation2 + $0x1c0] sm:$0xff] }
 0x23a   : > { %v2559_v16 = vadd.f32 %v2495_v59, %v2429_v51  ;;  %v707_v3 = vmax.f32 %v620_v19, 0.0  ;;  %v1580_v56 = vmul.f32 %v5786_v6, %v6825_v42  ;;  %v7223_v41 = vmul.f32 %v7219_v26, %v5786_v6 }
 0x23b   : > { %v4166_v27 = vadd.f32 %v3995_v2, %v3684_v33  ;;  %v10238_v31 = vrot.slane %v7108_v37, 1  ;;  %v4398_v25 = vrot.slane %v4203_v46, 2  ;;  %v802_v45 = vmin.f32 %v738_v1, 6.0 }
 0x23c   : > { %v3041_v15 = vadd.f32 %v2823_v21, %v2559_v16  ;;  %v771_v23 = vmin.f32 %v707_v3, 6.0  ;;  %v1809_v59 = vrot.slane %v1580_v56, 1  ;;  %v10026_v14 = vrot.slane %v7223_v41, 1 }
 0x23d   : > { %v3917_v48 = vsel %vm1718_vm2, %v10238_v31, %v3916_v10  ;;  %v4648_v57 = vadd.f32 %v4477_v32, %v4166_v27  ;;  %v1065_v9 = vrot.slane %v802_v45, 7  ;;  %v2063_v51 = vmul.f32 %v5794_v36, %v6825_v42 }
 0x23e   : > { %v7233_v28 = vmul.f32 %v7219_v26, %v5794_v36  ;;  %v3523_v2 = vadd.f32 %v3305_v17, %v3041_v15  ;;  %v1019_v37 = vrot.slane %v771_v23, 7  ;;  %v1811_v46 = vsel %vm1718_vm2, %v1809_v59, %v10026_v14 }
 0x23f   : > { %v2528_v21 = vmul.f32 %v5841_v40, %v6969_v22  ;;  %v4718_v20 = vadd.f32 %v5912_v11, %v4648_v57  ;;  %v10239_v32 = vrot.slane %v7132_v34, 7  ;;  %1262 = vst [vmem:[#allocation2 + $0x290] sm:$0x1] %v1065_v9  ;;  %v1979_v42 = vadd.f32 %v1811_v46, %v1432_v44  ;;  %v7254_v34 = vld [vmem:[#allocation2 + $0x210] sm:$0xff] }
 0x240   : > { %v2292_v33 = vrot.slane %v2063_v51, 2  ;;  %v3653_v10 = vadd.f32 %v3589_v39, %v3523_v2  ;;  %v10241_v17 = vrot.slane %v7141_v60, 7  ;;  %v10025_v16 = vrot.slane %v7233_v28, 2  ;;  %10242 = vst [vmem:[#allocation45_spill] sm:$0xff] %v7254_v34 }
 0x241   : > { %v7244_v19 = vsel %vm990_vm1, %v10239_v32, %v1065_v9  ;;  %v2676_v3 = vmul.f32 %v5838_v38, %v6969_v22  ;;  %v4782_v56 = vmax.f32 %v4718_v20, 0.0  ;;  %v7258_v44 = vmul.f32 %v5838_v38, %v6595_v62  ;;  %1215 = vst.msk [vmem:[#allocation2 + $0x118] sm:$0x1] %vm1190_vm7, %v1019_v37  ;;  %v7287_v20 = vld [vmem:[%s9928_s3 + $0x10] ss:$0 sm:$0xff] }
 0x242   : > { %10240 = vst [vmem:[#allocation44_spill] sm:$0xff] %v7244_v19  ;;  %v1020_v1 = vsel %vm990_vm1, %v10241_v17, %v1019_v37  ;;  %v3158_v39 = vmul.f32 %v5850_v61, %v6969_v22  ;;  %v7264_v60 = vmul.f32 %v5850_v61, %v6595_v62  ;;  %v4135_v27 = vadd.f32 %v3917_v48, %v3653_v10  ;;  %v10244_v48 = vld [vmem:[#allocation37_spill] sm:$0xff] }
 0x243   : > { %1260 = vst [vmem:[#allocation2 + $0x280] sm:$0xff] %v7244_v19  ;;  %v10243_v31 = vrot.slane %v7102_v30, 2  ;;  %v2294_v15 = vsel %vm2201_vm3, %v2292_v33, %v10025_v16  ;;  %v2904_v23 = vrot.slane %v2676_v3, 1  ;;  %v4846_v59 = vmin.f32 %v4782_v56, 6.0 }
 0x244   : > { %1213 = vst.msk [vmem:[#allocation2 + $0x108] sm:$0xff] %vm817_vm4, %v1020_v1  ;;  %v2462_v57 = vadd.f32 %v2294_v15, %v1979_v42  ;;  %v10022_v9 = vrot.slane %v7258_v44, 1  ;;  %v3386_v51 = vrot.slane %v3158_v39, 2  ;;  %v10021_v62 = vrot.slane %v7264_v60, 2 }
 0x245   : > { %v4399_v45 = vsel %vm2201_vm3, %v10243_v31, %v4398_v25  ;;  %v3770_v30 = vmul.f32 %v5869_v7, %v7254_v34  ;;  %v7279_v25 = vmul.f32 %v5869_v7, %v10244_v48  ;;  %5067 = vmatmul.f32.gmra.mxu2 %v4846_v59  ;;  %v4252_v32 = vmul.f32 %v7287_v20, %v7254_v34  ;;  %v10245_v31 = vld [vmem:[#allocation41_spill] sm:$0xff] }
 0x246   : > { %v4617_v2 = vadd.f32 %v4399_v45, %v4135_v27  ;;  %v2592_v37 = vadd.f32 %v2528_v21, %v2462_v57  ;;  %v2906_v46 = vsel %vm1718_vm2, %v2904_v23, %v10022_v9  ;;  %v7293_v42 = vmul.f32 %v7287_v20, %v10244_v48  ;;  %v7327_v9 = vld [vmem:[#allocation2 + $0xa8] sm:$0xff] }
 0x247   : > { %v3998_v10 = vrot.slane %v3770_v30, 1  ;;  %v10024_v21 = vrot.slane %v7279_v25, 1  ;;  %v3388_v1 = vsel %vm2201_vm3, %v3386_v51, %v10021_v62  ;;  %v3622_v3 = vmul.f32 %v5866_v55, %v7254_v34 }
 0x248   : > { %v4687_v33 = vadd.f32 %v6885_v13, %v4617_v2  ;;  %v3074_v17 = vadd.f32 %v2906_v46, %v2592_v37  ;;  %v4480_v56 = vrot.slane %v4252_v32, 2  ;;  %v10030_v27 = vrot.slane %v7293_v42, 2 }
 0x249   : > { %v1533_v45 = vmul.f32 %v7024_v43, %v10245_v31  ;;  %v7307_v15 = vmul.f32 %v7024_v43, %v7041_v63  ;;  %v1401_v59 = vmul.f32 %v7022_v47, %v10245_v31  ;;  %v2016_v57 = vmul.f32 %v7029_v0, %v10245_v31  ;;  %v7325_v31 = vld [vmem:[#allocation2 + $0x98] sm:$0xff] }
 0x24a   : > { %v4751_v39 = vmax.f32 %v4687_v33, 0.0  ;;  %v3556_v23 = vadd.f32 %v3388_v1, %v3074_v17  ;;  %v7315_v51 = vmul.f32 %v7029_v0, %v7041_v63  ;;  %v4000_v30 = vsel %vm1718_vm2, %v3998_v10, %v10024_v21  ;;  %v10246_v1 = vld [vmem:[#allocation43_spill] sm:$0xff]  ;;  %10247 = vst [vmem:[#allocation37_spill] sm:$0xff] %v7325_v31 }
 0x24b   : > { %v1732_v37 = vrot.slane %v1533_v45, 1  ;;  %v10023_v46 = vrot.slane %v7307_v15, 1  ;;  %v2215_v33 = vrot.slane %v2016_v57, 2  ;;  %v2629_v62 = vmul.f32 %v7052_v24, %v10246_v1 }
 0x24c   : > { %v4815_v2 = vmin.f32 %v4751_v39, 6.0  ;;  %v3686_v32 = vadd.f32 %v3622_v3, %v3556_v23  ;;  %v10029_v17 = vrot.slane %v7315_v51, 2  ;;  %v7334_v39 = vmul.f32 %v7052_v24, %v7077_v4 }
 0x24d   : > { %v1734_v10 = vsel %vm1718_vm2, %v1732_v37, %v10023_v46  ;;  %v3111_v3 = vmul.f32 %v7055_v53, %v10246_v1  ;;  %v7340_v45 = vmul.f32 %v7055_v53, %v7077_v4  ;;  %v4482_v57 = vsel %vm2201_vm3, %v4480_v56, %v10030_v27 }
 0x24e   : > { %5459 = vmatmul.msk.f32.gmra.mxu3 %vm817_vm4, %v4815_v2  ;;  %v4168_v23 = vadd.f32 %v4000_v30, %v3686_v32  ;;  %v1948_v2 = vadd.f32 %v1734_v10, %v1401_v59  ;;  %v2497_v37 = vmul.f32 %v7037_v54, %v10246_v1  ;;  %v2217_v46 = vsel %vm2201_vm3, %v2215_v33, %v10029_v17  ;;  %v557_v59 = vpop.f32.mrf.mxu0 }
 0x24f   : > { %v2827_v21 = vrot.slane %v2629_v62, 1  ;;  %v10031_v16 = vrot.slane %v7334_v39, 1  ;;  %v3723_v30 = vmul.f32 %v7092_v18, %v7325_v31  ;;  %v7356_v56 = vmul.f32 %v7092_v18, %v7327_v9 }
 0x250   : > { %v4650_v12 = vadd.f32 %v4482_v57, %v4168_v23  ;;  %v2431_v19 = vadd.f32 %v2217_v46, %v1948_v2  ;;  %v3309_v33 = vrot.slane %v3111_v3, 2  ;;  %v4205_v62 = vmul.f32 %v7073_v35, %v7325_v31  ;;  %v622_v46 = vpop.f32.mrf.mxu1 }
 0x251   : > { %v2829_v32 = vsel %vm1718_vm2, %v2827_v21, %v10031_v16  ;;  %v7365_v10 = vmul.f32 %v7073_v35, %v7327_v9  ;;  %v3591_v2 = vmul.f32 %v7089_v29, %v7325_v31  ;;  %v10037_v17 = vrot.slane %v7356_v56, 1 }
 0x252   : > { %v4720_v23 = vadd.f32 %v5912_v11, %v4650_v12  ;;  %v2561_v57 = vadd.f32 %v2497_v37, %v2431_v19  ;;  %v3921_v27 = vrot.slane %v3723_v30, 1  ;;  %v4403_v14 = vrot.slane %v4205_v62, 2  ;;  %v10249_v62 = vld [vmem:[#allocation38_spill] sm:$0xff] }
 0x253   : > { %v10038_v21 = vrot.slane %v7365_v10, 2  ;;  %v558_v3 = vadd.f32 %v557_v59, %v5744_v50  ;;  %v10248_v34 = vrot.slane %v7340_v45, 2  ;;  %v623_v12 = vadd.f32 %v622_v46, %v6280_v5 }
 0x254   : > { %v4784_v16 = vmax.f32 %v4720_v23, 0.0  ;;  %v3043_v1 = vadd.f32 %v2829_v32, %v2561_v57  ;;  %v3923_v19 = vsel %vm1718_vm2, %v3921_v27, %v10037_v17  ;;  %v1584_v59 = vmul.f32 %v5786_v6, %v10249_v62 }
 0x255   : > { %v3311_v22 = vsel %vm2201_vm3, %v3309_v33, %v10248_v34  ;;  %v4405_v37 = vsel %vm2201_vm3, %v4403_v14, %v10038_v21  ;;  %v740_v30 = vmax.f32 %v558_v3, 0.0  ;;  %v709_v57 = vmax.f32 %v623_v12, 0.0  ;;  %v7395_v21 = vld [vmem:[#allocation2 + $0x230] sm:$0x3] }
 0x256   : > { %v4848_v23 = vmin.f32 %v4784_v16, 6.0  ;;  %v3525_v32 = vadd.f32 %v3311_v22, %v3043_v1  ;;  %v2067_v34 = vmul.f32 %v5794_v36, %v10249_v62  ;;  %v1434_v46 = vmul.f32 %v7219_v26, %v5809_v52  ;;  %10250 = vst [vmem:[#allocation41_spill] sm:$0xff] %v7395_v21 }
 0x257   : > { %v7387_v33 = vmin.f32 %v740_v30, 6.0  ;;  %v1815_v27 = vrot.slane %v1584_v59, 1  ;;  %v2680_v17 = vmul.f32 %v5838_v38, %v7136_v49  ;;  %v7393_v3 = vmin.f32 %v709_v57, 6.0  ;;  %v7403_v30 = vld [vmem:[#allocation2 + $0x1f0] sm:$0xff] }
 0x258   : > { %5070 = vmatmul.f32.gmra.mxu2 %v4848_v23  ;;  %v3655_v14 = vadd.f32 %v3591_v2, %v3525_v32  ;;  %v2298_v22 = vrot.slane %v2067_v34, 2  ;;  %v3162_v16 = vmul.f32 %v5850_v61, %v7136_v49  ;;  %v10251_v12 = vrot.slane %v7223_v41, 1 }
 0x259   : > { %v10040_v1 = vrot.slane %v7387_v33, 7  ;;  %v2530_v62 = vmul.f32 %v7403_v30, %v5841_v40  ;;  %v2910_v2 = vrot.slane %v2680_v17, 1  ;;  %v10039_v23 = vrot.slane %v7393_v3, 7 }
 0x25a   : > { %v1816_v26 = vsel %vm1718_vm2, %v10251_v12, %v1815_v27  ;;  %v4137_v59 = vadd.f32 %v3923_v19, %v3655_v14  ;;  %v3624_v57 = vmul.f32 %v5866_v55, %v10244_v48  ;;  %v10252_v41 = vrot.slane %v7233_v28, 2 }
 0x25b   : > { %v1981_v32 = vadd.f32 %v1816_v26, %v1434_v46  ;;  %1264 = vst [vmem:[#allocation2 + $0x2a0] sm:$0xfe] %v10040_v1  ;;  %v3392_v27 = vrot.slane %v3162_v16, 2  ;;  %v3774_v12 = vmul.f32 %v5869_v7, %v7395_v21  ;;  %v4256_v17 = vmul.f32 %v7287_v20, %v7395_v21 }
 0x25c   : > { %v2299_v34 = vsel %vm2201_vm3, %v10252_v41, %v2298_v22  ;;  %v4619_v19 = vadd.f32 %v4405_v37, %v4137_v59  ;;  %1217 = vst.msk [vmem:[#allocation2 + $0x128] sm:$0xfe] %vm1185_vm5, %v10039_v23  ;;  %v10253_v46 = vrot.slane %v7258_v44, 1  ;;  %v1537_v28 = vmul.f32 %v7024_v43, %v7158_v58  ;;  %v560_v23 = vpop.f32.mrf.mxu0 }
 0x25d   : > { %v2464_v48 = vadd.f32 %v2299_v34, %v1981_v32  ;;  %v4004_v22 = vrot.slane %v3774_v12, 1  ;;  %v4486_v16 = vrot.slane %v4256_v17, 2  ;;  %v1403_v26 = vmul.f32 %v7022_v47, %v7041_v63  ;;  %v7438_v12 = vld [vmem:[#allocation2 + $0xb8] sm:$0x3] }
 0x25e   : > { %v2911_v14 = vsel %vm1718_vm2, %v10253_v46, %v2910_v2  ;;  %v2020_v37 = vmul.f32 %v7029_v0, %v7158_v58  ;;  %v4689_v59 = vadd.f32 %v6885_v13, %v4619_v19  ;;  %v10254_v32 = vrot.slane %v7264_v60, 2 }
 0x25f   : > { %v2594_v41 = vadd.f32 %v2530_v62, %v2464_v48  ;;  %v1737_v34 = vrot.slane %v1537_v28, 1  ;;  %v10255_v2 = vrot.slane %v7279_v25, 1  ;;  %v2499_v63 = vmul.f32 %v7037_v54, %v7077_v4 }
 0x260   : > { %v3393_v44 = vsel %vm2201_vm3, %v10254_v32, %v3392_v27  ;;  %v2220_v17 = vrot.slane %v2020_v37, 2  ;;  %v2633_v58 = vmul.f32 %v7052_v24, %v7185_v8  ;;  %v4753_v19 = vmax.f32 %v4689_v59, 0.0 }
 0x261   : > { %v4005_v46 = vsel %vm1718_vm2, %v10255_v2, %v4004_v22  ;;  %v3076_v62 = vadd.f32 %v2911_v14, %v2594_v41  ;;  %v10256_v60 = vrot.slane %v7307_v15, 1  ;;  %v3115_v25 = vmul.f32 %v7055_v53, %v7185_v8 }
 0x262   : > { %v10257_v48 = vrot.slane %v7293_v42, 2  ;;  %v10258_v37 = vrot.slane %v7315_v51, 2  ;;  %v2832_v2 = vrot.slane %v2633_v58, 1  ;;  %v4817_v59 = vmin.f32 %v4753_v19, 6.0 }
 0x263   : > { %v1738_v27 = vsel %vm1718_vm2, %v10256_v60, %v1737_v34  ;;  %v3558_v14 = vadd.f32 %v3393_v44, %v3076_v62  ;;  %v3314_v41 = vrot.slane %v3115_v25, 2  ;;  %v3727_v15 = vmul.f32 %v7092_v18, %v7438_v12  ;;  %v625_v34 = vpop.f32.mrf.mxu1 }
 0x264   : > { %v4487_v28 = vsel %vm2201_vm3, %v10257_v48, %v4486_v16  ;;  %v1950_v22 = vadd.f32 %v1738_v27, %v1403_v26  ;;  %v2221_v32 = vsel %vm2201_vm3, %v10258_v37, %v2220_v17  ;;  %v10259_v1 = vrot.slane %v7334_v39, 1  ;;  %5460 = vmatmul.msk.f32.gmra.mxu3 %vm817_vm4, %v4817_v59  ;;  %v10261_v27 = vld [vmem:[#allocation40_spill] sm:$0xff] }
 0x265   : > { %v3593_v16 = vmul.f32 %v7089_v29, %v7327_v9  ;;  %v4209_v51 = vmul.f32 %v7073_v35, %v7438_v12  ;;  %v3688_v26 = vadd.f32 %v3624_v57, %v3558_v14  ;;  %v10260_v44 = vrot.slane %v7340_v45, 2 }
 0x266   : > { %v2433_v60 = vadd.f32 %v2221_v32, %v1950_v22  ;;  %v2833_v42 = vsel %vm1718_vm2, %v10259_v1, %v2832_v2  ;;  %v3926_v58 = vrot.slane %v3727_v15, 1  ;;  %v561_v19 = vadd.f32 %v560_v23, %v5744_v50 }
 0x267   : > { %v3315_v17 = vsel %vm2201_vm3, %v10260_v44, %v3314_v41  ;;  %v4408_v39 = vrot.slane %v4209_v51, 2  ;;  %v626_v1 = vadd.f32 %v625_v34, %v6280_v5  ;;  %v1436_v25 = vmul.f32 %v5809_v52, %v10261_v27  ;;  %v10264_v44 = vld [vmem:[#allocation45_spill] sm:$0xff] }
 0x268   : > { %v2563_v62 = vadd.f32 %v2499_v63, %v2433_v60  ;;  %v4170_v48 = vadd.f32 %v4005_v46, %v3688_v26  ;;  %v10262_v22 = vrot.slane %v7356_v56, 1  ;;  %v742_v57 = vmax.f32 %v561_v19, 0.0 }
 0x269   : > { %v1586_v45 = vmul.f32 %v5786_v6, %v10261_v27  ;;  %v10263_v2 = vrot.slane %v7365_v10, 2  ;;  %v711_v63 = vmax.f32 %v626_v1, 0.0  ;;  %v7482_v59 = vmul.f32 %v7403_v30, %v5786_v6 }
 0x26a   : > { %v3927_v37 = vsel %vm1718_vm2, %v10262_v22, %v3926_v58  ;;  %v3045_v32 = vadd.f32 %v2833_v42, %v2563_v62  ;;  %v4652_v14 = vadd.f32 %v4487_v28, %v4170_v48  ;;  %v806_v46 = vmin.f32 %v742_v57, 6.0  ;;  %v7503_v48 = vld [vmem:[#allocation2 + $0x240] sm:$0xff] }
 0x26b   : > { %v4409_v23 = vsel %vm2201_vm3, %v10263_v2, %v4408_v39  ;;  %v1819_v41 = vrot.slane %v1586_v45, 1  ;;  %v2069_v56 = vmul.f32 %v5794_v36, %v10261_v27  ;;  %v775_v34 = vmin.f32 %v711_v63, 6.0  ;;  %10267 = vst [vmem:[#allocation40_spill] sm:$0xff] %v7503_v48  ;;  %v7514_v2 = vld [vmem:[#allocation2 + $0x220] sm:$0xff] }
 0x26c   : > { %v3527_v15 = vadd.f32 %v3315_v17, %v3045_v32  ;;  %v10045_v60 = vrot.slane %v7482_v59, 1  ;;  %v7489_v10 = vmul.f32 %v7403_v30, %v5794_v36  ;;  %v4722_v42 = vadd.f32 %v5912_v11, %v4652_v14 }
 0x26d   : > { %v1071_v51 = vrot.slane %v806_v46, 7  ;;  %v2302_v26 = vrot.slane %v2069_v56, 2  ;;  %v2532_v28 = vmul.f32 %v5841_v40, %v10264_v44  ;;  %v1025_v19 = vrot.slane %v775_v34, 7 }
 0x26e   : > { %v3657_v58 = vadd.f32 %v3593_v16, %v3527_v15  ;;  %v1821_v17 = vsel %vm1718_vm2, %v1819_v41, %v10045_v60  ;;  %v10044_v62 = vrot.slane %v7489_v10, 2  ;;  %v4786_v39 = vmax.f32 %v4722_v42, 0.0 }
 0x26f   : > { %v10265_v1 = vrot.slane %v7387_v33, 7  ;;  %1268 = vst [vmem:[#allocation2 + $0x2c0] sm:$0x1] %v1071_v51  ;;  %v1983_v22 = vadd.f32 %v1821_v17, %v1436_v25  ;;  %v2682_v16 = vmul.f32 %v5838_v38, %v10264_v44  ;;  %v10268_v45 = vrot.slane %v7393_v3, 7 }
 0x270   : > { %v4139_v57 = vadd.f32 %v3927_v37, %v3657_v58  ;;  %v2304_v33 = vsel %vm2201_vm3, %v2302_v26, %v10044_v62  ;;  %v7518_v63 = vmul.f32 %v7514_v2, %v5838_v38  ;;  %v4850_v25 = vmin.f32 %v4786_v39, 6.0  ;;  %1221 = vst.msk [vmem:[#allocation2 + $0x148] sm:$0x1] %vm1190_vm7, %v1025_v19  ;;  %v10269_v26 = vld [vmem:[#allocation39_spill] sm:$0xff] }
 0x271   : > { %v7501_v27 = vsel %vm990_vm1, %v10265_v1, %v1071_v51  ;;  %v1026_v32 = vsel %vm990_vm1, %v10268_v45, %v1025_v19  ;;  %v2466_v37 = vadd.f32 %v2304_v33, %v1983_v22  ;;  %v2914_v14 = vrot.slane %v2682_v16, 1 }
 0x272   : > { %10266 = vst [vmem:[#allocation38_spill] sm:$0xff] %v7501_v27  ;;  %v3164_v3 = vmul.f32 %v5850_v61, %v10264_v44  ;;  %v4621_v46 = vadd.f32 %v4409_v23, %v4139_v57  ;;  %v10043_v41 = vrot.slane %v7518_v63, 1  ;;  %v7527_v56 = vmul.f32 %v7514_v2, %v5850_v61  ;;  %5073 = vmatmul.f32.gmra.mxu2 %v4850_v25 }
 0x273   : > { %1266 = vst [vmem:[#allocation2 + $0x2b0] sm:$0xff] %v7501_v27  ;;  %v3626_v15 = vmul.f32 %v5866_v55, %v7503_v48  ;;  %v2596_v34 = vadd.f32 %v2532_v28, %v2466_v37  ;;  %v3776_v51 = vmul.f32 %v5869_v7, %v7503_v48  ;;  %v7535_v23 = vmul.f32 %v5869_v7, %v10269_v26 }
 0x274   : > { %1219 = vst.msk [vmem:[#allocation2 + $0x138] sm:$0xff] %vm817_vm4, %v1026_v32  ;;  %v3396_v42 = vrot.slane %v3164_v3, 2  ;;  %v4691_v58 = vadd.f32 %v6885_v13, %v4621_v46  ;;  %v2916_v19 = vsel %vm1718_vm2, %v2914_v14, %v10043_v41  ;;  %v10042_v17 = vrot.slane %v7527_v56, 2  ;;  %v10270_v14 = vld [vmem:[#allocation43_spill] sm:$0xff]  ;;  %v7577_v41 = vld [vmem:[#allocation2 + $0xd8] sm:$0xff] }
 0x275   : > { %v4258_v39 = vmul.f32 %v7287_v20, %v7503_v48  ;;  %v3078_v28 = vadd.f32 %v2916_v19, %v2596_v34  ;;  %v4008_v1 = vrot.slane %v3776_v51, 1  ;;  %v10041_v22 = vrot.slane %v7535_v23, 1 }
 0x276   : > { %v7547_v16 = vmul.f32 %v7287_v20, %v10269_v26  ;;  %v4755_v57 = vmax.f32 %v4691_v58, 0.0  ;;  %v3398_v45 = vsel %vm2201_vm3, %v3396_v42, %v10042_v17  ;;  %v1539_v3 = vmul.f32 %v7024_v43, %v10270_v14  ;;  %v7575_v17 = vld [vmem:[#allocation2 + $0xc8] sm:$0xff] }
 0x277   : > { %v4490_v32 = vrot.slane %v4258_v39, 2  ;;  %v3560_v33 = vadd.f32 %v3398_v45, %v3078_v28  ;;  %v4010_v25 = vsel %vm1718_vm2, %v4008_v1, %v10041_v22  ;;  %v7560_v34 = vmul.f32 %v7024_v43, %v7077_v4  ;;  %10271 = vst [vmem:[#allocation39_spill] sm:$0xff] %v7575_v17 }
 0x278   : > { %v10051_v37 = vrot.slane %v7547_v16, 2  ;;  %v4819_v46 = vmin.f32 %v4755_v57, 6.0  ;;  %v2022_v51 = vmul.f32 %v7029_v0, %v10270_v14  ;;  %v7566_v42 = vmul.f32 %v7029_v0, %v7077_v4 }
 0x279   : > { %v3690_v58 = vadd.f32 %v3626_v15, %v3560_v33  ;;  %v1405_v19 = vmul.f32 %v7022_v47, %v10270_v14  ;;  %v1742_v39 = vrot.slane %v1539_v3, 1  ;;  %v10052_v28 = vrot.slane %v7560_v34, 1 }
 0x27a   : > { %5461 = vmatmul.msk.f32.gmra.mxu3 %vm817_vm4, %v4819_v46  ;;  %v2225_v1 = vrot.slane %v2022_v51, 2  ;;  %v10050_v57 = vrot.slane %v7566_v42, 2  ;;  %v2635_v45 = vmul.f32 %v7052_v24, %v7325_v31  ;;  %v7581_v15 = vmul.f32 %v7052_v24, %v7327_v9 }
 0x27b   : > { %v4172_v22 = vadd.f32 %v4010_v25, %v3690_v58  ;;  %v3117_v33 = vmul.f32 %v7055_v53, %v7325_v31  ;;  %v7587_v14 = vmul.f32 %v7055_v53, %v7327_v9  ;;  %v4492_v3 = vsel %vm2201_vm3, %v4490_v32, %v10051_v37 }
 0x27c   : > { %v1744_v25 = vsel %vm1718_vm2, %v1742_v39, %v10052_v28  ;;  %v2227_v46 = vsel %vm2201_vm3, %v2225_v1, %v10050_v57  ;;  %v2501_v51 = vmul.f32 %v7037_v54, %v7325_v31  ;;  %v2837_v60 = vrot.slane %v2635_v45, 1  ;;  %v563_v45 = vpop.f32.mrf.mxu0 }
 0x27d   : > { %v4654_v58 = vadd.f32 %v4492_v3, %v4172_v22  ;;  %v1952_v62 = vadd.f32 %v1744_v25, %v1405_v19  ;;  %v10059_v27 = vrot.slane %v7581_v15, 1  ;;  %v3729_v32 = vmul.f32 %v7092_v18, %v7575_v17  ;;  %v628_v3 = vpop.f32.mrf.mxu1 }
 0x27e   : > { %v7606_v39 = vmul.f32 %v7092_v18, %v7577_v41  ;;  %v4211_v1 = vmul.f32 %v7073_v35, %v7575_v17  ;;  %v3319_v22 = vrot.slane %v3117_v33, 2  ;;  %v7613_v19 = vmul.f32 %v7073_v35, %v7577_v41 }
 0x27f   : > { %v4724_v57 = vadd.f32 %v5912_v11, %v4654_v58  ;;  %v2435_v37 = vadd.f32 %v2227_v46, %v1952_v62  ;;  %v2839_v25 = vsel %vm1718_vm2, %v2837_v60, %v10059_v27  ;;  %v3595_v28 = vmul.f32 %v7089_v29, %v7575_v17 }
 0x280   : > { %v3931_v48 = vrot.slane %v3729_v32, 1  ;;  %v10063_v31 = vrot.slane %v7606_v39, 1  ;;  %v10272_v62 = vrot.slane %v7587_v14, 2  ;;  %v10062_v46 = vrot.slane %v7613_v19, 2 }
 0x281   : > { %v4788_v44 = vmax.f32 %v4724_v57, 0.0  ;;  %v2565_v58 = vadd.f32 %v2501_v51, %v2435_v37  ;;  %v4413_v35 = vrot.slane %v4211_v1, 2  ;;  %v564_v60 = vadd.f32 %v563_v45, %v5744_v50 }
 0x282   : > { %v3321_v33 = vsel %vm2201_vm3, %v3319_v22, %v10272_v62  ;;  %v3933_v11 = vsel %vm1718_vm2, %v3931_v48, %v10063_v31  ;;  %v629_v27 = vadd.f32 %v628_v3, %v6280_v5  ;;  %v1438_v37 = vmul.f32 %v7403_v30, %v5809_v52 }
 0x283   : > { %v4852_v32 = vmin.f32 %v4788_v44, 6.0  ;;  %v3047_v17 = vadd.f32 %v2839_v25, %v2565_v58  ;;  %v1590_v57 = vmul.f32 %v5786_v6, %v7136_v49  ;;  %v4415_v51 = vsel %vm2201_vm3, %v4413_v35, %v10062_v46  ;;  %v7647_v58 = vld [vmem:[#allocation2 + $0x260] sm:$0x3] }
 0x284   : > { %v744_v22 = vmax.f32 %v564_v60, 0.0  ;;  %v713_v62 = vmax.f32 %v629_v27, 0.0  ;;  %v2073_v48 = vmul.f32 %v5794_v36, %v7136_v49  ;;  %v2686_v44 = vmul.f32 %v5838_v38, %v7395_v21 }
 0x285   : > { %5076 = vmatmul.f32.gmra.mxu2 %v4852_v32  ;;  %v3529_v1 = vadd.f32 %v3321_v33, %v3047_v17  ;;  %v1825_v45 = vrot.slane %v1590_v57, 1  ;;  %v3168_v30 = vmul.f32 %v5850_v61, %v7395_v21  ;;  %v2534_v27 = vmul.f32 %v7514_v2, %v5841_v40 }
 0x286   : > { %v7643_v3 = vmin.f32 %v744_v22, 6.0  ;;  %v7645_v25 = vmin.f32 %v713_v62, 6.0  ;;  %v2308_v35 = vrot.slane %v2073_v48, 2  ;;  %v10273_v17 = vrot.slane %v7482_v59, 1 }
 0x287   : > { %v3659_v49 = vadd.f32 %v3595_v28, %v3529_v1  ;;  %v2920_v60 = vrot.slane %v2686_v44, 1  ;;  %v3402_v32 = vrot.slane %v3168_v30, 2  ;;  %v3628_v62 = vmul.f32 %v5866_v55, %v10269_v26 }
 0x288   : > { %v1826_v33 = vsel %vm1718_vm2, %v10273_v17, %v1825_v45  ;;  %v1075_v57 = vrot.slane %v7643_v3, 7  ;;  %v1028_v22 = vrot.slane %v7645_v25, 7  ;;  %v10274_v48 = vrot.slane %v7489_v10, 2 }
 0x289   : > { %v1985_v46 = vadd.f32 %v1826_v33, %v1438_v37  ;;  %v4141_v31 = vadd.f32 %v3933_v11, %v3659_v49  ;;  %v10275_v28 = vrot.slane %v7518_v63, 1  ;;  %v3780_v1 = vmul.f32 %v5869_v7, %v7647_v58 }
 0x28a   : > { %v2309_v21 = vsel %vm2201_vm3, %v10274_v48, %v2308_v35  ;;  %1270 = vst [vmem:[#allocation2 + $0x2d0] sm:$0xfe] %v1075_v57  ;;  %v10276_v37 = vrot.slane %v7527_v56, 2  ;;  %v4262_v11 = vmul.f32 %v7287_v20, %v7647_v58  ;;  %v1543_v10 = vmul.f32 %v7024_v43, %v7185_v8 }
 0x28b   : > { %v2921_v59 = vsel %vm1718_vm2, %v10275_v28, %v2920_v60  ;;  %v2468_v45 = vadd.f32 %v2309_v21, %v1985_v46  ;;  %v4623_v63 = vadd.f32 %v4415_v51, %v4141_v31  ;;  %1223 = vst.msk [vmem:[#allocation2 + $0x158] sm:$0xfe] %vm1185_vm5, %v1028_v22  ;;  %v4014_v44 = vrot.slane %v3780_v1, 1  ;;  %v7685_v31 = vld [vmem:[#allocation2 + $0xe8] sm:$0x3] }
 0x28c   : > { %v3403_v26 = vsel %vm2201_vm3, %v10276_v37, %v3402_v32  ;;  %v1407_v30 = vmul.f32 %v7022_v47, %v7077_v4  ;;  %v2026_v21 = vmul.f32 %v7029_v0, %v7185_v8  ;;  %v4496_v46 = vrot.slane %v4262_v11, 2 }
 0x28d   : > { %v2598_v56 = vadd.f32 %v2534_v27, %v2468_v45  ;;  %v1747_v35 = vrot.slane %v1543_v10, 1  ;;  %v2639_v49 = vmul.f32 %v7052_v24, %v7438_v12  ;;  %v4693_v17 = vadd.f32 %v6885_v13, %v4623_v63  ;;  %v566_v63 = vpop.f32.mrf.mxu0 }
 0x28e   : > { %v2230_v51 = vrot.slane %v2026_v21, 2  ;;  %v2503_v33 = vmul.f32 %v7037_v54, %v7327_v9  ;;  %v3121_v4 = vmul.f32 %v7055_v53, %v7438_v12  ;;  %v10277_v8 = vrot.slane %v7535_v23, 1 }
 0x28f   : > { %v3080_v60 = vadd.f32 %v2921_v59, %v2598_v56  ;;  %v10278_v32 = vrot.slane %v7560_v34, 1  ;;  %v2842_v28 = vrot.slane %v2639_v49, 1  ;;  %v4757_v1 = vmax.f32 %v4693_v17, 0.0 }
 0x290   : > { %v4015_v27 = vsel %vm1718_vm2, %v10277_v8, %v4014_v44  ;;  %v10279_v45 = vrot.slane %v7547_v16, 2  ;;  %v3324_v10 = vrot.slane %v3121_v4, 2  ;;  %v10280_v59 = vrot.slane %v7566_v42, 2 }
 0x291   : > { %v1748_v48 = vsel %vm1718_vm2, %v10278_v32, %v1747_v35  ;;  %v3562_v21 = vadd.f32 %v3403_v26, %v3080_v60  ;;  %v10281_v44 = vrot.slane %v7581_v15, 1  ;;  %v3733_v56 = vmul.f32 %v7092_v18, %v7685_v31  ;;  %v631_v35 = vpop.f32.mrf.mxu1 }
 0x292   : > { %v4497_v37 = vsel %vm2201_vm3, %v10279_v45, %v4496_v46  ;;  %v1954_v11 = vadd.f32 %v1748_v48, %v1407_v30  ;;  %v2231_v23 = vsel %vm2201_vm3, %v10280_v59, %v2230_v51  ;;  %v4821_v49 = vmin.f32 %v4757_v1, 6.0  ;;  %v10282_v46 = vld [vmem:[#allocation42_spill] sm:$0xff]  ;;  %v10284_v48 = vld [vmem:[#allocation45_spill] sm:$0xff] }
 0x293   : > { %v2843_v34 = vsel %vm1718_vm2, %v10281_v44, %v2842_v28  ;;  %v3597_v30 = vmul.f32 %v7089_v29, %v7577_v41  ;;  %v4215_v26 = vmul.f32 %v10282_v46, %v7685_v31  ;;  %v3692_v17 = vadd.f32 %v3628_v62, %v3562_v21 }
 0x294   : > { %v2437_v16 = vadd.f32 %v2231_v23, %v1954_v11  ;;  %v10283_v42 = vrot.slane %v7587_v14, 2  ;;  %v3936_v15 = vrot.slane %v3733_v56, 1  ;;  %v567_v4 = vadd.f32 %v566_v63, %v5744_v50  ;;  %5462 = vmatmul.msk.f32.gmra.mxu3 %vm817_vm4, %v4821_v49 }
 0x295   : > { %v4418_v8 = vrot.slane %v4215_v26, 2  ;;  %v632_v32 = vadd.f32 %v631_v35, %v6280_v5  ;;  %v1440_v28 = vmul.f32 %v5809_v52, %v10284_v48  ;;  %v4174_v1 = vadd.f32 %v4015_v27, %v3692_v17  ;;  %v10288_v17 = vld [vmem:[#allocation40_spill] sm:$0xff] }
 0x296   : > { %v3325_v51 = vsel %vm2201_vm3, %v10283_v42, %v3324_v10  ;;  %v2567_v60 = vadd.f32 %v2503_v33, %v2437_v16  ;;  %v10285_v45 = vrot.slane %v7606_v39, 1  ;;  %v746_v14 = vmax.f32 %v567_v4, 0.0 }
 0x297   : > { %v1592_v11 = vmul.f32 %v5786_v6, %v10284_v48  ;;  %v10286_v63 = vrot.slane %v7613_v19, 2  ;;  %v715_v21 = vmax.f32 %v632_v32, 0.0  ;;  %v7730_v59 = vmul.f32 %v7514_v2, %v5786_v6  ;;  %v7751_v32 = vld [vmem:[#allocation2 + $0x270] sm:$0xff] }
 0x298   : > { %v3937_v62 = vsel %vm1718_vm2, %v10285_v45, %v3936_v15  ;;  %v3049_v10 = vadd.f32 %v2843_v34, %v2567_v60  ;;  %v4656_v23 = vadd.f32 %v4497_v37, %v4174_v1  ;;  %v810_v27 = vmin.f32 %v746_v14, 6.0  ;;  %v10287_v34 = vld [vmem:[#allocation35_spill] sm:$0xff]  ;;  %10290 = vst [vmem:[#allocation42_spill] sm:$0xff] %v7751_v32 }
 0x299   : > { %v4419_v33 = vsel %vm2201_vm3, %v10286_v63, %v4418_v8  ;;  %v1829_v44 = vrot.slane %v1592_v11, 1  ;;  %v2075_v39 = vmul.f32 %v5794_v36, %v10284_v48  ;;  %v779_v35 = vmin.f32 %v715_v21, 6.0 }
 0x29a   : > { %v3531_v56 = vadd.f32 %v3325_v51, %v3049_v10  ;;  %v10070_v49 = vrot.slane %v7730_v59, 1  ;;  %v7737_v19 = vmul.f32 %v7514_v2, %v5794_v36  ;;  %v4726_v16 = vadd.f32 %v10287_v34, %v4656_v23 }
 0x29b   : > { %v1077_v46 = vrot.slane %v810_v27, 7  ;;  %v2312_v26 = vrot.slane %v2075_v39, 2  ;;  %v2536_v37 = vmul.f32 %v5841_v40, %v10288_v17  ;;  %v1031_v15 = vrot.slane %v779_v35, 7  ;;  %v10291_v39 = vld [vmem:[#allocation44_spill] sm:$0xff] }
 0x29c   : > { %v3661_v42 = vadd.f32 %v3597_v30, %v3531_v56  ;;  %v1831_v51 = vsel %vm1718_vm2, %v1829_v44, %v10070_v49  ;;  %v10069_v4 = vrot.slane %v7737_v19, 2  ;;  %v4790_v60 = vmax.f32 %v4726_v16, 0.0 }
 0x29d   : > { %v7749_v8 = vsel %vm990_vm1, %v1075_v57, %v1077_v46  ;;  %1274 = vst [vmem:[#allocation2 + $0x2f0] sm:$0x1] %v1077_v46  ;;  %v1987_v48 = vadd.f32 %v1831_v51, %v1440_v28  ;;  %v2688_v30 = vmul.f32 %v5838_v38, %v10288_v17  ;;  %v1032_v45 = vsel %vm990_vm1, %v1028_v22, %v1031_v15  ;;  %v7762_v57 = vld [vmem:[#allocation2 + $0x250] sm:$0xff] }
 0x29e   : > { %10289 = vst [vmem:[#allocation43_spill] sm:$0xff] %v7749_v8  ;;  %v4143_v1 = vadd.f32 %v3937_v62, %v3661_v42  ;;  %v2314_v3 = vsel %vm2201_vm3, %v2312_v26, %v10069_v4  ;;  %v7766_v14 = vmul.f32 %v7762_v57, %v5838_v38  ;;  %v4854_v28 = vmin.f32 %v4790_v60, 6.0 }
 0x29f   : > { %1272 = vst [vmem:[#allocation2 + $0x2e0] sm:$0xff] %v7749_v8  ;;  %v2470_v62 = vadd.f32 %v2314_v3, %v1987_v48  ;;  %v2924_v11 = vrot.slane %v2688_v30, 1  ;;  %v3170_v25 = vmul.f32 %v5850_v61, %v10288_v17  ;;  %v7775_v63 = vmul.f32 %v7762_v57, %v5850_v61  ;;  %v10292_v3 = vld [vmem:[#allocation37_spill] sm:$0xff] }
 0x2a0   : > { %1225 = vst.msk [vmem:[#allocation2 + $0x168] sm:$0xff] %vm817_vm4, %v1032_v45  ;;  %v4625_v10 = vadd.f32 %v4419_v33, %v4143_v1  ;;  %v10068_v22 = vrot.slane %v7766_v14, 1  ;;  %v3630_v21 = vmul.f32 %v5866_v55, %v7751_v32  ;;  %5079 = vmatmul.f32.gmra.mxu2 %v4854_v28  ;;  %v3782_v44 = vmul.f32 %v5869_v7, %v7751_v32 }
 0x2a1   : > { %1227 = vst.msk [vmem:[#allocation2 + $0x178] sm:$0x1] %vm1190_vm7, %v1031_v15  ;;  %v2600_v23 = vadd.f32 %v2536_v37, %v2470_v62  ;;  %v3406_v27 = vrot.slane %v3170_v25, 2  ;;  %v7783_v33 = vmul.f32 %v5869_v7, %v10291_v39  ;;  %v10067_v16 = vrot.slane %v7775_v63, 2 }
 0x2a2   : > { %v4695_v56 = vadd.f32 %v6885_v13, %v4625_v10  ;;  %v2926_v35 = vsel %vm1718_vm2, %v2924_v11, %v10068_v22  ;;  %v4264_v46 = vmul.f32 %v7287_v20, %v7751_v32  ;;  %v4018_v37 = vrot.slane %v3782_v44, 1 }
 0x2a3   : > { %v3082_v26 = vadd.f32 %v2926_v35, %v2600_v23  ;;  %v10066_v42 = vrot.slane %v7783_v33, 1  ;;  %v7795_v15 = vmul.f32 %v7287_v20, %v10291_v39  ;;  %v3408_v60 = vsel %vm2201_vm3, %v3406_v27, %v10067_v16 }
 0x2a4   : > { %v4759_v51 = vmax.f32 %v4695_v56, 0.0  ;;  %v4500_v48 = vrot.slane %v4264_v46, 2  ;;  %v1545_v28 = vmul.f32 %v7024_v43, %v10292_v3  ;;  %v7808_v11 = vmul.f32 %v7024_v43, %v7327_v9 }
 0x2a5   : > { %v3564_v30 = vadd.f32 %v3408_v60, %v3082_v26  ;;  %v4020_v1 = vsel %vm1718_vm2, %v4018_v37, %v10066_v42  ;;  %v10073_v45 = vrot.slane %v7795_v15, 2  ;;  %v2028_v25 = vmul.f32 %v7029_v0, %v10292_v3  ;;  %v10293_v26 = vld [vmem:[#allocation39_spill] sm:$0xff]  ;;  %v7823_v60 = vld [vmem:[#allocation2 + $0xf8] sm:$0xff]  ;;  %v7825_v42 = vld [vmem:[#allocation2 + $0x108] sm:$0xff] }
 0x2a6   : > { %v4823_v62 = vmin.f32 %v4759_v51, 6.0  ;;  %v7814_v10 = vmul.f32 %v7029_v0, %v7327_v9  ;;  %v1409_v27 = vmul.f32 %v7022_v47, %v10292_v3  ;;  %v1752_v44 = vrot.slane %v1545_v28, 1  ;;  %10294 = vst [vmem:[#allocation45_spill] sm:$0xff] %v7823_v60 }
 0x2a7   : > { %v3694_v23 = vadd.f32 %v3630_v21, %v3564_v30  ;;  %v10072_v56 = vrot.slane %v7808_v11, 1  ;;  %v2235_v35 = vrot.slane %v2028_v25, 2  ;;  %v2641_v37 = vmul.f32 %v7052_v24, %v10293_v26 }
 0x2a8   : > { %5463 = vmatmul.msk.f32.gmra.mxu3 %vm817_vm4, %v4823_v62  ;;  %v10071_v46 = vrot.slane %v7814_v10, 2  ;;  %v7829_v21 = vmul.f32 %v7052_v24, %v7577_v41  ;;  %v3123_v30 = vmul.f32 %v7055_v53, %v10293_v26  ;;  %v7835_v3 = vmul.f32 %v7055_v53, %v7577_v41 }
 0x2a9   : > { %v4176_v51 = vadd.f32 %v4020_v1, %v3694_v23  ;;  %v4502_v28 = vsel %vm2201_vm3, %v4500_v48, %v10073_v45  ;;  %v1754_v1 = vsel %vm1718_vm2, %v1752_v44, %v10072_v56  ;;  %v2505_v25 = vmul.f32 %v7037_v54, %v10293_v26  ;;  %v634_v56 = vpop.f32.mrf.mxu1 }
 0x2aa   : > { %10295 = vst [vmem:[#allocation44_spill] sm:$0xff] %v7829_v21  ;;  %v2237_v62 = vsel %vm2201_vm3, %v2235_v35, %v10071_v46  ;;  %v1956_v16 = vadd.f32 %v1754_v1, %v1409_v27  ;;  %v2847_v22 = vrot.slane %v2641_v37, 1  ;;  %v10082_v4 = vrot.slane %v7829_v21, 1  ;;  %v7859_v35 = vld [vmem:[%s9928_s3 + $0x18] ss:$0 sm:$0xff]  ;;  %v569_v46 = vpop.f32.mrf.mxu0 }
 0x2ab   : > { %10296 = vst [vmem:[#allocation37_spill] sm:$0xff] %v7835_v3  ;;  %v4658_v23 = vadd.f32 %v4502_v28, %v4176_v51  ;;  %v3735_v48 = vmul.f32 %v7092_v18, %v7823_v60  ;;  %v7854_v44 = vmul.f32 %v7092_v18, %v7825_v42  ;;  %v4217_v27 = vmul.f32 %v7859_v35, %v7823_v60 }
 0x2ac   : > { %v2439_v51 = vadd.f32 %v2237_v62, %v1956_v16  ;;  %v3329_v28 = vrot.slane %v3123_v30, 2  ;;  %v7866_v1 = vmul.f32 %v7859_v35, %v7825_v42  ;;  %v2849_v45 = vsel %vm1718_vm2, %v2847_v22, %v10082_v4 }
 0x2ad   : > { %v4728_v37 = vadd.f32 %v10287_v34, %v4658_v23  ;;  %v3599_v49 = vmul.f32 %v7089_v29, %v7823_v60  ;;  %v3942_v8 = vrot.slane %v7854_v44, 1  ;;  %v10297_v16 = vrot.slane %v7835_v3, 2  ;;  %v10315_v44 = vld [vmem:[#allocation42_spill] sm:$0xff] }
 0x2ae   : > { %v2569_v32 = vadd.f32 %v2505_v25, %v2439_v51  ;;  %v3941_v62 = vrot.slane %v3735_v48, 1  ;;  %v4423_v23 = vrot.slane %v4217_v27, 2  ;;  %v10086_v34 = vrot.slane %v7866_v1, 2 }
 0x2af   : > { %v4792_v26 = vmax.f32 %v4728_v37, 0.0  ;;  %v3331_v30 = vsel %vm2201_vm3, %v3329_v28, %v10297_v16  ;;  %v570_v17 = vadd.f32 %v569_v46, %v5744_v50  ;;  %v635_v21 = vadd.f32 %v634_v56, %v6280_v5  ;;  %v10298_v37 = vld [vmem:[#allocation41_spill] sm:$0xff] }
 0x2b0   : > { %v3051_v4 = vadd.f32 %v2849_v45, %v2569_v32  ;;  %v3943_v60 = vsel %vm1718_vm2, %v3941_v62, %v3942_v8  ;;  %v1596_v25 = vmul.f32 %v5786_v6, %v10298_v37  ;;  %v1442_v48 = vmul.f32 %v7514_v2, %v5809_v52  ;;  %v7898_v2 = vld [vmem:[#allocation2 + $0x290] sm:$0x3] }
 0x2b1   : > { %v4856_v22 = vmin.f32 %v4792_v26, 6.0  ;;  %v748_v51 = vmax.f32 %v570_v17, 0.0  ;;  %v717_v3 = vmax.f32 %v635_v21, 0.0  ;;  %v2079_v27 = vmul.f32 %v5794_v36, %v10298_v37 }
 0x2b2   : > { %v3533_v50 = vadd.f32 %v3331_v30, %v3051_v4  ;;  %v1835_v56 = vrot.slane %v1596_v25, 1  ;;  %v2692_v32 = vmul.f32 %v5838_v38, %v7647_v58  ;;  %v3174_v45 = vmul.f32 %v5850_v61, %v7647_v58 }
 0x2b3   : > { %5082 = vmatmul.f32.gmra.mxu2 %v4856_v22  ;;  %v4425_v17 = vsel %vm2201_vm3, %v4423_v23, %v10086_v34  ;;  %v812_v46 = vmin.f32 %v748_v51, 6.0  ;;  %v7896_v26 = vmin.f32 %v717_v3, 6.0  ;;  %v2318_v21 = vrot.slane %v2079_v27, 2  ;;  %v10301_v27 = vld [vmem:[#allocation36_spill] sm:$0xff] }
 0x2b4   : > { %v3663_v28 = vadd.f32 %v3599_v49, %v3533_v50  ;;  %v10299_v4 = vrot.slane %v7730_v59, 1  ;;  %v2538_v30 = vmul.f32 %v7762_v57, %v5841_v40  ;;  %v2930_v62 = vrot.slane %v2692_v32, 1 }
 0x2b5   : > { %v1081_v22 = vrot.slane %v812_v46, 7  ;;  %v1034_v37 = vrot.slane %v7896_v26, 7  ;;  %v3412_v23 = vrot.slane %v3174_v45, 2  ;;  %v10300_v3 = vrot.slane %v7737_v19, 2 }
 0x2b6   : > { %v1836_v16 = vsel %vm1718_vm2, %v10299_v4, %v1835_v56  ;;  %v4145_v51 = vadd.f32 %v3943_v60, %v3663_v28  ;;  %v3632_v49 = vmul.f32 %v5866_v55, %v10291_v39  ;;  %v3786_v59 = vmul.f32 %v5869_v7, %v7898_v2 }
 0x2b7   : > { %v1989_v25 = vadd.f32 %v1836_v16, %v1442_v48  ;;  %v2319_v34 = vsel %vm2201_vm3, %v10300_v3, %v2318_v21  ;;  %v10302_v50 = vrot.slane %v10301_v27, 7  ;;  %1276 = vst [vmem:[#allocation2 + $0x300] sm:$0xfe] %v1081_v22  ;;  %v10304_v48 = vrot.slane %v7766_v14, 1 }
 0x2b8   : > { %v4268_v19 = vmul.f32 %v7287_v20, %v7898_v2  ;;  %v4627_v45 = vadd.f32 %v4425_v17, %v4145_v51  ;;  %v4024_v39 = vrot.slane %v3786_v59, 1  ;;  %v1549_v46 = vmul.f32 %v7024_v43, %v7438_v12  ;;  %1229 = vst.msk [vmem:[#allocation2 + $0x188] sm:$0xfe] %vm1185_vm5, %v1034_v37 }
 0x2b9   : > { %v7916_v56 = vsel %vm990_vm1, %v1081_v22, %v10302_v50  ;;  %v2472_v32 = vadd.f32 %v2319_v34, %v1989_v25  ;;  %v2931_v60 = vsel %vm1718_vm2, %v10304_v48, %v2930_v62  ;;  %v2032_v21 = vmul.f32 %v7029_v0, %v7438_v12  ;;  %v7939_v25 = vld [vmem:[#allocation2 + $0x118] sm:$0x3]  ;;  %v637_v48 = vpop.f32.mrf.mxu1 }
 0x2ba   : > { %10303 = vst [vmem:[#allocation41_spill] sm:$0xff] %v7916_v56  ;;  %v10305_v14 = vrot.slane %v7775_v63, 2  ;;  %v4506_v20 = vrot.slane %v4268_v19, 2  ;;  %v2645_v17 = vmul.f32 %v7052_v24, %v7685_v31  ;;  %v4697_v4 = vadd.f32 %v6885_v13, %v4627_v45 }
 0x2bb   : > { %1278 = vst [vmem:[#allocation2 + $0x310] sm:$0xff] %v7916_v56  ;;  %v2602_v34 = vadd.f32 %v2538_v30, %v2472_v32  ;;  %v1411_v16 = vmul.f32 %v7022_v47, %v7327_v9  ;;  %v1757_v62 = vrot.slane %v1549_v46, 1  ;;  %v2240_v12 = vrot.slane %v2032_v21, 2 }
 0x2bc   : > { %v3413_v28 = vsel %vm2201_vm3, %v10305_v14, %v3412_v23  ;;  %v2507_v30 = vmul.f32 %v7037_v54, %v7577_v41  ;;  %v2852_v63 = vrot.slane %v2645_v17, 1  ;;  %v3127_v23 = vmul.f32 %v7055_v53, %v7685_v31 }
 0x2bd   : > { %v3084_v22 = vadd.f32 %v2931_v60, %v2602_v34  ;;  %v4761_v51 = vmax.f32 %v4697_v4, 0.0  ;;  %v10306_v3 = vrot.slane %v7783_v33, 1  ;;  %v10307_v27 = vrot.slane %v7795_v15, 2  ;;  %v10312_v4 = vld [vmem:[#allocation37_spill] sm:$0xff] }
 0x2be   : > { %v10308_v50 = vrot.slane %v7808_v11, 1  ;;  %v10309_v45 = vrot.slane %v7814_v10, 2  ;;  %v3334_v21 = vrot.slane %v3127_v23, 2  ;;  %v3601_v33 = vmul.f32 %v7089_v29, %v7825_v42  ;;  %v10314_v23 = vld [vmem:[#allocation40_spill] sm:$0xff] }
 0x2bf   : > { %v4025_v59 = vsel %vm1718_vm2, %v10306_v3, %v4024_v39  ;;  %v4507_v9 = vsel %vm2201_vm3, %v10307_v27, %v4506_v20  ;;  %v3566_v60 = vadd.f32 %v3413_v28, %v3084_v22  ;;  %v4825_v34 = vmin.f32 %v4761_v51, 6.0  ;;  %v10310_v20 = vld [vmem:[#allocation44_spill] sm:$0xff] }
 0x2c0   : > { %v1758_v32 = vsel %vm1718_vm2, %v10308_v50, %v1757_v62  ;;  %v2241_v46 = vsel %vm2201_vm3, %v10309_v45, %v2240_v12  ;;  %v3739_v15 = vmul.f32 %v7092_v18, %v7939_v25  ;;  %v4221_v11 = vmul.f32 %v7859_v35, %v7939_v25 }
 0x2c1   : > { %v1958_v19 = vadd.f32 %v1758_v32, %v1411_v16  ;;  %v3696_v39 = vadd.f32 %v3632_v49, %v3566_v60  ;;  %v10311_v28 = vrot.slane %v10310_v20, 1  ;;  %v638_v10 = vadd.f32 %v637_v48, %v6280_v5  ;;  %5464 = vmatmul.msk.f32.gmra.mxu3 %vm817_vm4, %v4825_v34 }
 0x2c2   : > { %v10313_v16 = vrot.slane %v10312_v4, 2  ;;  %v3946_v12 = vrot.slane %v3739_v15, 1  ;;  %v4428_v22 = vrot.slane %v4221_v11, 2  ;;  %v1598_v51 = vmul.f32 %v5786_v6, %v10314_v23  ;;  %v10316_v15 = vld [vmem:[#allocation35_spill] sm:$0xff] }
 0x2c3   : > { %v2441_v14 = vadd.f32 %v2241_v46, %v1958_v19  ;;  %v2853_v17 = vsel %vm1718_vm2, %v10311_v28, %v2852_v63  ;;  %v4178_v3 = vadd.f32 %v4025_v59, %v3696_v39  ;;  %v719_v27 = vmax.f32 %v638_v10, 0.0 }
 0x2c4   : > { %v3335_v62 = vsel %vm2201_vm3, %v10313_v16, %v3334_v21  ;;  %v7975_v50 = vmul.f32 %v7762_v57, %v5786_v6  ;;  %v3947_v63 = vsel %vm1718_vm2, %v3942_v8, %v3946_v12  ;;  %v1444_v32 = vmul.f32 %v5809_v52, %v10314_v23 }
 0x2c5   : > { %v2571_v49 = vadd.f32 %v2507_v30, %v2441_v14  ;;  %v1839_v48 = vrot.slane %v1598_v51, 1  ;;  %v2081_v60 = vmul.f32 %v5794_v36, %v10314_v23  ;;  %v4660_v19 = vadd.f32 %v4507_v9, %v4178_v3  ;;  %v8008_v23 = vld [vmem:[#allocation2 + $0x2a0] sm:$0xff] }
 0x2c6   : > { %v783_v59 = vmin.f32 %v719_v27, 6.0  ;;  %v10092_v30 = vrot.slane %v7975_v50, 1  ;;  %v7987_v46 = vmul.f32 %v7762_v57, %v5794_v36  ;;  %v2540_v8 = vmul.f32 %v5841_v40, %v10315_v44  ;;  %10317 = vst [vmem:[#allocation36_spill] sm:$0xff] %v8008_v23 }
 0x2c7   : > { %v3053_v45 = vadd.f32 %v2853_v17, %v2571_v49  ;;  %v2322_v21 = vrot.slane %v2081_v60, 2  ;;  %v2694_v34 = vmul.f32 %v5838_v38, %v10315_v44  ;;  %v4730_v11 = vadd.f32 %v10316_v15, %v4660_v19  ;;  %v7998_v17 = vld [vmem:[#allocation2 + $0x280] sm:$0xff] }
 0x2c8   : > { %v1037_v14 = vrot.slane %v783_v59, 7  ;;  %v1841_v9 = vsel %vm1718_vm2, %v1839_v48, %v10092_v30  ;;  %v10089_v28 = vrot.slane %v7987_v46, 2  ;;  %v8002_v10 = vmul.f32 %v7998_v17, %v5838_v38 }
 0x2c9   : > { %v3535_v39 = vadd.f32 %v3335_v62, %v3053_v45  ;;  %v1991_v20 = vadd.f32 %v1841_v9, %v1444_v32  ;;  %v2934_v4 = vrot.slane %v2694_v34, 1  ;;  %v4794_v16 = vmax.f32 %v4730_v11, 0.0  ;;  %v10319_v45 = vld [vmem:[#allocation38_spill] sm:$0xff] }
 0x2ca   : > { %v1038_v62 = vsel %vm990_vm1, %v1034_v37, %v1037_v14  ;;  %1233 = vst.msk [vmem:[#allocation2 + $0x1a8] sm:$0x1] %vm1190_vm7, %v1037_v14  ;;  %v3176_v51 = vmul.f32 %v5850_v61, %v10315_v44  ;;  %v10318_v3 = vrot.slane %v7866_v1, 2  ;;  %v10088_v26 = vrot.slane %v8002_v10, 1 }
 0x2cb   : > { %v3665_v12 = vadd.f32 %v3601_v33, %v3535_v39  ;;  %1231 = vst.msk [vmem:[#allocation2 + $0x198] sm:$0xff] %vm817_vm4, %v1038_v62  ;;  %v2324_v33 = vsel %vm2201_vm3, %v2322_v21, %v10089_v28  ;;  %v8022_v37 = vmul.f32 %v7998_v17, %v5850_v61  ;;  %v4858_v27 = vmin.f32 %v4794_v16, 6.0 }
 0x2cc   : > { %v4429_v49 = vsel %vm2201_vm3, %v10318_v3, %v4428_v22  ;;  %v2474_v48 = vadd.f32 %v2324_v33, %v1991_v20  ;;  %v3416_v60 = vrot.slane %v3176_v51, 2  ;;  %v2936_v1 = vsel %vm1718_vm2, %v2934_v4, %v10088_v26  ;;  %v8076_v26 = vld [vmem:[#allocation2 + $0x138] sm:$0xff] }
 0x2cd   : > { %v4147_v32 = vadd.f32 %v3947_v63, %v3665_v12  ;;  %v10087_v22 = vrot.slane %v8022_v37, 2  ;;  %v3788_v19 = vmul.f32 %v5869_v7, %v8008_v23  ;;  %v8032_v59 = vmul.f32 %v5869_v7, %v10319_v45  ;;  %5085 = vmatmul.f32.gmra.mxu2 %v4858_v27  ;;  %v8037_v63 = vld [vmem:[%s9928_s3 + $0x10] ss:$0 sm:$0xff]  ;;  %v10320_v12 = vld [vmem:[#allocation39_spill] sm:$0xff] }
 0x2ce   : > { %v2604_v34 = vadd.f32 %v2540_v8, %v2474_v48  ;;  %v4270_v11 = vmul.f32 %v8037_v63, %v8008_v23  ;;  %v8043_v39 = vmul.f32 %v8037_v63, %v10319_v45  ;;  %v3634_v14 = vmul.f32 %v5866_v55, %v8008_v23 }
 0x2cf   : > { %v4629_v21 = vadd.f32 %v4429_v49, %v4147_v32  ;;  %v4028_v9 = vrot.slane %v3788_v19, 1  ;;  %v10091_v20 = vrot.slane %v8032_v59, 1  ;;  %v3418_v16 = vsel %vm2201_vm3, %v3416_v60, %v10087_v22 }
 0x2d0   : > { %v3086_v4 = vadd.f32 %v2936_v1, %v2604_v34  ;;  %v1413_v62 = vmul.f32 %v7022_v47, %v10320_v12  ;;  %v4510_v51 = vrot.slane %v4270_v11, 2  ;;  %v1551_v3 = vmul.f32 %v7024_v43, %v10320_v12 }
 0x2d1   : > { %v4699_v8 = vadd.f32 %v6885_v13, %v4629_v21  ;;  %v8058_v49 = vmul.f32 %v7024_v43, %v7577_v41  ;;  %v2034_v33 = vmul.f32 %v7029_v0, %v10320_v12  ;;  %v10099_v48 = vrot.slane %v8043_v39, 2 }
 0x2d2   : > { %v3568_v32 = vadd.f32 %v3418_v16, %v3086_v4  ;;  %v8065_v60 = vmul.f32 %v7029_v0, %v7577_v41  ;;  %v4030_v1 = vsel %vm1718_vm2, %v4028_v9, %v10091_v20  ;;  %v1762_v19 = vrot.slane %v1551_v3, 1  ;;  %v8074_v16 = vld [vmem:[#allocation2 + $0x128] sm:$0xff] }
 0x2d3   : > { %v4763_v27 = vmax.f32 %v4699_v8, 0.0  ;;  %v10090_v21 = vrot.slane %v8058_v49, 1  ;;  %v2245_v34 = vrot.slane %v2034_v33, 2  ;;  %v10321_v8 = vld [vmem:[#allocation45_spill] sm:$0xff]  ;;  %10322 = vst [vmem:[#allocation44_spill] sm:$0xff] %v8074_v16  ;;  %v8083_v9 = vmul.f32 %v7052_v24, %v7825_v42 }
 0x2d4   : > { %v3698_v22 = vadd.f32 %v3634_v14, %v3568_v32  ;;  %v10098_v12 = vrot.slane %v8065_v60, 2  ;;  %v2647_v4 = vmul.f32 %v7052_v24, %v10321_v8  ;;  %v3129_v14 = vmul.f32 %v7055_v53, %v10321_v8 }
 0x2d5   : > { %v4827_v11 = vmin.f32 %v4763_v27, 6.0  ;;  %v1764_v28 = vsel %vm1718_vm2, %v1762_v19, %v10090_v21  ;;  %v8089_v3 = vmul.f32 %v7055_v53, %v7825_v42  ;;  %v4512_v27 = vsel %vm2201_vm3, %v4510_v51, %v10099_v48 }
 0x2d6   : > { %v4180_v33 = vadd.f32 %v4030_v1, %v3698_v22  ;;  %v1960_v32 = vadd.f32 %v1764_v28, %v1413_v62  ;;  %v2509_v19 = vmul.f32 %v7037_v54, %v10321_v8  ;;  %v2247_v21 = vsel %vm2201_vm3, %v2245_v34, %v10098_v12  ;;  %v640_v62 = vpop.f32.mrf.mxu1 }
 0x2d7   : > { %5465 = vmatmul.msk.f32.gmra.mxu3 %vm817_vm4, %v4827_v11  ;;  %v2857_v20 = vrot.slane %v2647_v4, 1  ;;  %v10097_v30 = vrot.slane %v8083_v9, 1  ;;  %v10102_v56 = vrot.slane %v8089_v3, 2  ;;  %v3741_v22 = vmul.f32 %v7092_v18, %v8074_v16 }
 0x2d8   : > { %v4662_v23 = vadd.f32 %v4512_v27, %v4180_v33  ;;  %v2443_v11 = vadd.f32 %v2247_v21, %v1960_v32  ;;  %v8106_v28 = vmul.f32 %v7092_v18, %v8076_v26  ;;  %v3339_v1 = vrot.slane %v3129_v14, 2 }
 0x2d9   : > { %v2859_v51 = vsel %vm1718_vm2, %v2857_v20, %v10097_v30  ;;  %v4223_v34 = vmul.f32 %v7859_v35, %v8074_v16  ;;  %v8115_v4 = vmul.f32 %v7859_v35, %v8076_v26  ;;  %v3603_v20 = vmul.f32 %v7089_v29, %v8074_v16 }
 0x2da   : > { %v4732_v21 = vadd.f32 %v10316_v15, %v4662_v23  ;;  %v2573_v33 = vadd.f32 %v2509_v19, %v2443_v11  ;;  %v10103_v27 = vrot.slane %v8106_v28, 1  ;;  %v3341_v32 = vsel %vm2201_vm3, %v3339_v1, %v10102_v56  ;;  %v8129_v11 = vld [vmem:[#allocation2 + $0x2c0] sm:$0x3] }
 0x2db   : > { %v3951_v14 = vrot.slane %v3741_v22, 1  ;;  %v641_v30 = vadd.f32 %v640_v62, %v6280_v5  ;;  %v4433_v8 = vrot.slane %v4223_v34, 2  ;;  %v4434_v44 = vrot.slane %v8115_v4, 2 }
 0x2dc   : > { %v4796_v12 = vmax.f32 %v4732_v21, 0.0  ;;  %v3055_v48 = vadd.f32 %v2859_v51, %v2573_v33  ;;  %v1602_v1 = vmul.f32 %v5786_v6, %v7647_v58  ;;  %v2085_v22 = vmul.f32 %v5794_v36, %v7647_v58 }
 0x2dd   : > { %v3953_v23 = vsel %vm1718_vm2, %v3951_v14, %v10103_v27  ;;  %v721_v19 = vmax.f32 %v641_v30, 0.0  ;;  %v1446_v51 = vmul.f32 %v7762_v57, %v5809_v52  ;;  %v2698_v34 = vmul.f32 %v5838_v38, %v7898_v2 }
 0x2de   : > { %v4860_v56 = vmin.f32 %v4796_v12, 6.0  ;;  %v3537_v62 = vadd.f32 %v3341_v32, %v3055_v48  ;;  %v1845_v33 = vrot.slane %v1602_v1, 1  ;;  %v2328_v30 = vrot.slane %v2085_v22, 2 }
 0x2df   : > { %v8139_v21 = vmin.f32 %v721_v19, 6.0  ;;  %v3180_v14 = vmul.f32 %v5850_v61, %v7898_v2  ;;  %v4435_v58 = vsel %vm2201_vm3, %v4433_v8, %v4434_v44  ;;  %v2940_v48 = vrot.slane %v2698_v34, 1 }
 0x2e0   : > { %5088 = vmatmul.f32.gmra.mxu2 %v4860_v56  ;;  %v3667_v27 = vadd.f32 %v3603_v20, %v3537_v62  ;;  %v3792_v57 = vmul.f32 %v5869_v7, %v8129_v11  ;;  %v10323_v32 = vrot.slane %v7975_v50, 1  ;;  %v2542_v1 = vmul.f32 %v7998_v17, %v5841_v40 }
 0x2e1   : > { %v1040_v12 = vrot.slane %v8139_v21, 7  ;;  %v3422_v22 = vrot.slane %v3180_v14, 2  ;;  %v10324_v62 = vrot.slane %v7987_v46, 2  ;;  %v3636_v34 = vmul.f32 %v5866_v55, %v10319_v45 }
 0x2e2   : > { %v1846_v19 = vsel %vm1718_vm2, %v10323_v32, %v1845_v33  ;;  %v4149_v56 = vadd.f32 %v3953_v23, %v3667_v27  ;;  %v10325_v50 = vrot.slane %v8002_v10, 1  ;;  %v4034_v32 = vrot.slane %v3792_v57, 1 }
 0x2e3   : > { %v1993_v20 = vadd.f32 %v1846_v19, %v1446_v51  ;;  %v2329_v8 = vsel %vm2201_vm3, %v10324_v62, %v2328_v30  ;;  %1235 = vst.msk [vmem:[#allocation2 + $0x1b8] sm:$0xfe] %vm1185_vm5, %v1040_v12  ;;  %v4274_v27 = vmul.f32 %v8037_v63, %v8129_v11  ;;  %v1555_v46 = vmul.f32 %v7024_v43, %v7685_v31 }
 0x2e4   : > { %v2941_v33 = vsel %vm1718_vm2, %v10325_v50, %v2940_v48  ;;  %v4631_v23 = vadd.f32 %v4435_v58, %v4149_v56  ;;  %v10326_v30 = vrot.slane %v8022_v37, 2  ;;  %v2038_v14 = vmul.f32 %v7029_v0, %v7685_v31  ;;  %v8179_v58 = vld [vmem:[#allocation2 + $0x148] sm:$0x3] }
 0x2e5   : > { %v2476_v51 = vadd.f32 %v2329_v8, %v1993_v20  ;;  %v4516_v19 = vrot.slane %v4274_v27, 2  ;;  %v1415_v10 = vmul.f32 %v7022_v47, %v7577_v41  ;;  %v1767_v48 = vrot.slane %v1555_v46, 1 }
 0x2e6   : > { %v3423_v45 = vsel %vm2201_vm3, %v10326_v30, %v3422_v22  ;;  %v2651_v57 = vmul.f32 %v7052_v24, %v7939_v25  ;;  %v4701_v62 = vadd.f32 %v6885_v13, %v4631_v23  ;;  %v2250_v56 = vrot.slane %v2038_v14, 2  ;;  %v643_v14 = vpop.f32.mrf.mxu1 }
 0x2e7   : > { %v2606_v50 = vadd.f32 %v2542_v1, %v2476_v51  ;;  %v3133_v37 = vmul.f32 %v7055_v53, %v7939_v25  ;;  %v10327_v22 = vrot.slane %v8032_v59, 1  ;;  %v10328_v20 = vrot.slane %v8058_v49, 1 }
 0x2e8   : > { %v2511_v8 = vmul.f32 %v7037_v54, %v7825_v42  ;;  %v2862_v27 = vrot.slane %v2651_v57, 1  ;;  %v4765_v46 = vmax.f32 %v4701_v62, 0.0  ;;  %v10329_v23 = vrot.slane %v8043_v39, 2 }
 0x2e9   : > { %v4035_v31 = vsel %vm1718_vm2, %v10327_v22, %v4034_v32  ;;  %v1768_v41 = vsel %vm1718_vm2, %v10328_v20, %v1767_v48  ;;  %v3088_v1 = vadd.f32 %v2941_v33, %v2606_v50  ;;  %v10330_v59 = vrot.slane %v8065_v60, 2 }
 0x2ea   : > { %v4517_v51 = vsel %vm2201_vm3, %v10329_v23, %v4516_v19  ;;  %v1962_v30 = vadd.f32 %v1768_v41, %v1415_v10  ;;  %v3344_v22 = vrot.slane %v3133_v37, 2  ;;  %v3745_v49 = vmul.f32 %v7092_v18, %v8179_v58 }
 0x2eb   : > { %v2251_v32 = vsel %vm2201_vm3, %v10330_v59, %v2250_v56  ;;  %v4227_v48 = vmul.f32 %v7859_v35, %v8179_v58  ;;  %v4829_v57 = vmin.f32 %v4765_v46, 6.0  ;;  %v3570_v62 = vadd.f32 %v3423_v45, %v3088_v1  ;;  %v10333_v46 = vld [vmem:[#allocation42_spill] sm:$0xff] }
 0x2ec   : > { %v2445_v33 = vadd.f32 %v2251_v32, %v1962_v30  ;;  %v3605_v39 = vmul.f32 %v7089_v29, %v8076_v26  ;;  %v10331_v19 = vrot.slane %v8083_v9, 1  ;;  %v10332_v60 = vrot.slane %v8089_v3, 2 }
 0x2ed   : > { %v3956_v56 = vrot.slane %v3745_v49, 1  ;;  %v644_v37 = vadd.f32 %v643_v14, %v6280_v5  ;;  %5466 = vmatmul.msk.f32.gmra.mxu3 %vm817_vm4, %v4829_v57  ;;  %v3700_v20 = vadd.f32 %v3636_v34, %v3570_v62  ;;  %v4438_v45 = vrot.slane %v4227_v48, 2  ;;  %v10335_v49 = vld [vmem:[#allocation36_spill] sm:$0xff] }
 0x2ee   : > { %v2863_v10 = vsel %vm1718_vm2, %v10331_v19, %v2862_v27  ;;  %v3345_v50 = vsel %vm2201_vm3, %v10332_v60, %v3344_v22  ;;  %v2575_v41 = vadd.f32 %v2511_v8, %v2445_v33  ;;  %v1604_v1 = vmul.f32 %v5786_v6, %v10333_v46 }
 0x2ef   : > { %v10334_v23 = vrot.slane %v8106_v28, 1  ;;  %v723_v27 = vmax.f32 %v644_v37, 0.0  ;;  %v1448_v3 = vmul.f32 %v5809_v52, %v10333_v46  ;;  %v8220_v30 = vmul.f32 %v7998_v17, %v5786_v6 }
 0x2f0   : > { %v4182_v14 = vadd.f32 %v4035_v31, %v3700_v20  ;;  %v3057_v59 = vadd.f32 %v2863_v10, %v2575_v41  ;;  %v1849_v34 = vrot.slane %v1604_v1, 1  ;;  %v2087_v8 = vmul.f32 %v5794_v36, %v10333_v46  ;;  %v8244_v20 = vld [vmem:[#allocation2 + $0x2d0] sm:$0xff] }
 0x2f1   : > { %v3957_v9 = vsel %vm1718_vm2, %v10334_v23, %v3956_v56  ;;  %v787_v32 = vmin.f32 %v723_v27, 6.0  ;;  %v10109_v22 = vrot.slane %v8220_v30, 1  ;;  %v8227_v28 = vmul.f32 %v7998_v17, %v5794_v36  ;;  %v8237_v56 = vld [vmem:[#allocation2 + $0x2b0] sm:$0xff]  ;;  %10336 = vst [vmem:[#allocation37_spill] sm:$0xff] %v8244_v20 }
 0x2f2   : > { %v2544_v48 = vmul.f32 %v5841_v40, %v10335_v49  ;;  %v4664_v57 = vadd.f32 %v4517_v51, %v4182_v14  ;;  %v3539_v62 = vadd.f32 %v3345_v50, %v3057_v59  ;;  %v2332_v33 = vrot.slane %v2087_v8, 2 }
 0x2f3   : > { %v2700_v31 = vmul.f32 %v5838_v38, %v10335_v49  ;;  %v1043_v19 = vrot.slane %v787_v32, 7  ;;  %v1851_v10 = vsel %vm1718_vm2, %v1849_v34, %v10109_v22  ;;  %v10108_v60 = vrot.slane %v8227_v28, 2 }
 0x2f4   : > { %v8241_v37 = vmul.f32 %v8237_v56, %v5838_v38  ;;  %v4734_v51 = vadd.f32 %v10316_v15, %v4664_v57  ;;  %v3669_v50 = vadd.f32 %v3605_v39, %v3539_v62  ;;  %v1995_v41 = vadd.f32 %v1851_v10, %v1448_v3 }
 0x2f5   : > { %v2944_v46 = vrot.slane %v2700_v31, 1  ;;  %v1044_v1 = vsel %vm990_vm1, %v1040_v12, %v1043_v19  ;;  %1239 = vst.msk [vmem:[#allocation2 + $0x1d8] sm:$0x1] %vm1190_vm7, %v1043_v19  ;;  %v2334_v23 = vsel %vm2201_vm3, %v2332_v33, %v10108_v60  ;;  %v3182_v14 = vmul.f32 %v5850_v61, %v10335_v49  ;;  %v10337_v31 = vld [vmem:[#allocation43_spill] sm:$0xff] }
 0x2f6   : > { %v10107_v27 = vrot.slane %v8241_v37, 1  ;;  %v4798_v39 = vmax.f32 %v4734_v51, 0.0  ;;  %v4151_v59 = vadd.f32 %v3957_v9, %v3669_v50  ;;  %1237 = vst.msk [vmem:[#allocation2 + $0x1c8] sm:$0xff] %vm817_vm4, %v1044_v1  ;;  %v2478_v3 = vadd.f32 %v2334_v23, %v1995_v41 }
 0x2f7   : > { %v8259_v21 = vmul.f32 %v8237_v56, %v5850_v61  ;;  %v4439_v12 = vsel %vm2201_vm3, %v4434_v44, %v4438_v45  ;;  %v3426_v8 = vrot.slane %v3182_v14, 2  ;;  %v3794_v32 = vmul.f32 %v5869_v7, %v8244_v20 }
 0x2f8   : > { %v2946_v34 = vsel %vm1718_vm2, %v2944_v46, %v10107_v27  ;;  %v4862_v9 = vmin.f32 %v4798_v39, 6.0  ;;  %v4633_v57 = vadd.f32 %v4439_v12, %v4151_v59  ;;  %v2608_v62 = vadd.f32 %v2544_v48, %v2478_v3  ;;  %v10338_v46 = vld [vmem:[#allocation45_spill] sm:$0xff] }
 0x2f9   : > { %v10105_v33 = vrot.slane %v8259_v21, 2  ;;  %v8272_v19 = vmul.f32 %v5869_v7, %v10337_v31  ;;  %v4038_v4 = vrot.slane %v3794_v32, 1  ;;  %v4276_v44 = vmul.f32 %v8037_v63, %v8244_v20 }
 0x2fa   : > { %v8278_v45 = vmul.f32 %v8037_v63, %v10337_v31  ;;  %5091 = vmatmul.f32.gmra.mxu2 %v4862_v9  ;;  %v4703_v10 = vadd.f32 %v6885_v13, %v4633_v57  ;;  %v3090_v51 = vadd.f32 %v2946_v34, %v2608_v62  ;;  %v3638_v48 = vmul.f32 %v5866_v55, %v8244_v20 }
 0x2fb   : > { %v3428_v50 = vsel %vm2201_vm3, %v3426_v8, %v10105_v33  ;;  %v10104_v41 = vrot.slane %v8272_v19, 1  ;;  %v1417_v1 = vmul.f32 %v7022_v47, %v10338_v46  ;;  %v1557_v23 = vmul.f32 %v7024_v43, %v10338_v46 }
 0x2fc   : > { %v4767_v14 = vmax.f32 %v4703_v10, 0.0  ;;  %v3572_v39 = vadd.f32 %v3428_v50, %v3090_v51  ;;  %v8293_v59 = vmul.f32 %v7024_v43, %v7825_v42  ;;  %v2040_v3 = vmul.f32 %v7029_v0, %v10338_v46 }
 0x2fd   : > { %v4040_v12 = vsel %vm1718_vm2, %v4038_v4, %v10104_v41  ;;  %v4520_v34 = vrot.slane %v4276_v44, 2  ;;  %v10113_v8 = vrot.slane %v8278_v45, 2  ;;  %v8303_v32 = vmul.f32 %v7029_v0, %v7825_v42  ;;  %v8314_v41 = vld [vmem:[#allocation2 + $0x158] sm:$0xff] }
 0x2fe   : > { %v4831_v9 = vmin.f32 %v4767_v14, 6.0  ;;  %v3702_v57 = vadd.f32 %v3638_v48, %v3572_v39  ;;  %v1772_v62 = vrot.slane %v1557_v23, 1  ;;  %v10106_v10 = vrot.slane %v8293_v59, 1  ;;  %10339 = vst [vmem:[#allocation40_spill] sm:$0xff] %v8314_v41  ;;  %v8316_v14 = vld [vmem:[#allocation2 + $0x168] sm:$0xff] }
 0x2ff   : > { %v2255_v51 = vrot.slane %v2040_v3, 2  ;;  %v10114_v50 = vrot.slane %v8303_v32, 2  ;;  %v2653_v46 = vmul.f32 %v7052_v24, %v8074_v16  ;;  %v8311_v4 = vmul.f32 %v7052_v24, %v8076_v26 }
 0x300   : > { %5467 = vmatmul.msk.f32.gmra.mxu3 %vm817_vm4, %v4831_v9  ;;  %v4184_v44 = vadd.f32 %v4040_v12, %v3702_v57  ;;  %v1774_v48 = vsel %vm1718_vm2, %v1772_v62, %v10106_v10  ;;  %v3135_v23 = vmul.f32 %v7055_v53, %v8074_v16  ;;  %v8325_v39 = vmul.f32 %v7055_v53, %v8076_v26 }
 0x301   : > { %v4522_v3 = vsel %vm2201_vm3, %v4520_v34, %v10113_v8  ;;  %v1964_v12 = vadd.f32 %v1774_v48, %v1417_v1  ;;  %v2513_v9 = vmul.f32 %v7037_v54, %v8074_v16  ;;  %v10112_v57 = vrot.slane %v8311_v4, 1  ;;  %v646_v34 = vpop.f32.mrf.mxu1 }
 0x302   : > { %v4666_v33 = vadd.f32 %v4522_v3, %v4184_v44  ;;  %v2257_v62 = vsel %vm2201_vm3, %v2255_v51, %v10114_v50  ;;  %v2867_v10 = vrot.slane %v2653_v46, 1  ;;  %v10118_v27 = vrot.slane %v8325_v39, 2 }
 0x303   : > { %v2447_v60 = vadd.f32 %v2257_v62, %v1964_v12  ;;  %v3349_v22 = vrot.slane %v3135_v23, 2  ;;  %v3747_v20 = vmul.f32 %v7092_v18, %v8314_v41  ;;  %v8341_v1 = vmul.f32 %v7092_v18, %v8316_v14 }
 0x304   : > { %v4736_v48 = vadd.f32 %v10316_v15, %v4666_v33  ;;  %v2869_v44 = vsel %vm1718_vm2, %v2867_v10, %v10112_v57  ;;  %v4229_v51 = vmul.f32 %v7859_v35, %v8314_v41  ;;  %v8351_v46 = vmul.f32 %v7859_v35, %v8316_v14 }
 0x305   : > { %v2577_v23 = vadd.f32 %v2513_v9, %v2447_v60  ;;  %v10119_v3 = vrot.slane %v8341_v1, 1  ;;  %v3351_v62 = vsel %vm2201_vm3, %v3349_v22, %v10118_v27  ;;  %v3607_v33 = vmul.f32 %v7089_v29, %v8314_v41 }
 0x306   : > { %v4800_v12 = vmax.f32 %v4736_v48, 0.0  ;;  %v647_v10 = vadd.f32 %v646_v34, %v6280_v5  ;;  %v3961_v8 = vrot.slane %v3747_v20, 1  ;;  %v4443_v50 = vrot.slane %v4229_v51, 2  ;;  %v8363_v48 = vld [vmem:[#allocation2 + $0x2f0] sm:$0x3]  ;;  %v8372_v51 = vpop.f32.mrf.mxu2 }
 0x307   : > { %v3059_v57 = vadd.f32 %v2869_v44, %v2577_v23  ;;  %v1608_v16 = vmul.f32 %v5786_v6, %v7898_v2  ;;  %v2091_v22 = vmul.f32 %v5794_v36, %v7898_v2  ;;  %v2704_v20 = vmul.f32 %v5838_v38, %v8129_v11  ;;  %10340 = vst [vmem:[#allocation38_spill] sm:$0xff] %v8372_v51 }
 0x308   : > { %v4864_v15 = vmin.f32 %v4800_v12, 6.0  ;;  %v725_v9 = vmax.f32 %v647_v10, 0.0  ;;  %v3963_v34 = vsel %vm1718_vm2, %v3961_v8, %v10119_v3  ;;  %v1450_v12 = vmul.f32 %v7998_v17, %v5809_v52 }
 0x309   : > { %v3541_v27 = vadd.f32 %v3351_v62, %v3059_v57  ;;  %v1855_v44 = vrot.slane %v1608_v16, 1  ;;  %v2338_v10 = vrot.slane %v2091_v22, 2  ;;  %v3186_v2 = vmul.f32 %v5850_v61, %v8129_v11 }
 0x30a   : > { %5094 = vmatmul.f32.gmra.mxu2 %v4864_v15  ;;  %v8374_v23 = vmin.f32 %v725_v9, 6.0  ;;  %v10341_v62 = vrot.slane %v8220_v30, 1  ;;  %v2950_v8 = vrot.slane %v2704_v20, 1  ;;  %v3798_v3 = vmul.f32 %v5869_v7, %v8363_v48 }
 0x30b   : > { %v3671_v57 = vadd.f32 %v3607_v33, %v3541_v27  ;;  %v2546_v60 = vmul.f32 %v8237_v56, %v5841_v40  ;;  %v3432_v17 = vrot.slane %v3186_v2, 2  ;;  %v10342_v51 = vrot.slane %v8351_v46, 2 }
 0x30c   : > { %v1856_v16 = vsel %vm1718_vm2, %v10341_v62, %v1855_v44  ;;  %v1046_v15 = vrot.slane %v8374_v23, 7  ;;  %v10343_v30 = vrot.slane %v8227_v28, 2  ;;  %v4280_v44 = vmul.f32 %v8037_v63, %v8363_v48 }
 0x30d   : > { %v1997_v9 = vadd.f32 %v1856_v16, %v1450_v12  ;;  %v4153_v22 = vadd.f32 %v3963_v34, %v3671_v57  ;;  %v4445_v27 = vsel %vm2201_vm3, %v4443_v50, %v10342_v51  ;;  %v3640_v12 = vmul.f32 %v5866_v55, %v10337_v31 }
 0x30e   : > { %v2339_v33 = vsel %vm2201_vm3, %v10343_v30, %v2338_v10  ;;  %1241 = vst.msk [vmem:[#allocation2 + $0x1e8] sm:$0xfe] %vm1185_vm5, %v1046_v15  ;;  %v4044_v34 = vrot.slane %v3798_v3, 1  ;;  %v1561_v2 = vmul.f32 %v7024_v43, %v7939_v25  ;;  %v10344_v28 = vrot.slane %v8241_v37, 1 }
 0x30f   : > { %v2480_v20 = vadd.f32 %v2339_v33, %v1997_v9  ;;  %v4635_v50 = vadd.f32 %v4445_v27, %v4153_v22  ;;  %v10345_v10 = vrot.slane %v8259_v21, 2  ;;  %v2044_v62 = vmul.f32 %v7029_v0, %v7939_v25  ;;  %v8416_v27 = vld [vmem:[#allocation2 + $0x178] sm:$0x3] }
 0x310   : > { %v2951_v51 = vsel %vm1718_vm2, %v10344_v28, %v2950_v8  ;;  %v1419_v31 = vmul.f32 %v7022_v47, %v7825_v42  ;;  %v1777_v3 = vrot.slane %v1561_v2, 1  ;;  %v2657_v9 = vmul.f32 %v7052_v24, %v8179_v58  ;;  %v649_v28 = vpop.f32.mrf.mxu1 }
 0x311   : > { %v3433_v57 = vsel %vm2201_vm3, %v10345_v10, %v3432_v17  ;;  %v2610_v16 = vadd.f32 %v2546_v60, %v2480_v20  ;;  %v4705_v22 = vadd.f32 %v6885_v13, %v4635_v50  ;;  %v4526_v37 = vrot.slane %v4280_v44, 2 }
 0x312   : > { %v2260_v8 = vrot.slane %v2044_v62, 2  ;;  %v3139_v21 = vmul.f32 %v7055_v53, %v8179_v58  ;;  %v10346_v25 = vrot.slane %v8272_v19, 1  ;;  %v10347_v42 = vrot.slane %v8293_v59, 1 }
 0x313   : > { %v3092_v17 = vadd.f32 %v2951_v51, %v2610_v16  ;;  %v2872_v33 = vrot.slane %v2657_v9, 1  ;;  %v4769_v20 = vmax.f32 %v4705_v22, 0.0  ;;  %v2515_v44 = vmul.f32 %v7037_v54, %v8076_v26 }
 0x314   : > { %v4045_v60 = vsel %vm1718_vm2, %v10346_v25, %v4044_v34  ;;  %v1778_v30 = vsel %vm1718_vm2, %v10347_v42, %v1777_v3  ;;  %v3354_v50 = vrot.slane %v3139_v21, 2  ;;  %v10348_v62 = vrot.slane %v8303_v32, 2 }
 0x315   : > { %v1966_v2 = vadd.f32 %v1778_v30, %v1419_v31  ;;  %v3574_v10 = vadd.f32 %v3433_v57, %v3092_v17  ;;  %v3751_v19 = vmul.f32 %v7092_v18, %v8416_v27  ;;  %v4233_v59 = vmul.f32 %v7859_v35, %v8416_v27 }
 0x316   : > { %v2261_v51 = vsel %vm2201_vm3, %v10348_v62, %v2260_v8  ;;  %v4833_v34 = vmin.f32 %v4769_v20, 6.0  ;;  %v10349_v16 = vrot.slane %v8278_v45, 2  ;;  %v3609_v9 = vmul.f32 %v7089_v29, %v8316_v14 }
 0x317   : > { %v2449_v3 = vadd.f32 %v2261_v51, %v1966_v2  ;;  %v3704_v57 = vadd.f32 %v3640_v12, %v3574_v10  ;;  %v10350_v32 = vrot.slane %v8311_v4, 1  ;;  %v3966_v8 = vrot.slane %v3751_v19, 1 }
 0x318   : > { %v4527_v31 = vsel %vm2201_vm3, %v10349_v16, %v4526_v37  ;;  %v650_v21 = vadd.f32 %v649_v28, %v6280_v5  ;;  %5468 = vmatmul.msk.f32.gmra.mxu3 %vm817_vm4, %v4833_v34  ;;  %v10351_v17 = vrot.slane %v8325_v39, 2  ;;  %v4448_v37 = vrot.slane %v4233_v59, 2  ;;  %v10354_v34 = vld [vmem:[#allocation35_spill] sm:$0xff] }
 0x319   : > { %v2873_v22 = vsel %vm1718_vm2, %v10350_v32, %v2872_v33  ;;  %v2579_v35 = vadd.f32 %v2515_v44, %v2449_v3  ;;  %v1610_v25 = vmul.f32 %v5786_v6, %v10335_v49  ;;  %v4186_v42 = vadd.f32 %v4045_v60, %v3704_v57  ;;  %v10353_v60 = vld [vmem:[#allocation37_spill] sm:$0xff] }
 0x31a   : > { %v3355_v45 = vsel %vm2201_vm3, %v10351_v17, %v3354_v50  ;;  %v10352_v12 = vrot.slane %v8341_v1, 1  ;;  %v727_v30 = vmax.f32 %v650_v21, 0.0  ;;  %v1452_v33 = vmul.f32 %v5809_v52, %v10335_v49 }
 0x31b   : > { %v3061_v20 = vadd.f32 %v2873_v22, %v2579_v35  ;;  %v8457_v2 = vmul.f32 %v8237_v56, %v5786_v6  ;;  %v1859_v39 = vrot.slane %v1610_v25, 1  ;;  %v2093_v44 = vmul.f32 %v5794_v36, %v10335_v49  ;;  %v8478_v22 = vld [vmem:[#allocation2 + $0x300] sm:$0xff] }
 0x31c   : > { %v3967_v4 = vsel %vm1718_vm2, %v10352_v12, %v3966_v8  ;;  %v4668_v50 = vadd.f32 %v4527_v31, %v4186_v42  ;;  %v791_v28 = vmin.f32 %v727_v30, 6.0  ;;  %v8463_v1 = vmul.f32 %v8237_v56, %v5794_v36  ;;  %v8472_v31 = vld [vmem:[#allocation2 + $0x2e0] sm:$0xff]  ;;  %10355 = vst [vmem:[#allocation39_spill] sm:$0xff] %v8478_v22 }
 0x31d   : > { %v2548_v10 = vmul.f32 %v5841_v40, %v10353_v60  ;;  %v3543_v62 = vadd.f32 %v3355_v45, %v3061_v20  ;;  %v10127_v51 = vrot.slane %v8457_v2, 1  ;;  %v2342_v19 = vrot.slane %v2093_v44, 2 }
 0x31e   : > { %v2706_v59 = vmul.f32 %v5838_v38, %v10353_v60  ;;  %v4738_v16 = vadd.f32 %v10354_v34, %v4668_v50  ;;  %v1049_v3 = vrot.slane %v791_v28, 7  ;;  %v10125_v49 = vrot.slane %v8463_v1, 2 }
 0x31f   : > { %v8476_v57 = vmul.f32 %v8472_v31, %v5838_v38  ;;  %v3673_v32 = vadd.f32 %v3609_v9, %v3543_v62  ;;  %v1861_v8 = vsel %vm1718_vm2, %v1859_v39, %v10127_v51  ;;  %v3188_v35 = vmul.f32 %v5850_v61, %v10353_v60  ;;  %v10357_v62 = vld [vmem:[#allocation41_spill] sm:$0xff] }
 0x320   : > { %v2954_v21 = vrot.slane %v2706_v59, 1  ;;  %v4802_v17 = vmax.f32 %v4738_v16, 0.0  ;;  %v1050_v45 = vsel %vm990_vm1, %v1046_v15, %v1049_v3  ;;  %1245 = vst.msk [vmem:[#allocation2 + $0x208] sm:$0x1] %vm1190_vm7, %v1049_v3  ;;  %v1999_v25 = vadd.f32 %v1861_v8, %v1452_v33  ;;  %v8511_v59 = vpop.f32.mrf.mxu2 }
 0x321   : > { %v2344_v9 = vsel %vm2201_vm3, %v2342_v19, %v10125_v49  ;;  %v4155_v42 = vadd.f32 %v3967_v4, %v3673_v32  ;;  %1243 = vst.msk [vmem:[#allocation2 + $0x1f8] sm:$0xff] %vm817_vm4, %v1050_v45  ;;  %v10124_v12 = vrot.slane %v8476_v57, 1  ;;  %v8496_v30 = vmul.f32 %v8472_v31, %v5850_v61 }
 0x322   : > { %v3436_v20 = vrot.slane %v3188_v35, 2  ;;  %v4866_v23 = vmin.f32 %v4802_v17, 6.0  ;;  %v10356_v15 = vrot.slane %v8351_v46, 2  ;;  %v2482_v33 = vadd.f32 %v2344_v9, %v1999_v25  ;;  %10358 = vst [vmem:[#allocation42_spill] sm:$0xff] %v8511_v59  ;;  %v10359_v17 = vld [vmem:[#allocation44_spill] sm:$0xff] }
 0x323   : > { %v3800_v44 = vmul.f32 %v5869_v7, %v8478_v22  ;;  %v2956_v4 = vsel %vm1718_vm2, %v2954_v21, %v10124_v12  ;;  %v10122_v28 = vrot.slane %v8496_v30, 2  ;;  %v8509_v19 = vmul.f32 %v5869_v7, %v10357_v62 }
 0x324   : > { %v4449_v39 = vsel %vm2201_vm3, %v10356_v15, %v4448_v37  ;;  %5097 = vmatmul.f32.gmra.mxu2 %v4866_v23  ;;  %v2612_v46 = vadd.f32 %v2548_v10, %v2482_v33  ;;  %v4282_v16 = vmul.f32 %v8037_v63, %v8478_v22  ;;  %v8517_v3 = vmul.f32 %v8037_v63, %v10357_v62 }
 0x325   : > { %v4637_v50 = vadd.f32 %v4449_v39, %v4155_v42  ;;  %v4048_v37 = vrot.slane %v3800_v44, 1  ;;  %v3438_v8 = vsel %vm2201_vm3, %v3436_v20, %v10122_v28  ;;  %v3642_v21 = vmul.f32 %v5866_v55, %v8478_v22 }
 0x326   : > { %v3094_v35 = vadd.f32 %v2956_v4, %v2612_v46  ;;  %v10120_v10 = vrot.slane %v8509_v19, 1  ;;  %v1421_v45 = vmul.f32 %v7022_v47, %v10359_v17  ;;  %v1563_v25 = vmul.f32 %v7024_v43, %v10359_v17 }
 0x327   : > { %v4707_v32 = vadd.f32 %v6885_v13, %v4637_v50  ;;  %v4530_v42 = vrot.slane %v4282_v16, 2  ;;  %v8532_v23 = vmul.f32 %v7024_v43, %v8076_v26  ;;  %v2046_v20 = vmul.f32 %v7029_v0, %v10359_v17 }
 0x328   : > { %v3576_v15 = vadd.f32 %v3438_v8, %v3094_v35  ;;  %v4050_v39 = vsel %vm1718_vm2, %v4048_v37, %v10120_v10  ;;  %v10121_v33 = vrot.slane %v8517_v3, 2  ;;  %v8542_v44 = vmul.f32 %v7029_v0, %v8076_v26 }
 0x329   : > { %v4771_v9 = vmax.f32 %v4707_v32, 0.0  ;;  %v1782_v4 = vrot.slane %v1563_v25, 1  ;;  %v10123_v62 = vrot.slane %v8532_v23, 1  ;;  %v2265_v46 = vrot.slane %v2046_v20, 2  ;;  %v8545_v32 = vld [vmem:[#allocation2 + $0x188] sm:$0xff]  ;;  %v8558_v25 = vld [vmem:[#allocation2 + $0x198] sm:$0xff] }
 0x32a   : > { %v3706_v16 = vadd.f32 %v3642_v21, %v3576_v15  ;;  %v10126_v8 = vrot.slane %v8542_v44, 2  ;;  %v2659_v35 = vmul.f32 %v7052_v24, %v8314_v41  ;;  %v8552_v37 = vmul.f32 %v7052_v24, %v8316_v14 }
 0x32b   : > { %v4835_v50 = vmin.f32 %v4771_v9, 6.0  ;;  %v4532_v17 = vsel %vm2201_vm3, %v4530_v42, %v10121_v33  ;;  %v1784_v21 = vsel %vm1718_vm2, %v1782_v4, %v10123_v62  ;;  %v3141_v9 = vmul.f32 %v7055_v53, %v8314_v41 }
 0x32c   : > { %v8567_v20 = vmul.f32 %v7055_v53, %v8316_v14  ;;  %v4188_v15 = vadd.f32 %v4050_v39, %v3706_v16  ;;  %v1968_v10 = vadd.f32 %v1784_v21, %v1421_v45  ;;  %v2517_v42 = vmul.f32 %v7037_v54, %v8314_v41  ;;  %v8585_v39 = vld [vmem:[%s9928_s3 + $0x18] ss:$0 sm:$0xff]  ;;  %v652_v16 = vpop.f32.mrf.mxu1 }
 0x32d   : > { %5469 = vmatmul.msk.f32.gmra.mxu3 %vm817_vm4, %v4835_v50  ;;  %v2267_v50 = vsel %vm2201_vm3, %v2265_v46, %v10126_v8  ;;  %v2877_v33 = vrot.slane %v2659_v35, 1  ;;  %v10128_v28 = vrot.slane %v8552_v37, 1  ;;  %v3753_v62 = vmul.f32 %v7092_v18, %v8545_v32 }
 0x32e   : > { %v10133_v4 = vrot.slane %v8567_v20, 2  ;;  %v4670_v12 = vadd.f32 %v4532_v17, %v4188_v15  ;;  %v2451_v49 = vadd.f32 %v2267_v50, %v1968_v10  ;;  %v8580_v45 = vmul.f32 %v7092_v18, %v8558_v25 }
 0x32f   : > { %v4235_v46 = vmul.f32 %v8585_v39, %v8545_v32  ;;  %v2879_v35 = vsel %vm1718_vm2, %v2877_v33, %v10128_v28  ;;  %v3359_v21 = vrot.slane %v3141_v9, 2  ;;  %v8594_v10 = vmul.f32 %v8585_v39, %v8558_v25 }
 0x330   : > { %v4740_v17 = vadd.f32 %v10354_v34, %v4670_v12  ;;  %v2581_v15 = vadd.f32 %v2517_v42, %v2451_v49  ;;  %v10134_v50 = vrot.slane %v8580_v45, 1  ;;  %v3611_v51 = vmul.f32 %v7089_v29, %v8545_v32  ;;  %v8608_v42 = vld [vmem:[#allocation2 + $0x320] sm:$0x3] }
 0x331   : > { %v3361_v8 = vsel %vm2201_vm3, %v3359_v21, %v10133_v4  ;;  %v3971_v59 = vrot.slane %v3753_v62, 1  ;;  %v653_v33 = vadd.f32 %v652_v16, %v6280_v5  ;;  %v4453_v41 = vrot.slane %v4235_v46, 2 }
 0x332   : > { %v4804_v9 = vmax.f32 %v4740_v17, 0.0  ;;  %v3063_v28 = vadd.f32 %v2879_v35, %v2581_v15  ;;  %v1614_v21 = vmul.f32 %v5786_v6, %v8129_v11  ;;  %v2097_v62 = vmul.f32 %v5794_v36, %v8129_v11 }
 0x333   : > { %v3973_v49 = vsel %vm1718_vm2, %v3971_v59, %v10134_v50  ;;  %v729_v12 = vmax.f32 %v653_v33, 0.0  ;;  %v1454_v46 = vmul.f32 %v8237_v56, %v5809_v52  ;;  %v2710_v35 = vmul.f32 %v5838_v38, %v8363_v48  ;;  %v8622_v50 = vpop.f32.mrf.mxu2 }
 0x334   : > { %v4868_v4 = vmin.f32 %v4804_v9, 6.0  ;;  %v3545_v16 = vadd.f32 %v3361_v8, %v3063_v28  ;;  %v1865_v59 = vrot.slane %v1614_v21, 1  ;;  %v2348_v15 = vrot.slane %v2097_v62, 2  ;;  %10360 = vst [vmem:[#allocation36_spill] sm:$0xff] %v8622_v50 }
 0x335   : > { %v8618_v17 = vmin.f32 %v729_v12, 6.0  ;;  %v3192_v33 = vmul.f32 %v5850_v61, %v8363_v48  ;;  %v10361_v11 = vrot.slane %v8594_v10, 2  ;;  %v2960_v8 = vrot.slane %v2710_v35, 1  ;;  %v8638_v35 = vld [vmem:[#allocation2 + $0x310] sm:$0xff] }
 0x336   : > { %5100 = vmatmul.f32.gmra.mxu2 %v4868_v4  ;;  %v3675_v22 = vadd.f32 %v3611_v51, %v3545_v16  ;;  %v3804_v56 = vmul.f32 %v5869_v7, %v8608_v42  ;;  %v10362_v12 = vrot.slane %v8457_v2, 1  ;;  %v2550_v62 = vmul.f32 %v8472_v31, %v5841_v40 }
 0x337   : > { %v4455_v28 = vsel %vm2201_vm3, %v4453_v41, %v10361_v11  ;;  %v1052_v9 = vrot.slane %v8618_v17, 7  ;;  %v3442_v50 = vrot.slane %v3192_v33, 2  ;;  %v10363_v16 = vrot.slane %v8463_v1, 2 }
 0x338   : > { %v1866_v21 = vsel %vm1718_vm2, %v10362_v12, %v1865_v59  ;;  %v4157_v4 = vadd.f32 %v3973_v49, %v3675_v22  ;;  %v3644_v11 = vmul.f32 %v8638_v35, %v5866_v55  ;;  %v10364_v2 = vrot.slane %v8476_v57, 1 }
 0x339   : > { %v2001_v51 = vadd.f32 %v1866_v21, %v1454_v46  ;;  %v2349_v41 = vsel %vm2201_vm3, %v10363_v16, %v2348_v15  ;;  %1247 = vst.msk [vmem:[#allocation2 + $0x218] sm:$0xfe] %vm1185_vm5, %v1052_v9  ;;  %v4054_v33 = vrot.slane %v3804_v56, 1  ;;  %v4286_v22 = vmul.f32 %v8037_v63, %v8608_v42 }
 0x33a   : > { %v2961_v59 = vsel %vm1718_vm2, %v10364_v2, %v2960_v8  ;;  %v1567_v1 = vmul.f32 %v7024_v43, %v8179_v58  ;;  %v4639_v49 = vadd.f32 %v4455_v28, %v4157_v4  ;;  %v10365_v15 = vrot.slane %v8496_v30, 2  ;;  %v8662_v28 = vld [vmem:[#allocation2 + $0x1a8] sm:$0x3] }
 0x33b   : > { %v2484_v46 = vadd.f32 %v2349_v41, %v2001_v51  ;;  %v2050_v21 = vmul.f32 %v7029_v0, %v8179_v58  ;;  %v4536_v16 = vrot.slane %v4286_v22, 2  ;;  %v1423_v57 = vmul.f32 %v7022_v47, %v8076_v26 }
 0x33c   : > { %v3443_v12 = vsel %vm2201_vm3, %v10365_v15, %v3442_v50  ;;  %v1787_v8 = vrot.slane %v1567_v1, 1  ;;  %v2663_v63 = vmul.f32 %v7052_v24, %v8416_v27  ;;  %v4709_v56 = vadd.f32 %v6885_v13, %v4639_v49 }
 0x33d   : > { %v2614_v2 = vadd.f32 %v2550_v62, %v2484_v46  ;;  %v2270_v4 = vrot.slane %v2050_v21, 2  ;;  %v3145_v30 = vmul.f32 %v7055_v53, %v8416_v27  ;;  %v10366_v50 = vrot.slane %v8509_v19, 1  ;;  %v655_v21 = vpop.f32.mrf.mxu1 }
 0x33e   : > { %v10367_v51 = vrot.slane %v8532_v23, 1  ;;  %v2519_v41 = vmul.f32 %v7037_v54, %v8316_v14  ;;  %v2882_v22 = vrot.slane %v2663_v63, 1  ;;  %v4773_v1 = vmax.f32 %v4709_v56, 0.0 }
 0x33f   : > { %v4055_v58 = vsel %vm1718_vm2, %v10366_v50, %v4054_v33  ;;  %v3096_v62 = vadd.f32 %v2961_v59, %v2614_v2  ;;  %v10368_v49 = vrot.slane %v8517_v3, 2  ;;  %v10369_v19 = vrot.slane %v8542_v44, 2 }
 0x340   : > { %v1788_v26 = vsel %vm1718_vm2, %v10367_v51, %v1787_v8  ;;  %v3364_v50 = vrot.slane %v3145_v30, 2  ;;  %v3757_v23 = vmul.f32 %v7092_v18, %v8662_v28  ;;  %v4239_v8 = vmul.f32 %v8585_v39, %v8662_v28 }
 0x341   : > { %v4537_v46 = vsel %vm2201_vm3, %v10368_v49, %v4536_v16  ;;  %v1970_v15 = vadd.f32 %v1788_v26, %v1423_v57  ;;  %v2271_v33 = vsel %vm2201_vm3, %v10369_v19, %v2270_v4  ;;  %v4837_v63 = vmin.f32 %v4773_v1, 6.0 }
 0x342   : > { %v3578_v56 = vadd.f32 %v3443_v12, %v3096_v62  ;;  %v3613_v3 = vmul.f32 %v7089_v29, %v8558_v25  ;;  %v10370_v16 = vrot.slane %v8552_v37, 1  ;;  %v10371_v44 = vrot.slane %v8567_v20, 2 }
 0x343   : > { %v2453_v59 = vadd.f32 %v2271_v33, %v1970_v15  ;;  %v3976_v4 = vrot.slane %v3757_v23, 1  ;;  %v656_v30 = vadd.f32 %v655_v21, %v6280_v5  ;;  %5470 = vmatmul.msk.f32.gmra.mxu3 %vm817_vm4, %v4837_v63  ;;  %v4458_v12 = vrot.slane %v4239_v8, 2 }
 0x344   : > { %v2883_v57 = vsel %vm1718_vm2, %v10370_v16, %v2882_v22  ;;  %v3365_v2 = vsel %vm2201_vm3, %v10371_v44, %v3364_v50  ;;  %v3708_v51 = vadd.f32 %v3644_v11, %v3578_v56  ;;  %v1616_v1 = vmul.f32 %v5786_v6, %v10353_v60  ;;  %v10373_v50 = vld [vmem:[#allocation39_spill] sm:$0xff] }
 0x345   : > { %v2583_v26 = vadd.f32 %v2519_v41, %v2453_v59  ;;  %v10372_v62 = vrot.slane %v8580_v45, 1  ;;  %v731_v22 = vmax.f32 %v656_v30, 0.0  ;;  %v1456_v20 = vmul.f32 %v5809_v52, %v10353_v60 }
 0x346   : > { %v8703_v49 = vmul.f32 %v8472_v31, %v5786_v6  ;;  %v4190_v15 = vadd.f32 %v4055_v58, %v3708_v51  ;;  %v1869_v11 = vrot.slane %v1616_v1, 1  ;;  %v2099_v41 = vmul.f32 %v5794_v36, %v10353_v60 }
 0x347   : > { %v3977_v37 = vsel %vm1718_vm2, %v10372_v62, %v3976_v4  ;;  %v3065_v21 = vadd.f32 %v2883_v57, %v2583_v26  ;;  %v795_v19 = vmin.f32 %v731_v22, 6.0  ;;  %v8710_v45 = vmul.f32 %v8472_v31, %v5794_v36 }
 0x348   : > { %v10143_v33 = vrot.slane %v8703_v49, 1  ;;  %v2552_v23 = vmul.f32 %v5841_v40, %v10373_v50  ;;  %v4672_v8 = vadd.f32 %v4537_v46, %v4190_v15  ;;  %v2352_v56 = vrot.slane %v2099_v41, 2 }
 0x349   : > { %v3547_v63 = vadd.f32 %v3365_v2, %v3065_v21  ;;  %v2712_v58 = vmul.f32 %v5838_v38, %v10373_v50  ;;  %v1055_v59 = vrot.slane %v795_v19, 7  ;;  %v10142_v16 = vrot.slane %v8710_v45, 2 }
 0x34a   : > { %v1871_v60 = vsel %vm1718_vm2, %v1869_v11, %v10143_v33  ;;  %v8722_v57 = vmul.f32 %v8638_v35, %v5838_v38  ;;  %v4742_v44 = vadd.f32 %v10354_v34, %v4672_v8  ;;  %v3194_v1 = vmul.f32 %v5850_v61, %v10373_v50  ;;  %v5549_v11 = vld [vmem:[#allocation2] sm:$0xff] }
 0x34b   : > { %v3677_v4 = vadd.f32 %v3613_v3, %v3547_v63  ;;  %v2003_v46 = vadd.f32 %v1871_v60, %v1456_v20  ;;  %v2964_v2 = vrot.slane %v2712_v58, 1  ;;  %v1056_v30 = vsel %vm990_vm1, %v1052_v9, %v1055_v59  ;;  %1251 = vst.msk [vmem:[#allocation2 + $0x238] sm:$0x1] %vm1190_vm7, %v1055_v59  ;;  %v10375_v58 = vld [vmem:[#allocation40_spill] sm:$0xff]  ;;  %v8764_v60 = vpop.f32.mrf.mxu2 }
 0x34c   : > { %v2354_v51 = vsel %vm2201_vm3, %v2352_v56, %v10142_v16  ;;  %v10140_v26 = vrot.slane %v8722_v57, 1  ;;  %v4806_v62 = vmax.f32 %v4742_v44, 0.0  ;;  %1249 = vst.msk [vmem:[#allocation2 + $0x228] sm:$0xff] %vm817_vm4, %v1056_v30  ;;  %v8738_v17 = vmul.f32 %v8638_v35, %v5850_v61 }
 0x34d   : > { %v4159_v22 = vadd.f32 %v3977_v37, %v3677_v4  ;;  %v2486_v3 = vadd.f32 %v2354_v51, %v2003_v46  ;;  %v10374_v9 = vrot.slane %v8594_v10, 2  ;;  %v3446_v21 = vrot.slane %v3194_v1, 2  ;;  %10376 = vst [vmem:[#allocation43_spill] sm:$0xff] %v8764_v60 }
 0x34e   : > { %v2966_v15 = vsel %vm1718_vm2, %v2964_v2, %v10140_v26  ;;  %v8747_v41 = vmul.f32 %v5549_v11, %v5869_v7  ;;  %v4870_v37 = vmin.f32 %v4806_v62, 6.0  ;;  %v8750_v8 = vmul.f32 %v5549_v11, %v5866_v55 }
 0x34f   : > { %v4459_v20 = vsel %vm2201_vm3, %v10374_v9, %v4458_v12  ;;  %v2616_v50 = vadd.f32 %v2552_v23, %v2486_v3  ;;  %v10139_v63 = vrot.slane %v8738_v17, 2  ;;  %v8757_v12 = vld [vmem:[%s9928_s3 + $0x10] ss:$0 sm:$0xff]  ;;  %v1569_v59 = vmul.f32 %v7024_v43, %v10375_v58 }
 0x350   : > { %v4641_v19 = vadd.f32 %v4459_v20, %v4159_v22  ;;  %v10137_v10 = vrot.slane %v8747_v41, 1  ;;  %v8760_v56 = vmul.f32 %v8757_v12, %v5549_v11  ;;  %5103 = vmatmul.f32.gmra.mxu2 %v4870_v37  ;;  %v1425_v44 = vmul.f32 %v7022_v47, %v10375_v58  ;;  %v8787_v11 = vld [vmem:[#allocation2 + $0x1b8] sm:$0xff] }
 0x351   : > { %v3098_v23 = vadd.f32 %v2966_v15, %v2616_v50  ;;  %v8771_v4 = vmul.f32 %v7024_v43, %v8316_v14  ;;  %v3448_v46 = vsel %vm2201_vm3, %v3446_v21, %v10139_v63  ;;  %v1792_v30 = vrot.slane %v1569_v59, 1  ;;  %v8793_v50 = vld [vmem:[#allocation2 + $0x1c8] sm:$0xff] }
 0x352   : > { %v4711_v55 = vadd.f32 %v6885_v13, %v4641_v19  ;;  %v10138_v2 = vrot.slane %v8760_v56, 2  ;;  %v2052_v51 = vmul.f32 %v7029_v0, %v10375_v58  ;;  %v8782_v3 = vmul.f32 %v7029_v0, %v8316_v14 }
 0x353   : > { %v3580_v62 = vadd.f32 %v3448_v46, %v3098_v23  ;;  %v10135_v22 = vrot.slane %v8771_v4, 1  ;;  %v2665_v20 = vmul.f32 %v7052_v24, %v8545_v32  ;;  %v2521_v59 = vmul.f32 %v7037_v54, %v8545_v32 }
 0x354   : > { %v4775_v1 = vmax.f32 %v4711_v55, 0.0  ;;  %v2275_v9 = vrot.slane %v2052_v51, 2  ;;  %v10136_v19 = vrot.slane %v8782_v3, 2  ;;  %v8799_v55 = vmul.f32 %v7052_v24, %v8558_v25 }
 0x355   : > { %v3710_v21 = vadd.f32 %v8750_v8, %v3580_v62  ;;  %v1794_v37 = vsel %vm1718_vm2, %v1792_v30, %v10135_v22  ;;  %v3147_v23 = vmul.f32 %v7055_v53, %v8545_v32  ;;  %v8821_v22 = vmul.f32 %v7092_v18, %v8793_v50 }
 0x356   : > { %v4839_v15 = vmin.f32 %v4775_v1, 6.0  ;;  %v1972_v58 = vadd.f32 %v1794_v37, %v1425_v44  ;;  %v2277_v30 = vsel %vm2201_vm3, %v2275_v9, %v10136_v19  ;;  %v8811_v44 = vmul.f32 %v7055_v53, %v8558_v25  ;;  %v658_v19 = vpop.f32.mrf.mxu1 }
 0x357   : > { %v4192_v46 = vadd.f32 %v10137_v10, %v3710_v21  ;;  %v2887_v1 = vrot.slane %v2665_v20, 1  ;;  %v10141_v62 = vrot.slane %v8799_v55, 1  ;;  %v3759_v37 = vmul.f32 %v7092_v18, %v8787_v11 }
 0x358   : > { %5471 = vmatmul.msk.f32.gmra.mxu3 %vm817_vm4, %v4839_v15  ;;  %v2455_v51 = vadd.f32 %v2277_v30, %v1972_v58  ;;  %v10144_v21 = vrot.slane %v8811_v44, 2  ;;  %v4241_v9 = vmul.f32 %v8585_v39, %v8787_v11  ;;  %v3369_v30 = vrot.slane %v3147_v23, 2 }
 0x359   : > { %v4674_v15 = vadd.f32 %v10138_v2, %v4192_v46  ;;  %v2889_v20 = vsel %vm1718_vm2, %v2887_v1, %v10141_v62  ;;  %v8830_v10 = vmul.f32 %v8585_v39, %v8793_v50  ;;  %v3615_v2 = vmul.f32 %v7089_v29, %v8787_v11 }
 0x35a   : > { %v2585_v58 = vadd.f32 %v2521_v59, %v2455_v51  ;;  %v3982_v63 = vrot.slane %v8821_v22, 1  ;;  %v3371_v59 = vsel %vm2201_vm3, %v3369_v30, %v10144_v21  ;;  %v3981_v51 = vrot.slane %v3759_v37, 1 }
 0x35b   : > { %v4744_v46 = vadd.f32 %v10354_v34, %v4674_v15  ;;  %v659_v1 = vadd.f32 %v658_v19, %v6280_v5  ;;  %v4463_v62 = vrot.slane %v4241_v9, 2  ;;  %v4464_v16 = vrot.slane %v8830_v10, 2 }
 0x35c   : > { %v3067_v26 = vadd.f32 %v2889_v20, %v2585_v58  ;;  %v1620_v15 = vmul.f32 %v5786_v6, %v8363_v48  ;;  %v3983_v60 = vsel %vm1718_vm2, %v3981_v51, %v3982_v63  ;;  %v1388_v20 = vld [vmem:[#allocation2 + $0x350] sm:$0x3]  ;;  %v2103_v30 = vmul.f32 %v5794_v36, %v8363_v48  ;;  %v8856_v51 = vpop.f32.mrf.mxu2 }
 0x35d   : > { %v4808_v23 = vmax.f32 %v4744_v46, 0.0  ;;  %v733_v58 = vmax.f32 %v659_v1, 0.0  ;;  %v1458_v19 = vmul.f32 %v8472_v31, %v5809_v52  ;;  %v2716_v46 = vmul.f32 %v5838_v38, %v8608_v42 }
 0x35e   : > { %v3549_v33 = vadd.f32 %v3371_v59, %v3067_v26  ;;  %v1875_v9 = vrot.slane %v1620_v15, 1  ;;  %v2358_v26 = vrot.slane %v2103_v30, 2  ;;  %v3198_v59 = vmul.f32 %v5850_v61, %v8608_v42 }
 0x35f   : > { %v4872_v37 = vmin.f32 %v4808_v23, 6.0  ;;  %v8852_v6 = vmin.f32 %v733_v58, 6.0  ;;  %v4465_v36 = vsel %vm2201_vm3, %v4463_v62, %v4464_v16  ;;  %v10377_v52 = vrot.slane %v8703_v49, 1 }
 0x360   : > { %v3679_v21 = vadd.f32 %v3615_v2, %v3549_v33  ;;  %v3810_v38 = vmul.f32 %v5869_v7, %v1388_v20  ;;  %v4292_v31 = vmul.f32 %v8757_v12, %v1388_v20  ;;  %v2970_v61 = vrot.slane %v2716_v46, 1 }
 0x361   : > { %5106 = vmatmul.f32.gmra.mxu2 %v4872_v37  ;;  %v1876_v48 = vsel %vm1718_vm2, %v10377_v52, %v1875_v9  ;;  %v1058_v2 = vrot.slane %v8852_v6, 7  ;;  %v10378_v42 = vrot.slane %v8710_v45, 2  ;;  %v2554_v62 = vmul.f32 %v8638_v35, %v5841_v40  ;;  %v8883_v35 = vld [vmem:[#allocation2 + $0x1d8] sm:$0x3] }
 0x362   : > { %v4161_v33 = vadd.f32 %v3983_v60, %v3679_v21  ;;  %v2005_v1 = vadd.f32 %v1876_v48, %v1458_v19  ;;  %v3452_v15 = vrot.slane %v3198_v59, 2  ;;  %v4064_v49 = vrot.slane %v3810_v38, 1 }
 0x363   : > { %v2359_v23 = vsel %vm2201_vm3, %v10378_v42, %v2358_v26  ;;  %1253 = vst.msk [vmem:[#allocation2 + $0x248] sm:$0xfe] %vm1185_vm5, %v1058_v2  ;;  %v10379_v12 = vrot.slane %v8722_v57, 1  ;;  %v1573_v45 = vmul.f32 %v7024_v43, %v8416_v27  ;;  %v10380_v21 = vrot.slane %v8738_v17, 2 }
 0x364   : > { %v4643_v58 = vadd.f32 %v4465_v36, %v4161_v33  ;;  %v2488_v7 = vadd.f32 %v2359_v23, %v2005_v1  ;;  %v4546_v40 = vrot.slane %v4292_v31, 2  ;;  %v1427_v30 = vmul.f32 %v7022_v47, %v8316_v14  ;;  %v661_v23 = vpop.f32.mrf.mxu1 }
 0x365   : > { %v2971_v60 = vsel %vm1718_vm2, %v10379_v12, %v2970_v61  ;;  %v3453_v20 = vsel %vm2201_vm3, %v10380_v21, %v3452_v15  ;;  %v2056_v37 = vmul.f32 %v7029_v0, %v8416_v27  ;;  %v10381_v9 = vrot.slane %v8747_v41, 1 }
 0x366   : > { %v4713_v57 = vadd.f32 %v6885_v13, %v4643_v58  ;;  %v2618_v19 = vadd.f32 %v2554_v62, %v2488_v7  ;;  %v1797_v26 = vrot.slane %v1573_v45, 1  ;;  %v2523_v59 = vmul.f32 %v7037_v54, %v8558_v25 }
 0x367   : > { %v4065_v46 = vsel %vm1718_vm2, %v10381_v9, %v4064_v49  ;;  %v2280_v17 = vrot.slane %v2056_v37, 2  ;;  %v2669_v36 = vmul.f32 %v7052_v24, %v8662_v28  ;;  %v3151_v14 = vmul.f32 %v7055_v53, %v8662_v28 }
 0x368   : > { %v4777_v52 = vmax.f32 %v4713_v57, 0.0  ;;  %v3100_v27 = vadd.f32 %v2971_v60, %v2618_v19  ;;  %v10382_v48 = vrot.slane %v8771_v4, 1  ;;  %v3763_v41 = vmul.f32 %v7092_v18, %v8883_v35 }
 0x369   : > { %v10383_v33 = vrot.slane %v8782_v3, 2  ;;  %v2892_v61 = vrot.slane %v2669_v36, 1  ;;  %v3374_v42 = vrot.slane %v3151_v14, 2  ;;  %v4245_v58 = vmul.f32 %v8585_v39, %v8883_v35 }
 0x36a   : > { %v1798_v38 = vsel %vm1718_vm2, %v10382_v48, %v1797_v26  ;;  %v4841_v62 = vmin.f32 %v4777_v52, 6.0  ;;  %v3582_v15 = vadd.f32 %v3453_v20, %v3100_v27  ;;  %v3986_v49 = vrot.slane %v3763_v41, 1 }
 0x36b   : > { %v1974_v31 = vadd.f32 %v1798_v38, %v1427_v30  ;;  %v2281_v1 = vsel %vm2201_vm3, %v10383_v33, %v2280_v17  ;;  %v10384_v4 = vrot.slane %v8760_v56, 2  ;;  %v10385_v60 = vrot.slane %v8799_v55, 1 }
 0x36c   : > { %v3617_v45 = vmul.f32 %v7089_v29, %v8793_v50  ;;  %5472 = vmatmul.msk.f32.gmra.mxu3 %vm817_vm4, %v4841_v62  ;;  %v3712_v21 = vadd.f32 %v8750_v8, %v3582_v15  ;;  %v10386_v20 = vrot.slane %v8811_v44, 2  ;;  %v3987_v56 = vsel %vm1718_vm2, %v3982_v63, %v3986_v49 }
 0x36d   : > { %v4547_v7 = vsel %vm2201_vm3, %v10384_v4, %v4546_v40  ;;  %v2457_v12 = vadd.f32 %v2281_v1, %v1974_v31  ;;  %v2893_v3 = vsel %vm1718_vm2, %v10385_v60, %v2892_v61  ;;  %v662_v40 = vadd.f32 %v661_v23, %v6280_v5 }
 0x36e   : > { %v3375_v30 = vsel %vm2201_vm3, %v10386_v20, %v3374_v42  ;;  %v4468_v37 = vrot.slane %v4245_v58, 2  ;;  %v1575_v57 = vmul.f32 %v7024_v43, %v8545_v32  ;;  %v8930_v19 = vmul.f32 %v7024_v43, %v8558_v25  ;;  %v8954_v42 = vld [vmem:[#allocation2 + $0x1e8] sm:$0xff]  ;;  %v8965_v58 = vld [vmem:[#allocation2 + $0x1f8] sm:$0xff] }
 0x36f   : > { %v2587_v55 = vadd.f32 %v2523_v59, %v2457_v12  ;;  %v4194_v8 = vadd.f32 %v4065_v46, %v3712_v21  ;;  %v735_v9 = vmax.f32 %v662_v40, 0.0  ;;  %v1429_v44 = vmul.f32 %v7022_v47, %v8545_v32 }
 0x370   : > { %v2058_v22 = vmul.f32 %v7029_v0, %v8545_v32  ;;  %v1802_v26 = vrot.slane %v1575_v57, 1  ;;  %v1803_v17 = vrot.slane %v8930_v19, 1  ;;  %v8939_v59 = vmul.f32 %v7029_v0, %v8558_v25  ;;  %v10387_v57 = vld [vmem:[#allocation38_spill] sm:$0xff] }
 0x371   : > { %v3069_v63 = vadd.f32 %v2893_v3, %v2587_v55  ;;  %v4676_v36 = vadd.f32 %v4547_v7, %v4194_v8  ;;  %v799_v14 = vmin.f32 %v735_v9, 6.0  ;;  %v2525_v46 = vmul.f32 %v7037_v54, %v8787_v11  ;;  %v8997_v9 = vpop.f32.mrf.mxu2 }
 0x372   : > { %v2285_v52 = vrot.slane %v2058_v22, 2  ;;  %v1804_v48 = vsel %vm1718_vm2, %v1802_v26, %v1803_v17  ;;  %v2286_v32 = vrot.slane %v8939_v59, 2  ;;  %v2671_v38 = vmul.f32 %v7052_v24, %v8787_v11  ;;  %v5130_v26 = vpop.f32.mrf.mxu3 }
 0x373   : > { %v3551_v27 = vadd.f32 %v3375_v30, %v3069_v63  ;;  %v4746_v41 = vadd.f32 %v10354_v34, %v4676_v36  ;;  %v1061_v31 = vrot.slane %v799_v14, 7  ;;  %v1976_v33 = vadd.f32 %v1804_v48, %v1429_v44 }
 0x374   : > { %v8952_v1 = vmul.f32 %v7052_v24, %v8793_v50  ;;  %v2287_v23 = vsel %vm2201_vm3, %v2285_v52, %v2286_v32  ;;  %v2897_v62 = vrot.slane %v2671_v38, 1  ;;  %v3153_v15 = vmul.f32 %v7055_v53, %v8787_v11 }
 0x375   : > { %v3681_v61 = vadd.f32 %v3617_v45, %v3551_v27  ;;  %v4810_v49 = vmax.f32 %v4746_v41, 0.0  ;;  %v1062_v34 = vsel %vm990_vm1, %v1058_v2, %v1061_v31  ;;  %1257 = vst.msk [vmem:[#allocation2 + $0x268] sm:$0x1] %vm1190_vm7, %v1061_v31  ;;  %v2459_v4 = vadd.f32 %v2287_v23, %v1976_v33  ;;  %v8979_v2 = vld [vmem:[%s9931_s6] ss:$0 sm:$0xff]  ;;  %v5017_v45 = vpop.f32.mrf.mxu0 }
 0x376   : > { %v2898_v7 = vrot.slane %v8952_v1, 1  ;;  %v4469_v60 = vsel %vm2201_vm3, %v4464_v16, %v4468_v37  ;;  %1255 = vst.msk [vmem:[#allocation2 + $0x258] sm:$0xff] %vm817_vm4, %v1062_v34  ;;  %v8974_v3 = vmul.f32 %v7055_v53, %v8793_v50  ;;  %v3379_v6 = vrot.slane %v3153_v15, 2  ;;  %v664_v37 = vpop.f32.mrf.mxu1  ;;  %v9014_v34 = vld [vmem:[#allocation2 + $0x208] sm:$0x3] }
 0x377   : > { %v4163_v12 = vadd.f32 %v3987_v56, %v3681_v61  ;;  %v4874_v21 = vmin.f32 %v4810_v49, 6.0  ;;  %v2589_v20 = vadd.f32 %v2525_v46, %v2459_v4  ;;  %v3765_v16 = vmul.f32 %v7092_v18, %v8954_v42 }
 0x378   : > { %v2899_v10 = vsel %vm1718_vm2, %v2897_v62, %v2898_v7  ;;  %v3380_v56 = vrot.slane %v8974_v3, 2  ;;  %v8989_v40 = vmul.f32 %v7092_v18, %v8965_v58  ;;  %v4247_v55 = vmul.f32 %v8585_v39, %v8954_v42 }
 0x379   : > { %v4645_v30 = vadd.f32 %v4469_v60, %v4163_v12  ;;  %v8995_v8 = vadd.f32 %v8979_v2, %v10387_v57  ;;  %5109 = vmatmul.f32.gmra.mxu2 %v4874_v21  ;;  %v3071_v44 = vadd.f32 %v2899_v10, %v2589_v20  ;;  %v3619_v22 = vmul.f32 %v7089_v29, %v8954_v42 }
 0x37a   : > { %v9003_v63 = vmul.f32 %v8585_v39, %v8965_v58  ;;  %v3381_v14 = vsel %vm2201_vm3, %v3379_v6, %v3380_v56  ;;  %v3991_v52 = vrot.slane %v3765_v16, 1  ;;  %v3992_v46 = vrot.slane %v8989_v40, 1  ;;  %v5133_v59 = vpop.f32.mrf.mxu3 }
 0x37b   : > { %v4715_v36 = vadd.f32 %v6885_v13, %v4645_v30  ;;  %v5018_v27 = vadd.f32 %v8979_v2, %v5017_v45  ;;  %v3553_v48 = vadd.f32 %v3381_v14, %v3071_v44  ;;  %v4473_v38 = vrot.slane %v4247_v55, 2  ;;  %v10388_v14 = vld [vmem:[#allocation42_spill] sm:$0xff] }
 0x37c   : > { %v665_v41 = vadd.f32 %v664_v37, %v6280_v5  ;;  %v3993_v33 = vsel %vm1718_vm2, %v3991_v52, %v3992_v46  ;;  %v4474_v61 = vrot.slane %v9003_v63, 2  ;;  %v1579_v23 = vmul.f32 %v7024_v43, %v8662_v28 }
 0x37d   : > { %v4779_v31 = vmax.f32 %v4715_v36, 0.0  ;;  %v3683_v62 = vadd.f32 %v3619_v22, %v3553_v48  ;;  %v5131_v15 = vadd.f32 %v5130_v26, %v5018_v27  ;;  %v2062_v4 = vmul.f32 %v7029_v0, %v8662_v28  ;;  %v5020_v40 = vpop.f32.mrf.mxu0 }
 0x37e   : > { %v737_v49 = vmax.f32 %v665_v41, 0.0  ;;  %v1431_v60 = vmul.f32 %v7022_v47, %v8558_v25  ;;  %v1807_v3 = vrot.slane %v1579_v23, 1  ;;  %v2675_v6 = vmul.f32 %v7052_v24, %v8883_v35  ;;  %v667_v36 = vpop.f32.mrf.mxu1 }
 0x37f   : > { %v4843_v12 = vmin.f32 %v4779_v31, 6.0  ;;  %v4165_v45 = vadd.f32 %v3993_v33, %v3683_v62  ;;  %v2290_v20 = vrot.slane %v2062_v4, 2  ;;  %v3157_v10 = vmul.f32 %v7055_v53, %v8883_v35 }
 0x380   : > { %v9022_v21 = vmin.f32 %v737_v49, 6.0  ;;  %v4475_v28 = vsel %vm2201_vm3, %v4473_v38, %v4474_v61  ;;  %v1808_v25 = vsel %vm1718_vm2, %v1803_v17, %v1807_v3  ;;  %v2902_v16 = vrot.slane %v2675_v6, 1  ;;  %v10389_v38 = vld [vmem:[#allocation4_spill] sm:$0xff] }
 0x381   : > { %5473 = vmatmul.msk.f32.gmra.mxu3 %vm817_vm4, %v4843_v12  ;;  %v3769_v30 = vmul.f32 %v7092_v18, %v9014_v34  ;;  %v4647_v55 = vadd.f32 %v4475_v28, %v4165_v45  ;;  %v1978_v57 = vadd.f32 %v1808_v25, %v1431_v60  ;;  %v2527_v44 = vmul.f32 %v7037_v54, %v8793_v50 }
 0x382   : > { %v1064_v37 = vrot.slane %v9022_v21, 7  ;;  %v2291_v22 = vsel %vm2201_vm3, %v2286_v32, %v2290_v20  ;;  %v3384_v26 = vrot.slane %v3157_v10, 2  ;;  %v4251_v17 = vmul.f32 %v8585_v39, %v9014_v34 }
 0x383   : > { %v3996_v19 = vrot.slane %v3769_v30, 1  ;;  %v9045_v52 = vadd.f32 %v8979_v2, %v10388_v14  ;;  %v4717_v27 = vadd.f32 %v6885_v13, %v4647_v55  ;;  %v2461_v48 = vadd.f32 %v2291_v22, %v1978_v57 }
 0x384   : > { %1259 = vst.msk [vmem:[#allocation2 + $0x278] sm:$0xfe] %vm1185_vm5, %v1064_v37  ;;  %v5226_v41 = vadd.f32 %v5131_v15, %v10389_v38  ;;  %v5021_v32 = vadd.f32 %v8979_v2, %v5020_v40  ;;  %v2903_v31 = vsel %vm1718_vm2, %v2898_v7, %v2902_v16  ;;  %v3385_v33 = vsel %vm2201_vm3, %v3380_v56, %v3384_v26  ;;  %v9089_v26 = vld [vmem:[#allocation2 + $0x218] sm:$0xff] }
 0x385   : > { %v3621_v23 = vmul.f32 %v7089_v29, %v8965_v58  ;;  %v4781_v62 = vmax.f32 %v4717_v27, 0.0  ;;  %v2591_v49 = vadd.f32 %v2527_v44, %v2461_v48  ;;  %v3997_v4 = vsel %vm1718_vm2, %v3992_v46, %v3996_v19  ;;  %v9091_v19 = vld [vmem:[#allocation2 + $0x228] sm:$0xff] }
 0x386   : > { %5258 = vxpose.xlu2.b32.start [1/16] (narrow) %v5226_v41, 32  ;;  %v668_v12 = vadd.f32 %v667_v36, %v6280_v5  ;;  %v4478_v15 = vrot.slane %v4251_v17, 2  ;;  %v1581_v60 = vmul.f32 %v7024_v43, %v8787_v11  ;;  %v9063_v1 = vmul.f32 %v7024_v43, %v8793_v50 }
 0x387   : > { %v2064_v7 = vmul.f32 %v7029_v0, %v8787_v11  ;;  %v4845_v56 = vmin.f32 %v4781_v62, 6.0  ;;  %v3073_v3 = vadd.f32 %v2903_v31, %v2591_v49  ;;  %v9069_v46 = vmul.f32 %v7029_v0, %v8793_v50 }
 0x388   : > { %v739_v6 = vmax.f32 %v668_v12, 0.0  ;;  %v5134_v45 = vadd.f32 %v5133_v59, %v5021_v32  ;;  %v1433_v21 = vmul.f32 %v7022_v47, %v8787_v11  ;;  %v1812_v20 = vrot.slane %v1581_v60, 1  ;;  %v10390_v60 = vld [vmem:[#allocation36_spill] sm:$0xff] }
 0x389   : > { %v1813_v10 = vrot.slane %v9063_v1, 1  ;;  %5474 = vmatmul.msk.f32.gmra.mxu3 %vm817_vm4, %v4845_v56  ;;  %v3555_v28 = vadd.f32 %v3385_v33, %v3073_v3  ;;  %v2296_v16 = vrot.slane %v9069_v46, 2  ;;  %v2677_v30 = vmul.f32 %v7052_v24, %v8954_v42  ;;  %v5136_v33 = vpop.f32.mrf.mxu3 }
 0x38a   : > { %v803_v25 = vmin.f32 %v739_v6, 6.0  ;;  %v2295_v55 = vrot.slane %v2064_v7, 2  ;;  %v9083_v11 = vmul.f32 %v7052_v24, %v8965_v58  ;;  %v9087_v57 = vmul.f32 %v7055_v53, %v8965_v58  ;;  %v10391_v6 = vld [vmem:[#allocation6_spill] sm:$0xff] }
 0x38b   : > { %v1814_v40 = vsel %vm1718_vm2, %v1812_v20, %v1813_v10  ;;  %v3685_v44 = vadd.f32 %v3621_v23, %v3555_v28  ;;  %v2529_v36 = vmul.f32 %v7037_v54, %v8954_v42  ;;  %v2907_v27 = vrot.slane %v2677_v30, 1 }
 0x38c   : > { %v1067_v22 = vrot.slane %v803_v25, 7  ;;  %v1980_v17 = vadd.f32 %v1814_v40, %v1433_v21  ;;  %v2297_v14 = vsel %vm2201_vm3, %v2295_v55, %v2296_v16  ;;  %v2908_v48 = vrot.slane %v9083_v11, 1 }
 0x38d   : > { %v3159_v38 = vmul.f32 %v7055_v53, %v8954_v42  ;;  %v4167_v41 = vadd.f32 %v3997_v4, %v3685_v44  ;;  %v4479_v59 = vsel %vm2201_vm3, %v4474_v61, %v4478_v15  ;;  %v3390_v62 = vrot.slane %v9087_v57, 2  ;;  %v670_v61 = vpop.f32.mrf.mxu1 }
 0x38e   : > { %v1068_v32 = vsel %vm990_vm1, %v1064_v37, %v1067_v22  ;;  %1263 = vst.msk [vmem:[#allocation2 + $0x298] sm:$0x1] %vm1190_vm7, %v1067_v22  ;;  %v2463_v31 = vadd.f32 %v2297_v14, %v1980_v17  ;;  %v2909_v23 = vsel %vm1718_vm2, %v2907_v27, %v2908_v48  ;;  %v3771_v49 = vmul.f32 %v7092_v18, %v9089_v26 }
 0x38f   : > { %1261 = vst.msk [vmem:[#allocation2 + $0x288] sm:$0xff] %vm817_vm4, %v1068_v32  ;;  %v9115_v63 = vmul.f32 %v7092_v18, %v9091_v19  ;;  %v4649_v37 = vadd.f32 %v4479_v59, %v4167_v41  ;;  %v4253_v12 = vmul.f32 %v8585_v39, %v9089_v26  ;;  %v9121_v15 = vmul.f32 %v8585_v39, %v9091_v19 }
 0x390   : > { %v2593_v4 = vadd.f32 %v2529_v36, %v2463_v31  ;;  %v9125_v7 = vadd.f32 %v8979_v2, %v10390_v60  ;;  %v3389_v56 = vrot.slane %v3159_v38, 2  ;;  %v5227_v21 = vadd.f32 %v5134_v45, %v10391_v6  ;;  %v9139_v38 = vld [vmem:[#allocation2 + $0x238] sm:$0x3] }
 0x391   : > { %v4002_v3 = vrot.slane %v9115_v63, 1  ;;  %v4719_v20 = vadd.f32 %v6885_v13, %v4649_v37  ;;  %v3623_v25 = vmul.f32 %v7089_v29, %v9089_v26  ;;  %v4001_v30 = vrot.slane %v3771_v49, 1  ;;  %v5139_v60 = vpop.f32.mrf.mxu3 }
 0x392   : > { %v3075_v28 = vadd.f32 %v2909_v23, %v2593_v4  ;;  %v3391_v40 = vsel %vm2201_vm3, %v3389_v56, %v3390_v62  ;;  %v4483_v55 = vrot.slane %v4253_v12, 2  ;;  %v4484_v57 = vrot.slane %v9121_v15, 2  ;;  %5259 = vxpose.xlu2.b32.cont [2/16] (narrow) %v5227_v21, 32  ;;  %v9239_v15 = vld [vmem:[%s9928_s3 + $0x18] ss:$0 sm:$0xff] }
 0x393   : > { %v671_v44 = vadd.f32 %v670_v61, %v6280_v5  ;;  %v4783_v22 = vmax.f32 %v4719_v20, 0.0  ;;  %v4003_v36 = vsel %vm1718_vm2, %v4001_v30, %v4002_v3  ;;  %v1585_v45 = vmul.f32 %v7024_v43, %v8883_v35 }
 0x394   : > { %v3557_v17 = vadd.f32 %v3391_v40, %v3075_v28  ;;  %v5137_v14 = vadd.f32 %v5136_v33, %v8995_v8  ;;  %v2068_v41 = vmul.f32 %v7029_v0, %v8883_v35  ;;  %v2681_v59 = vmul.f32 %v7052_v24, %v9014_v34 }
 0x395   : > { %v741_v27 = vmax.f32 %v671_v44, 0.0  ;;  %v4847_v32 = vmin.f32 %v4783_v22, 6.0  ;;  %v1817_v23 = vrot.slane %v1585_v45, 1  ;;  %v3163_v49 = vmul.f32 %v7055_v53, %v9014_v34  ;;  %v673_v20 = vpop.f32.mrf.mxu1  ;;  %v10392_v44 = vld [vmem:[#allocation8_spill] sm:$0xff] }
 0x396   : > { %v3687_v31 = vadd.f32 %v3623_v25, %v3557_v17  ;;  %v1435_v8 = vmul.f32 %v7022_v47, %v8793_v50  ;;  %v2300_v33 = vrot.slane %v2068_v41, 2  ;;  %v2912_v61 = vrot.slane %v2681_v59, 1 }
 0x397   : > { %v9147_v63 = vmin.f32 %v741_v27, 6.0  ;;  %5475 = vmatmul.msk.f32.gmra.mxu3 %vm817_vm4, %v4847_v32  ;;  %v1818_v35 = vsel %vm1718_vm2, %v1813_v10, %v1817_v23  ;;  %v3394_v4 = vrot.slane %v3163_v49, 2  ;;  %v3775_v12 = vmul.f32 %v7092_v18, %v9139_v38 }
 0x398   : > { %v4169_v37 = vadd.f32 %v4003_v36, %v3687_v31  ;;  %v4485_v56 = vsel %vm2201_vm3, %v4483_v55, %v4484_v57  ;;  %v1982_v6 = vadd.f32 %v1818_v35, %v1435_v8  ;;  %v2531_v21 = vmul.f32 %v7037_v54, %v8965_v58 }
 0x399   : > { %v1070_v50 = vrot.slane %v9147_v63, 7  ;;  %v2301_v1 = vsel %vm2201_vm3, %v2296_v16, %v2300_v33  ;;  %v4006_v10 = vrot.slane %v3775_v12, 1  ;;  %v4257_v25 = vmul.f32 %v8585_v39, %v9139_v38 }
 0x39a   : > { %v4651_v28 = vadd.f32 %v4485_v56, %v4169_v37  ;;  %v2465_v30 = vadd.f32 %v2301_v1, %v1982_v6  ;;  %v2913_v40 = vsel %vm1718_vm2, %v2908_v48, %v2912_v61  ;;  %v3625_v55 = vmul.f32 %v7089_v29, %v9091_v19  ;;  %v5142_v56 = vpop.f32.mrf.mxu3 }
 0x39b   : > { %1265 = vst.msk [vmem:[#allocation2 + $0x2a8] sm:$0xfe] %vm1185_vm5, %v1070_v50  ;;  %v5228_v22 = vadd.f32 %v5137_v14, %v10392_v44  ;;  %v3395_v16 = vsel %vm2201_vm3, %v3390_v62, %v3394_v4  ;;  %v5140_v17 = vadd.f32 %v5139_v60, %v9045_v52  ;;  %v674_v39 = vadd.f32 %v673_v20, %v6280_v5  ;;  %v9202_v4 = vld [vmem:[#allocation2 + $0x248] sm:$0xff] }
 0x39c   : > { %v4721_v46 = vadd.f32 %v6885_v13, %v4651_v28  ;;  %v2595_v36 = vadd.f32 %v2531_v21, %v2465_v30  ;;  %v4007_v45 = vsel %vm1718_vm2, %v4002_v3, %v4006_v10  ;;  %v1587_v11 = vmul.f32 %v7024_v43, %v8954_v42  ;;  %v9210_v21 = vld [vmem:[#allocation2 + $0x258] sm:$0xff] }
 0x39d   : > { %5260 = vxpose.xlu2.b32.cont [3/16] (narrow) %v5228_v22, 32  ;;  %v9184_v48 = vmul.f32 %v7024_v43, %v8965_v58  ;;  %v4488_v27 = vrot.slane %v4257_v25, 2  ;;  %v743_v41 = vmax.f32 %v674_v39, 0.0  ;;  %v2070_v62 = vmul.f32 %v7029_v0, %v8954_v42 }
 0x39e   : > { %v4785_v14 = vmax.f32 %v4721_v46, 0.0  ;;  %v3077_v52 = vadd.f32 %v2913_v40, %v2595_v36  ;;  %v1822_v59 = vrot.slane %v1587_v11, 1  ;;  %v9191_v3 = vmul.f32 %v7029_v0, %v8965_v58  ;;  %v676_v36 = vpop.f32.mrf.mxu1 }
 0x39f   : > { %v1823_v32 = vrot.slane %v9184_v48, 1  ;;  %v807_v23 = vmin.f32 %v743_v41, 6.0  ;;  %v1437_v49 = vmul.f32 %v7022_v47, %v8954_v42  ;;  %v2305_v63 = vrot.slane %v2070_v62, 2 }
 0x3a0   : > { %v4849_v31 = vmin.f32 %v4785_v14, 6.0  ;;  %v3559_v8 = vadd.f32 %v3395_v16, %v3077_v52  ;;  %v2306_v61 = vrot.slane %v9191_v3, 2  ;;  %v2683_v37 = vmul.f32 %v7052_v24, %v9089_v26 }
 0x3a1   : > { %v1824_v33 = vsel %vm1718_vm2, %v1822_v59, %v1823_v32  ;;  %v1073_v35 = vrot.slane %v807_v23, 7  ;;  %v2533_v42 = vmul.f32 %v7037_v54, %v9089_v26  ;;  %v9208_v60 = vmul.f32 %v7052_v24, %v9091_v19 }
 0x3a2   : > { %5476 = vmatmul.msk.f32.gmra.mxu3 %vm817_vm4, %v4849_v31  ;;  %v1984_v12 = vadd.f32 %v1824_v33, %v1437_v49  ;;  %v3689_v6 = vadd.f32 %v3625_v55, %v3559_v8  ;;  %v2307_v20 = vsel %vm2201_vm3, %v2305_v63, %v2306_v61  ;;  %v3165_v28 = vmul.f32 %v7055_v53, %v9089_v26  ;;  %v10394_v31 = vld [vmem:[#allocation10_spill] sm:$0xff] }
 0x3a3   : > { %v9219_v1 = vmul.f32 %v7055_v53, %v9091_v19  ;;  %v1074_v10 = vsel %vm990_vm1, %v1070_v50, %v1073_v35  ;;  %1269 = vst.msk [vmem:[#allocation2 + $0x2c8] sm:$0x1] %vm1190_vm7, %v1073_v35  ;;  %v2917_v30 = vrot.slane %v2683_v37, 1  ;;  %v2918_v40 = vrot.slane %v9208_v60, 1 }
 0x3a4   : > { %v2467_v25 = vadd.f32 %v2307_v20, %v1984_v12  ;;  %v4171_v55 = vadd.f32 %v4007_v45, %v3689_v6  ;;  %v4489_v44 = vsel %vm2201_vm3, %v4484_v57, %v4488_v27  ;;  %1267 = vst.msk [vmem:[#allocation2 + $0x2b8] sm:$0xff] %vm817_vm4, %v1074_v10  ;;  %v3777_v46 = vmul.f32 %v7092_v18, %v9202_v4  ;;  %v10393_v45 = vld [vmem:[#allocation43_spill] sm:$0xff] }
 0x3a5   : > { %v3400_v22 = vrot.slane %v9219_v1, 2  ;;  %v2919_v50 = vsel %vm1718_vm2, %v2917_v30, %v2918_v40  ;;  %v3779_v39 = vmul.f32 %v7092_v18, %v9210_v21  ;;  %v4259_v57 = vmul.f32 %v9239_v15, %v9202_v4 }
 0x3a6   : > { %v2597_v16 = vadd.f32 %v2533_v42, %v2467_v25  ;;  %v5033_v11 = vadd.f32 %v8979_v2, %v10393_v45  ;;  %v4653_v14 = vadd.f32 %v4489_v44, %v4171_v55  ;;  %v3399_v27 = vrot.slane %v3165_v28, 2  ;;  %v9262_v25 = vld [vmem:[#allocation2 + $0x268] sm:$0x3] }
 0x3a7   : > { %v9247_v41 = vmul.f32 %v9239_v15, %v9210_v21  ;;  %v3627_v52 = vmul.f32 %v7089_v29, %v9202_v4  ;;  %v4012_v59 = vrot.slane %v3779_v39, 1  ;;  %v5229_v23 = vadd.f32 %v5140_v17, %v10394_v31 }
 0x3a8   : > { %v3079_v62 = vadd.f32 %v2919_v50, %v2597_v16  ;;  %v4723_v49 = vadd.f32 %v6885_v13, %v4653_v14  ;;  %v3401_v63 = vsel %vm2201_vm3, %v3399_v27, %v3400_v22  ;;  %v4011_v8 = vrot.slane %v3777_v46, 1 }
 0x3a9   : > { %v4493_v33 = vrot.slane %v4259_v57, 2  ;;  %v4494_v35 = vrot.slane %v9247_v41, 2  ;;  %5261 = vxpose.xlu2.b32.cont [4/16] (narrow) %v5229_v23, 32  ;;  %v5143_v12 = vadd.f32 %v5142_v56, %v9125_v7  ;;  %v677_v42 = vadd.f32 %v676_v36, %v6280_v5  ;;  %v5145_v56 = vpop.f32.mrf.mxu3  ;;  %v679_v23 = vpop.f32.mrf.mxu1 }
 0x3aa   : > { %v3561_v37 = vadd.f32 %v3401_v63, %v3079_v62  ;;  %v4787_v6 = vmax.f32 %v4723_v49, 0.0  ;;  %v4013_v20 = vsel %vm1718_vm2, %v4011_v8, %v4012_v59  ;;  %v1591_v17 = vmul.f32 %v7024_v43, %v9014_v34  ;;  %v10395_v63 = vld [vmem:[#allocation12_spill] sm:$0xff] }
 0x3ab   : > { %v2074_v28 = vmul.f32 %v7029_v0, %v9014_v34  ;;  %v745_v10 = vmax.f32 %v677_v42, 0.0  ;;  %v1439_v30 = vmul.f32 %v7022_v47, %v8965_v58  ;;  %v2687_v7 = vmul.f32 %v7052_v24, %v9139_v38 }
 0x3ac   : > { %v3691_v1 = vadd.f32 %v3627_v52, %v3561_v37  ;;  %v4851_v55 = vmin.f32 %v4787_v6, 6.0  ;;  %v1827_v44 = vrot.slane %v1591_v17, 1  ;;  %v3169_v16 = vmul.f32 %v7055_v53, %v9139_v38 }
 0x3ad   : > { %v2310_v46 = vrot.slane %v2074_v28, 2  ;;  %v4495_v34 = vsel %vm2201_vm3, %v4493_v33, %v4494_v35  ;;  %v809_v39 = vmin.f32 %v745_v10, 6.0  ;;  %v2922_v57 = vrot.slane %v2687_v7, 1 }
 0x3ae   : > { %v4173_v50 = vadd.f32 %v4013_v20, %v3691_v1  ;;  %5477 = vmatmul.msk.f32.gmra.mxu3 %vm817_vm4, %v4851_v55  ;;  %v1828_v58 = vsel %vm1718_vm2, %v1823_v32, %v1827_v44  ;;  %v2535_v36 = vmul.f32 %v7037_v54, %v9091_v19  ;;  %v3404_v45 = vrot.slane %v3169_v16, 2 }
 0x3af   : > { %v3781_v14 = vmul.f32 %v7092_v18, %v9262_v25  ;;  %v1076_v62 = vrot.slane %v809_v39, 7  ;;  %v1986_v52 = vadd.f32 %v1828_v58, %v1439_v30  ;;  %v3629_v31 = vmul.f32 %v7089_v29, %v9210_v21 }
 0x3b0   : > { %v4655_v27 = vadd.f32 %v4495_v34, %v4173_v50  ;;  %v2311_v48 = vsel %vm2201_vm3, %v2306_v61, %v2310_v46  ;;  %v4263_v32 = vmul.f32 %v9239_v15, %v9262_v25  ;;  %v5230_v8 = vadd.f32 %v5143_v12, %v10395_v63 }
 0x3b1   : > { %v4016_v49 = vrot.slane %v3781_v14, 1  ;;  %1271 = vst.msk [vmem:[#allocation2 + $0x2d8] sm:$0xfe] %vm1185_vm5, %v1076_v62  ;;  %v2469_v37 = vadd.f32 %v2311_v48, %v1986_v52  ;;  %v2923_v42 = vsel %vm1718_vm2, %v2918_v40, %v2922_v57  ;;  %v3405_v6 = vsel %vm2201_vm3, %v3400_v22, %v3404_v45  ;;  %v5148_v55 = vpop.f32.mrf.mxu3  ;;  %v682_v41 = vpop.f32.mrf.mxu1 }
 0x3b2   : > { %v4725_v33 = vadd.f32 %v6885_v13, %v4655_v27  ;;  %v4498_v61 = vrot.slane %v4263_v32, 2  ;;  %5262 = vxpose.xlu2.b32.cont [5/16] (narrow) %v5230_v8, 32  ;;  %v5146_v20 = vadd.f32 %v5145_v56, %v5033_v11  ;;  %v680_v17 = vadd.f32 %v679_v23, %v6280_v5  ;;  %v9332_v23 = vld [vmem:[#allocation2 + $0x288] sm:$0xff] }
 0x3b3   : > { %v4017_v3 = vsel %vm1718_vm2, %v4012_v59, %v4016_v49  ;;  %v2599_v12 = vadd.f32 %v2535_v36, %v2469_v37  ;;  %v1593_v1 = vmul.f32 %v7024_v43, %v9089_v26  ;;  %v9301_v10 = vmul.f32 %v7024_v43, %v9091_v19  ;;  %v9325_v36 = vld [vmem:[#allocation2 + $0x278] sm:$0xff] }
 0x3b4   : > { %v4789_v28 = vmax.f32 %v4725_v33, 0.0  ;;  %v747_v60 = vmax.f32 %v680_v17, 0.0  ;;  %v1441_v40 = vmul.f32 %v7022_v47, %v9089_v26  ;;  %v2076_v22 = vmul.f32 %v7029_v0, %v9089_v26 }
 0x3b5   : > { %v9309_v11 = vmul.f32 %v7029_v0, %v9091_v19  ;;  %v3081_v30 = vadd.f32 %v2923_v42, %v2599_v12  ;;  %v1832_v7 = vrot.slane %v1593_v1, 1  ;;  %v1833_v56 = vrot.slane %v9301_v10, 1  ;;  %v10396_v1 = vld [vmem:[#allocation14_spill] sm:$0xff] }
 0x3b6   : > { %v4853_v59 = vmin.f32 %v4789_v28, 6.0  ;;  %v811_v44 = vmin.f32 %v747_v60, 6.0  ;;  %v2315_v46 = vrot.slane %v2076_v22, 2  ;;  %v2537_v50 = vmul.f32 %v7037_v54, %v9202_v4 }
 0x3b7   : > { %v2316_v16 = vrot.slane %v9309_v11, 2  ;;  %v3563_v26 = vadd.f32 %v3405_v6, %v3081_v30  ;;  %v1834_v34 = vsel %vm1718_vm2, %v1832_v7, %v1833_v56  ;;  %v2689_v39 = vmul.f32 %v7052_v24, %v9202_v4 }
 0x3b8   : > { %5478 = vmatmul.msk.f32.gmra.mxu3 %vm817_vm4, %v4853_v59  ;;  %v9323_v57 = vmul.f32 %v7052_v24, %v9210_v21  ;;  %v1079_v58 = vrot.slane %v811_v44, 7  ;;  %v1988_v45 = vadd.f32 %v1834_v34, %v1441_v40  ;;  %v3171_v27 = vmul.f32 %v7055_v53, %v9202_v4  ;;  %v9364_v40 = vpop.f32.mrf.mxu2 }
 0x3b9   : > { %v2317_v14 = vsel %vm2201_vm3, %v2315_v46, %v2316_v16  ;;  %v3693_v52 = vadd.f32 %v3629_v31, %v3563_v26  ;;  %v2927_v48 = vrot.slane %v2689_v39, 1  ;;  %v9337_v32 = vmul.f32 %v7055_v53, %v9210_v21  ;;  %v5151_v34 = vpop.f32.mrf.mxu3 }
 0x3ba   : > { %v2928_v49 = vrot.slane %v9323_v57, 1  ;;  %v5036_v63 = vadd.f32 %v8979_v2, %v8856_v51  ;;  %v4499_v8 = vsel %vm2201_vm3, %v4494_v35, %v4498_v61  ;;  %v1080_v33 = vsel %vm990_vm1, %v1076_v62, %v1079_v58  ;;  %1275 = vst.msk [vmem:[#allocation2 + $0x2f8] sm:$0x1] %vm1190_vm7, %v1079_v58 }
 0x3bb   : > { %v2471_v31 = vadd.f32 %v2317_v14, %v1988_v45  ;;  %v4175_v37 = vadd.f32 %v4017_v3, %v3693_v52  ;;  %1273 = vst.msk [vmem:[#allocation2 + $0x2e8] sm:$0xff] %vm817_vm4, %v1080_v33  ;;  %v3410_v6 = vrot.slane %v9337_v32, 2  ;;  %v3783_v51 = vmul.f32 %v7092_v18, %v9325_v36 }
 0x3bc   : > { %v2929_v42 = vsel %vm1718_vm2, %v2927_v48, %v2928_v49  ;;  %v3785_v35 = vmul.f32 %v7092_v18, %v9332_v23  ;;  %v4265_v62 = vmul.f32 %v9239_v15, %v9325_v36  ;;  %v9359_v3 = vmul.f32 %v9239_v15, %v9332_v23 }
 0x3bd   : > { %v2601_v17 = vadd.f32 %v2537_v50, %v2471_v31  ;;  %v4657_v61 = vadd.f32 %v4499_v8, %v4175_v37  ;;  %v3409_v28 = vrot.slane %v3171_v27, 2  ;;  %v3631_v12 = vmul.f32 %v7089_v29, %v9325_v36  ;;  %v9380_v8 = vld [vmem:[#allocation2 + $0x298] sm:$0x3] }
 0x3be   : > { %v5231_v60 = vadd.f32 %v5146_v20, %v10396_v1  ;;  %v4021_v59 = vrot.slane %v3783_v51, 1  ;;  %v4022_v30 = vrot.slane %v3785_v35, 1  ;;  %v4504_v7 = vrot.slane %v9359_v3, 2 }
 0x3bf   : > { %v3083_v22 = vadd.f32 %v2929_v42, %v2601_v17  ;;  %v5039_v44 = vadd.f32 %v8979_v2, %v8997_v9  ;;  %v4727_v46 = vadd.f32 %v6885_v13, %v4657_v61  ;;  %v3411_v50 = vsel %vm2201_vm3, %v3409_v28, %v3410_v6 }
 0x3c0   : > { %5263 = vxpose.xlu2.b32.cont [6/16] (narrow) %v5231_v60, 32  ;;  %v683_v26 = vadd.f32 %v682_v41, %v6280_v5  ;;  %v4023_v20 = vsel %vm1718_vm2, %v4021_v59, %v4022_v30  ;;  %v4503_v58 = vrot.slane %v4265_v62, 2  ;;  %v5149_v45 = vadd.f32 %v5148_v55, %v5036_v63 }
 0x3c1   : > { %v3565_v39 = vadd.f32 %v3411_v50, %v3083_v22  ;;  %v4791_v14 = vmax.f32 %v4727_v46, 0.0  ;;  %v1597_v52 = vmul.f32 %v7024_v43, %v9139_v38  ;;  %v2080_v9 = vmul.f32 %v7029_v0, %v9139_v38  ;;  %v10397_v46 = vld [vmem:[#allocation16_spill] sm:$0xff] }
 0x3c2   : > { %v749_v27 = vmax.f32 %v683_v26, 0.0  ;;  %v4505_v32 = vsel %vm2201_vm3, %v4503_v58, %v4504_v7  ;;  %v2693_v33 = vmul.f32 %v7052_v24, %v9262_v25  ;;  %v3175_v55 = vmul.f32 %v7055_v53, %v9262_v25  ;;  %v5044_v26 = vpop.f32.mrf.mxu2 }
 0x3c3   : > { %v3695_v48 = vadd.f32 %v3631_v12, %v3565_v39  ;;  %v4855_v63 = vmin.f32 %v4791_v14, 6.0  ;;  %v1837_v37 = vrot.slane %v1597_v52, 1  ;;  %v2320_v42 = vrot.slane %v2080_v9, 2  ;;  %v685_v12 = vpop.f32.mrf.mxu1 }
 0x3c4   : > { %v9386_v31 = vmin.f32 %v749_v27, 6.0  ;;  %v1443_v38 = vmul.f32 %v7022_v47, %v9091_v19  ;;  %v2932_v41 = vrot.slane %v2693_v33, 1  ;;  %v3414_v17 = vrot.slane %v3175_v55, 2  ;;  %v9417_v27 = vpop.f32.mrf.mxu3 }
 0x3c5   : > { %v4177_v51 = vadd.f32 %v4023_v20, %v3695_v48  ;;  %5479 = vmatmul.msk.f32.gmra.mxu3 %vm817_vm4, %v4855_v63  ;;  %v1838_v62 = vsel %vm1718_vm2, %v1833_v56, %v1837_v37  ;;  %v2539_v61 = vmul.f32 %v7037_v54, %v9210_v21  ;;  %v3787_v28 = vmul.f32 %v7092_v18, %v9380_v8 }
 0x3c6   : > { %v1082_v35 = vrot.slane %v9386_v31, 7  ;;  %v1990_v60 = vadd.f32 %v1838_v62, %v1443_v38  ;;  %v2321_v19 = vsel %vm2201_vm3, %v2316_v16, %v2320_v42  ;;  %v3633_v22 = vmul.f32 %v7089_v29, %v9332_v23  ;;  %v9438_v38 = vld [vmem:[#allocation2 + $0x2a8] sm:$0xff]  ;;  %v9447_v62 = vld [vmem:[#allocation2 + $0x2b8] sm:$0xff] }
 0x3c7   : > { %v4659_v1 = vadd.f32 %v4505_v32, %v4177_v51  ;;  %v2933_v10 = vsel %vm1718_vm2, %v2928_v49, %v2932_v41  ;;  %v4026_v56 = vrot.slane %v3787_v28, 1  ;;  %v4269_v59 = vmul.f32 %v9239_v15, %v9380_v8 }
 0x3c8   : > { %1277 = vst.msk [vmem:[#allocation2 + $0x308] sm:$0xfe] %vm1185_vm5, %v1082_v35  ;;  %v5232_v50 = vadd.f32 %v5149_v45, %v10397_v46  ;;  %v2473_v39 = vadd.f32 %v2321_v19, %v1990_v60  ;;  %v3415_v16 = vsel %vm2201_vm3, %v3410_v6, %v3414_v17  ;;  %v686_v20 = vadd.f32 %v685_v12, %v6280_v5 }
 0x3c9   : > { %v4729_v11 = vadd.f32 %v6885_v13, %v4659_v1  ;;  %v4027_v58 = vsel %vm1718_vm2, %v4022_v30, %v4026_v56  ;;  %v4508_v14 = vrot.slane %v4269_v59, 2  ;;  %v5152_v57 = vadd.f32 %v5151_v34, %v5039_v44 }
 0x3ca   : > { %5264 = vxpose.xlu2.b32.cont [7/16] (narrow) %v5232_v50, 32  ;;  %v1599_v49 = vmul.f32 %v7024_v43, %v9202_v4  ;;  %v2603_v45 = vadd.f32 %v2539_v61, %v2473_v39  ;;  %v751_v9 = vmax.f32 %v686_v20, 0.0  ;;  %v9421_v48 = vmul.f32 %v7024_v43, %v9210_v21 }
 0x3cb   : > { %v4793_v52 = vmax.f32 %v4729_v11, 0.0  ;;  %v1445_v5 = vmul.f32 %v7022_v47, %v9202_v4  ;;  %v2082_v30 = vmul.f32 %v7029_v0, %v9202_v4  ;;  %v9429_v44 = vmul.f32 %v7029_v0, %v9210_v21 }
 0x3cc   : > { %v1842_v6 = vrot.slane %v1599_v49, 1  ;;  %v3085_v32 = vadd.f32 %v2933_v10, %v2603_v45  ;;  %v815_v33 = vmin.f32 %v751_v9, 6.0  ;;  %v1843_v55 = vrot.slane %v9421_v48, 1 }
 0x3cd   : > { %v4857_v34 = vmin.f32 %v4793_v52, 6.0  ;;  %v2325_v63 = vrot.slane %v2082_v30, 2  ;;  %v2326_v31 = vrot.slane %v9429_v44, 2  ;;  %v2541_v37 = vmul.f32 %v7037_v54, %v9325_v36  ;;  %v5157_v52 = vpop.f32.mrf.mxu3 }
 0x3ce   : > { %v2695_v42 = vmul.f32 %v7052_v24, %v9325_v36  ;;  %v3567_v4 = vadd.f32 %v3415_v16, %v3085_v32  ;;  %v1085_v51 = vrot.slane %v815_v33, 7  ;;  %v1844_v41 = vsel %vm1718_vm2, %v1842_v6, %v1843_v55  ;;  %v10398_v6 = vld [vmem:[#allocation18_spill] sm:$0xff] }
 0x3cf   : > { %5480 = vmatmul.msk.f32.gmra.mxu3 %vm817_vm4, %v4857_v34  ;;  %v9445_v17 = vmul.f32 %v7052_v24, %v9332_v23  ;;  %v1992_v61 = vadd.f32 %v1844_v41, %v1445_v5  ;;  %v2327_v28 = vsel %vm2201_vm3, %v2325_v63, %v2326_v31  ;;  %v3177_v1 = vmul.f32 %v7055_v53, %v9325_v36 }
 0x3d0   : > { %v2937_v12 = vrot.slane %v2695_v42, 1  ;;  %v3697_v60 = vadd.f32 %v3633_v22, %v3567_v4  ;;  %v1086_v19 = vsel %vm990_vm1, %v1082_v35, %v1085_v51  ;;  %1281 = vst.msk [vmem:[#allocation2 + $0x328] sm:$0x1] %vm1190_vm7, %v1085_v51  ;;  %v9459_v56 = vmul.f32 %v7055_v53, %v9332_v23  ;;  %v5047_v22 = vpop.f32.mrf.mxu2  ;;  %v9489_v51 = vld [vmem:[#allocation2 + $0x2c8] sm:$0x3] }
 0x3d1   : > { %v2938_v10 = vrot.slane %v9445_v17, 1  ;;  %v5042_v59 = vadd.f32 %v8979_v2, %v9364_v40  ;;  %1279 = vst.msk [vmem:[#allocation2 + $0x318] sm:$0xff] %vm817_vm4, %v1086_v19  ;;  %v2475_v46 = vadd.f32 %v2327_v28, %v1992_v61  ;;  %v3789_v50 = vmul.f32 %v7092_v18, %v9438_v38 }
 0x3d2   : > { %v4179_v11 = vadd.f32 %v4027_v58, %v3697_v60  ;;  %v3420_v39 = vrot.slane %v9459_v56, 2  ;;  %v3791_v16 = vmul.f32 %v7092_v18, %v9447_v62  ;;  %v4509_v40 = vsel %vm2201_vm3, %v4504_v7, %v4508_v14 }
 0x3d3   : > { %v2939_v35 = vsel %vm1718_vm2, %v2937_v12, %v2938_v10  ;;  %v2605_v20 = vadd.f32 %v2541_v37, %v2475_v46  ;;  %v4271_v49 = vmul.f32 %v9239_v15, %v9438_v38  ;;  %v9479_v58 = vmul.f32 %v9239_v15, %v9447_v62 }
 0x3d4   : > { %v4661_v45 = vadd.f32 %v4509_v40, %v4179_v11  ;;  %v3419_v9 = vrot.slane %v3177_v1, 2  ;;  %v4032_v5 = vrot.slane %v3791_v16, 1  ;;  %v5233_v30 = vadd.f32 %v5152_v57, %v10398_v6 }
 0x3d5   : > { %v5045_v34 = vadd.f32 %v8979_v2, %v5044_v26  ;;  %v3087_v32 = vadd.f32 %v2939_v35, %v2605_v20  ;;  %v3635_v3 = vmul.f32 %v7089_v29, %v9438_v38  ;;  %v4031_v7 = vrot.slane %v3789_v50, 1  ;;  %v9526_v6 = vpop.f32.mrf.mxu3 }
 0x3d6   : > { %v4731_v14 = vadd.f32 %v6885_v13, %v4661_v45  ;;  %v3421_v33 = vsel %vm2201_vm3, %v3419_v9, %v3420_v39  ;;  %v4513_v63 = vrot.slane %v4271_v49, 2  ;;  %v4514_v37 = vrot.slane %v9479_v58, 2  ;;  %5265 = vxpose.xlu2.b32.cont [8/16] (narrow) %v5233_v30, 32  ;;  %v10399_v45 = vld [vmem:[#allocation20_spill] sm:$0xff] }
 0x3d7   : > { %v3569_v42 = vadd.f32 %v3421_v33, %v3087_v32  ;;  %v4033_v4 = vsel %vm1718_vm2, %v4031_v7, %v4032_v5  ;;  %v1603_v26 = vmul.f32 %v7024_v43, %v9262_v25  ;;  %v2086_v57 = vmul.f32 %v7029_v0, %v9262_v25 }
 0x3d8   : > { %v4795_v41 = vmax.f32 %v4731_v14, 0.0  ;;  %v5155_v61 = vadd.f32 %v9417_v27, %v5042_v59  ;;  %v2699_v28 = vmul.f32 %v7052_v24, %v9380_v8  ;;  %v3181_v12 = vmul.f32 %v7055_v53, %v9380_v8 }
 0x3d9   : > { %v3699_v1 = vadd.f32 %v3635_v3, %v3569_v42  ;;  %v1447_v60 = vmul.f32 %v7022_v47, %v9210_v21  ;;  %v1847_v19 = vrot.slane %v1603_v26, 1  ;;  %v2330_v56 = vrot.slane %v2086_v57, 2  ;;  %v5050_v21 = vpop.f32.mrf.mxu2 }
 0x3da   : > { %v4859_v46 = vmin.f32 %v4795_v41, 6.0  ;;  %v2942_v50 = vrot.slane %v2699_v28, 1  ;;  %v3424_v11 = vrot.slane %v3181_v12, 2  ;;  %v3793_v25 = vmul.f32 %v7092_v18, %v9489_v51  ;;  %v9550_v41 = vld [vmem:[#allocation2 + $0x2d8] sm:$0xff]  ;;  %v9559_v12 = vld [vmem:[#allocation2 + $0x2e8] sm:$0xff] }
 0x3db   : > { %v9505_v27 = vadd.f32 %v8979_v2, %v5047_v22  ;;  %v4181_v59 = vadd.f32 %v4033_v4, %v3699_v1  ;;  %v1848_v35 = vsel %vm1718_vm2, %v1843_v55, %v1847_v19  ;;  %v9512_v16 = vmul.f32 %v9239_v15, %v9489_v51 }
 0x3dc   : > { %5481 = vmatmul.msk.f32.gmra.mxu3 %vm817_vm4, %v4859_v46  ;;  %v4515_v40 = vsel %vm2201_vm3, %v4513_v63, %v4514_v37  ;;  %v1994_v20 = vadd.f32 %v1848_v35, %v1447_v60  ;;  %v2543_v2 = vmul.f32 %v7037_v54, %v9332_v23  ;;  %v4036_v22 = vrot.slane %v3793_v25, 1 }
 0x3dd   : > { %v4663_v49 = vadd.f32 %v4515_v40, %v4181_v59  ;;  %v2331_v48 = vsel %vm2201_vm3, %v2326_v31, %v2330_v56  ;;  %v3637_v55 = vmul.f32 %v7089_v29, %v9447_v62  ;;  %v5234_v9 = vadd.f32 %v5155_v61, %v10399_v45 }
 0x3de   : > { %v2477_v30 = vadd.f32 %v2331_v48, %v1994_v20  ;;  %v2943_v32 = vsel %vm1718_vm2, %v2938_v10, %v2942_v50  ;;  %v3425_v3 = vsel %vm2201_vm3, %v3420_v39, %v3424_v11  ;;  %v4518_v7 = vrot.slane %v9512_v16, 2  ;;  %v9582_v16 = vld [vmem:[%s9931_s6] ss:$0 sm:$0xff] }
 0x3df   : > { %v4733_v44 = vadd.f32 %v6885_v13, %v4663_v49  ;;  %v4037_v31 = vsel %vm1718_vm2, %v4032_v5, %v4036_v22  ;;  %5266 = vxpose.xlu2.b32.cont [9/16] (narrow) %v5234_v9, 32  ;;  %v1605_v14 = vmul.f32 %v7024_v43, %v9325_v36  ;;  %v9539_v33 = vmul.f32 %v7024_v43, %v9332_v23 }
 0x3e0   : > { %v2607_v63 = vadd.f32 %v2543_v2, %v2477_v30  ;;  %v5158_v17 = vadd.f32 %v5157_v52, %v5045_v34  ;;  %v2088_v10 = vmul.f32 %v7029_v0, %v9325_v36  ;;  %v9545_v39 = vmul.f32 %v7029_v0, %v9332_v23 }
 0x3e1   : > { %v4797_v42 = vmax.f32 %v4733_v44, 0.0  ;;  %v1852_v4 = vrot.slane %v1605_v14, 1  ;;  %v1853_v5 = vrot.slane %v9539_v33, 1  ;;  %v2701_v26 = vmul.f32 %v7052_v24, %v9438_v38  ;;  %v5053_v20 = vpop.f32.mrf.mxu2  ;;  %v10400_v44 = vld [vmem:[#allocation22_spill] sm:$0xff] }
 0x3e2   : > { %v3089_v57 = vadd.f32 %v2943_v32, %v2607_v63  ;;  %v1449_v52 = vmul.f32 %v7022_v47, %v9325_v36  ;;  %v2336_v34 = vrot.slane %v9545_v39, 2  ;;  %v9557_v61 = vmul.f32 %v7052_v24, %v9447_v62  ;;  %v5163_v32 = vpop.f32.mrf.mxu3 }
 0x3e3   : > { %v4861_v28 = vmin.f32 %v4797_v42, 6.0  ;;  %v1854_v1 = vsel %vm1718_vm2, %v1852_v4, %v1853_v5  ;;  %v2335_v60 = vrot.slane %v2088_v10, 2  ;;  %v3183_v19 = vmul.f32 %v7055_v53, %v9438_v38 }
 0x3e4   : > { %v3571_v56 = vadd.f32 %v3425_v3, %v3089_v57  ;;  %v1996_v46 = vadd.f32 %v1854_v1, %v1449_v52  ;;  %v2545_v36 = vmul.f32 %v7037_v54, %v9438_v38  ;;  %v2948_v50 = vrot.slane %v9557_v61, 1  ;;  %v9612_v1 = vld [vmem:[#allocation2 + $0x2f8] sm:$0x3] }
 0x3e5   : > { %5482 = vmatmul.msk.f32.gmra.mxu3 %vm817_vm4, %v4861_v28  ;;  %v2337_v11 = vsel %vm2201_vm3, %v2335_v60, %v2336_v34  ;;  %v2947_v25 = vrot.slane %v2701_v26, 1  ;;  %v9575_v59 = vmul.f32 %v7055_v53, %v9447_v62  ;;  %v3795_v35 = vmul.f32 %v7092_v18, %v9550_v41 }
 0x3e6   : > { %v5051_v40 = vadd.f32 %v9582_v16, %v5050_v21  ;;  %v3701_v2 = vadd.f32 %v3637_v55, %v3571_v56  ;;  %v2479_v22 = vadd.f32 %v2337_v11, %v1996_v46  ;;  %v9587_v49 = vmul.f32 %v7092_v18, %v9559_v12 }
 0x3e7   : > { %v2949_v48 = vsel %vm1718_vm2, %v2947_v25, %v2948_v50  ;;  %v3429_v45 = vrot.slane %v3183_v19, 2  ;;  %v3430_v9 = vrot.slane %v9575_v59, 2  ;;  %v9595_v30 = vmul.f32 %v9239_v15, %v9559_v12 }
 0x3e8   : > { %v4183_v21 = vadd.f32 %v4037_v31, %v3701_v2  ;;  %v2609_v3 = vadd.f32 %v2545_v36, %v2479_v22  ;;  %v4042_v55 = vrot.slane %v9587_v49, 1  ;;  %v5235_v14 = vadd.f32 %v5158_v17, %v10400_v44  ;;  %v10401_v44 = vld [vmem:[#allocation24_spill] sm:$0xff] }
 0x3e9   : > { %v9600_v63 = vadd.f32 %v9582_v16, %v5053_v20  ;;  %v4519_v10 = vsel %vm2201_vm3, %v4514_v37, %v4518_v7  ;;  %v3639_v42 = vmul.f32 %v7089_v29, %v9550_v41  ;;  %v4041_v4 = vrot.slane %v3795_v35, 1  ;;  %v5056_v22 = vpop.f32.mrf.mxu2 }
 0x3ea   : > { %v4665_v26 = vadd.f32 %v4519_v10, %v4183_v21  ;;  %v3091_v57 = vadd.f32 %v2949_v48, %v2609_v3  ;;  %v3431_v31 = vsel %vm2201_vm3, %v3429_v45, %v3430_v9  ;;  %v4277_v52 = vmul.f32 %v9239_v15, %v9550_v41  ;;  %5267 = vxpose.xlu2.b32.cont [10/16] (narrow) %v5235_v14, 32  ;;  %v9645_v10 = vpop.f32.mrf.mxu3 }
 0x3eb   : > { %v4043_v17 = vsel %vm1718_vm2, %v4041_v4, %v4042_v55  ;;  %v4524_v28 = vrot.slane %v9595_v30, 2  ;;  %v1609_v58 = vmul.f32 %v7024_v43, %v9380_v8  ;;  %v2092_v37 = vmul.f32 %v7029_v0, %v9380_v8 }
 0x3ec   : > { %v4735_v7 = vadd.f32 %v6885_v13, %v4665_v26  ;;  %v3573_v60 = vadd.f32 %v3431_v31, %v3091_v57  ;;  %v5161_v19 = vadd.f32 %v9526_v6, %v9505_v27  ;;  %v2705_v56 = vmul.f32 %v7052_v24, %v9489_v51 }
 0x3ed   : > { %v1451_v46 = vmul.f32 %v7022_v47, %v9332_v23  ;;  %v1857_v36 = vrot.slane %v1609_v58, 1  ;;  %v2340_v11 = vrot.slane %v2092_v37, 2  ;;  %v3187_v25 = vmul.f32 %v7055_v53, %v9489_v51 }
 0x3ee   : > { %v4799_v59 = vmax.f32 %v4735_v7, 0.0  ;;  %v3703_v35 = vadd.f32 %v3639_v42, %v3573_v60  ;;  %v2952_v8 = vrot.slane %v2705_v56, 1  ;;  %v3799_v20 = vmul.f32 %v7092_v18, %v9612_v1 }
 0x3ef   : > { %v4523_v2 = vrot.slane %v4277_v52, 2  ;;  %v1858_v27 = vsel %vm1718_vm2, %v1853_v5, %v1857_v36  ;;  %v3434_v6 = vrot.slane %v3187_v25, 2  ;;  %v9634_v23 = vmul.f32 %v9239_v15, %v9612_v1 }
 0x3f0   : > { %v4863_v49 = vmin.f32 %v4799_v59, 6.0  ;;  %v4185_v48 = vadd.f32 %v4043_v17, %v3703_v35  ;;  %v1998_v45 = vadd.f32 %v1858_v27, %v1451_v46  ;;  %v2547_v21 = vmul.f32 %v7037_v54, %v9447_v62  ;;  %v9674_v46 = vld [vmem:[#allocation2 + $0x308] sm:$0xff]  ;;  %v9683_v35 = vld [vmem:[#allocation2 + $0x318] sm:$0xff] }
 0x3f1   : > { %v4525_v3 = vsel %vm2201_vm3, %v4523_v2, %v4524_v28  ;;  %v2341_v33 = vsel %vm2201_vm3, %v2336_v34, %v2340_v11  ;;  %v4046_v5 = vrot.slane %v3799_v20, 1  ;;  %v5236_v14 = vadd.f32 %v5161_v19, %v10401_v44 }
 0x3f2   : > { %5483 = vmatmul.msk.f32.gmra.mxu3 %vm817_vm4, %v4863_v49  ;;  %v4667_v42 = vadd.f32 %v4525_v3, %v4185_v48  ;;  %v2481_v4 = vadd.f32 %v2341_v33, %v1998_v45  ;;  %v2953_v26 = vsel %vm1718_vm2, %v2948_v50, %v2952_v8  ;;  %v3641_v57 = vmul.f32 %v7089_v29, %v9559_v12  ;;  %v9693_v49 = vpop.f32.mrf.mxu2 }
 0x3f3   : > { %v3435_v39 = vsel %vm2201_vm3, %v3430_v9, %v3434_v6  ;;  %v4528_v34 = vrot.slane %v9634_v23, 2  ;;  %5268 = vxpose.xlu2.b32.cont [11/16] (narrow) %v5236_v14, 32  ;;  %v5164_v31 = vadd.f32 %v5163_v32, %v5051_v40  ;;  %v1611_v52 = vmul.f32 %v7024_v43, %v9438_v38 }
 0x3f4   : > { %v4737_v17 = vadd.f32 %v6885_v13, %v4667_v42  ;;  %v2611_v58 = vadd.f32 %v2547_v21, %v2481_v4  ;;  %v9660_v61 = vmul.f32 %v7024_v43, %v9447_v62  ;;  %v2094_v50 = vmul.f32 %v7029_v0, %v9438_v38  ;;  %v5169_v42 = vpop.f32.mrf.mxu3 }
 0x3f5   : > { %v4047_v37 = vsel %vm1718_vm2, %v4042_v55, %v4046_v5  ;;  %v1453_v9 = vmul.f32 %v7022_v47, %v9438_v38  ;;  %v9669_v40 = vmul.f32 %v7029_v0, %v9447_v62  ;;  %v2707_v32 = vmul.f32 %v7052_v24, %v9550_v41 }
 0x3f6   : > { %v4801_v7 = vmax.f32 %v4737_v17, 0.0  ;;  %v3093_v60 = vadd.f32 %v2953_v26, %v2611_v58  ;;  %v1862_v19 = vrot.slane %v1611_v52, 1  ;;  %v1863_v56 = vrot.slane %v9660_v61, 1  ;;  %v10402_v58 = vld [vmem:[#allocation26_spill] sm:$0xff] }
 0x3f7   : > { %v2345_v36 = vrot.slane %v2094_v50, 2  ;;  %v2346_v55 = vrot.slane %v9669_v40, 2  ;;  %v9679_v38 = vmul.f32 %v7052_v24, %v9559_v12  ;;  %v3189_v11 = vmul.f32 %v7055_v53, %v9550_v41 }
 0x3f8   : > { %v4865_v25 = vmin.f32 %v4801_v7, 6.0  ;;  %v3575_v59 = vadd.f32 %v3435_v39, %v3093_v60  ;;  %v1864_v8 = vsel %vm1718_vm2, %v1862_v19, %v1863_v56  ;;  %v9688_v20 = vmul.f32 %v7055_v53, %v9559_v12 }
 0x3f9   : > { %v2000_v2 = vadd.f32 %v1864_v8, %v1453_v9  ;;  %v2549_v27 = vmul.f32 %v7037_v54, %v9550_v41  ;;  %v2957_v6 = vrot.slane %v2707_v32, 1  ;;  %v2958_v23 = vrot.slane %v9679_v38, 1 }
 0x3fa   : > { %5484 = vmatmul.msk.f32.gmra.mxu3 %vm817_vm4, %v4865_v25  ;;  %v3705_v48 = vadd.f32 %v3641_v57, %v3575_v59  ;;  %v2347_v45 = vsel %vm2201_vm3, %v2345_v36, %v2346_v55  ;;  %v3440_v21 = vrot.slane %v9688_v20, 2  ;;  %v3801_v3 = vmul.f32 %v7092_v18, %v9674_v46  ;;  %v9722_v36 = vld [vmem:[#allocation2 + $0x328] sm:$0x3] }
 0x3fb   : > { %v9703_v33 = vadd.f32 %v9582_v16, %v5056_v22  ;;  %v2483_v5 = vadd.f32 %v2347_v45, %v2000_v2  ;;  %v3803_v44 = vmul.f32 %v7092_v18, %v9683_v35  ;;  %v4283_v14 = vmul.f32 %v9239_v15, %v9674_v46  ;;  %v9741_v45 = vpop.f32.mrf.mxu2 }
 0x3fc   : > { %v4187_v4 = vadd.f32 %v4047_v37, %v3705_v48  ;;  %v2959_v26 = vsel %vm1718_vm2, %v2957_v6, %v2958_v23  ;;  %v3439_v57 = vrot.slane %v3189_v11, 2  ;;  %v9712_v39 = vmul.f32 %v9239_v15, %v9683_v35 }
 0x3fd   : > { %v4529_v22 = vsel %vm2201_vm3, %v4524_v28, %v4528_v34  ;;  %v2613_v52 = vadd.f32 %v2549_v27, %v2483_v5  ;;  %v4052_v17 = vrot.slane %v3803_v44, 1  ;;  %v5237_v61 = vadd.f32 %v5164_v31, %v10402_v58 }
 0x3fe   : > { %v4669_v50 = vadd.f32 %v4529_v22, %v4187_v4  ;;  %v3441_v9 = vsel %vm2201_vm3, %v3439_v57, %v3440_v21  ;;  %v3643_v37 = vmul.f32 %v7089_v29, %v9674_v46  ;;  %v4051_v32 = vrot.slane %v3801_v3, 1  ;;  %v9753_v57 = vpop.f32.mrf.mxu3 }
 0x3ff   : > { %v3095_v7 = vadd.f32 %v2959_v26, %v2613_v52  ;;  %v4533_v60 = vrot.slane %v4283_v14, 2  ;;  %v4534_v19 = vrot.slane %v9712_v39, 2  ;;  %5269 = vxpose.xlu2.b32.cont [12/16] (narrow) %v5237_v61, 32  ;;  %v1615_v30 = vmul.f32 %v7024_v43, %v9489_v51  ;;  %v10403_v61 = vld [vmem:[#allocation28_spill] sm:$0xff] }
 0x400   : > { %v4739_v28 = vadd.f32 %v6885_v13, %v4669_v50  ;;  %v4053_v34 = vsel %vm1718_vm2, %v4051_v32, %v4052_v17  ;;  %v5167_v31 = vadd.f32 %v9645_v10, %v9600_v63  ;;  %v2098_v38 = vmul.f32 %v7029_v0, %v9489_v51 }
 0x401   : > { %v3577_v11 = vadd.f32 %v3441_v9, %v3095_v7  ;;  %v1867_v25 = vrot.slane %v1615_v30, 1  ;;  %v2711_v59 = vmul.f32 %v7052_v24, %v9612_v1  ;;  %v3193_v8 = vmul.f32 %v7055_v53, %v9612_v1 }
 0x402   : > { %v4803_v20 = vmax.f32 %v4739_v28, 0.0  ;;  %v1455_v2 = vmul.f32 %v7022_v47, %v9447_v62  ;;  %v2350_v27 = vrot.slane %v2098_v38, 2  ;;  %v3805_v6 = vmul.f32 %v7092_v18, %v9722_v36 }
 0x403   : > { %v3707_v63 = vadd.f32 %v3643_v37, %v3577_v11  ;;  %v1868_v10 = vsel %vm1718_vm2, %v1863_v56, %v1867_v25  ;;  %v2962_v51 = vrot.slane %v2711_v59, 1  ;;  %v3444_v48 = vrot.slane %v3193_v8, 2 }
 0x404   : > { %v4867_v3 = vmin.f32 %v4803_v20, 6.0  ;;  %v2002_v5 = vadd.f32 %v1868_v10, %v1455_v2  ;;  %v2551_v44 = vmul.f32 %v7037_v54, %v9559_v12  ;;  %v4056_v14 = vrot.slane %v3805_v6, 1  ;;  %v9786_v20 = vld [vmem:[#allocation2 + $0x348] sm:$0xff] }
 0x405   : > { %v4189_v4 = vadd.f32 %v4053_v34, %v3707_v63  ;;  %v4535_v62 = vsel %vm2201_vm3, %v4533_v60, %v4534_v19  ;;  %v2351_v26 = vsel %vm2201_vm3, %v2346_v55, %v2350_v27  ;;  %v4287_v56 = vmul.f32 %v9239_v15, %v9722_v36 }
 0x406   : > { %5485 = vmatmul.msk.f32.gmra.mxu3 %vm817_vm4, %v4867_v3  ;;  %v2485_v22 = vadd.f32 %v2351_v26, %v2002_v5  ;;  %v2963_v52 = vsel %vm1718_vm2, %v2958_v23, %v2962_v51  ;;  %v3645_v58 = vmul.f32 %v7089_v29, %v9683_v35  ;;  %v5238_v50 = vadd.f32 %v5167_v31, %v10403_v61  ;;  %v5065_v3 = vpop.f32.mrf.mxu2 }
 0x407   : > { %v4671_v9 = vadd.f32 %v4535_v62, %v4189_v4  ;;  %v3445_v40 = vsel %vm2201_vm3, %v3440_v21, %v3444_v48  ;;  %v4057_v55 = vsel %vm1718_vm2, %v4052_v17, %v4056_v14  ;;  %v4538_v37 = vrot.slane %v4287_v56, 2 }
 0x408   : > { %v2615_v32 = vadd.f32 %v2551_v44, %v2485_v22  ;;  %5270 = vxpose.xlu2.b32.cont [13/16] (narrow) %v5238_v50, 32  ;;  %v1617_v7 = vmul.f32 %v7024_v43, %v9550_v41  ;;  %v9766_v60 = vmul.f32 %v7024_v43, %v9559_v12  ;;  %v2100_v23 = vmul.f32 %v7029_v0, %v9550_v41 }
 0x409   : > { %v4741_v30 = vadd.f32 %v6885_v13, %v4671_v9  ;;  %v5170_v28 = vadd.f32 %v5169_v42, %v9703_v33  ;;  %v1457_v21 = vmul.f32 %v7022_v47, %v9550_v41  ;;  %v9776_v17 = vmul.f32 %v7029_v0, %v9559_v12  ;;  %v1385_v42 = vld [vmem:[#allocation2 + $0x338] sm:$0xff] }
 0x40a   : > { %v3097_v34 = vadd.f32 %v2963_v52, %v2615_v32  ;;  %v1872_v31 = vrot.slane %v1617_v7, 1  ;;  %v1873_v38 = vrot.slane %v9766_v60, 1  ;;  %v2355_v11 = vrot.slane %v2100_v23, 2  ;;  %v10404_v7 = vld [vmem:[#allocation30_spill] sm:$0xff]  ;;  %v10405_v60 = vld [vmem:[#allocation32_spill] sm:$0xff] }
 0x40b   : > { %v4805_v25 = vmax.f32 %v4741_v30, 0.0  ;;  %v2356_v59 = vrot.slane %v9776_v17, 2  ;;  %v2713_v8 = vmul.f32 %v7052_v24, %v9674_v46  ;;  %v9784_v33 = vmul.f32 %v7052_v24, %v9683_v35 }
 0x40c   : > { %v3579_v41 = vadd.f32 %v3445_v40, %v3097_v34  ;;  %v1874_v2 = vsel %vm1718_vm2, %v1872_v31, %v1873_v38  ;;  %v3195_v27 = vmul.f32 %v7055_v53, %v9674_v46  ;;  %v9795_v6 = vmul.f32 %v7055_v53, %v9683_v35 }
 0x40d   : > { %v4869_v63 = vmin.f32 %v4805_v25, 6.0  ;;  %v4539_v10 = vsel %vm2201_vm3, %v4534_v19, %v4538_v37  ;;  %v2004_v51 = vadd.f32 %v1874_v2, %v1457_v21  ;;  %v2553_v48 = vmul.f32 %v7037_v54, %v9674_v46  ;;  %v5175_v46 = vpop.f32.mrf.mxu3 }
 0x40e   : > { %v3709_v5 = vadd.f32 %v3645_v58, %v3579_v41  ;;  %v2357_v44 = vsel %vm2201_vm3, %v2355_v11, %v2356_v59  ;;  %v2967_v14 = vrot.slane %v2713_v8, 1  ;;  %v2968_v4 = vrot.slane %v9784_v33, 1 }
 0x40f   : > { %5486 = vmatmul.msk.f32.gmra.mxu3 %vm817_vm4, %v4869_v63  ;;  %v2487_v62 = vadd.f32 %v2357_v44, %v2004_v51  ;;  %v3450_v39 = vrot.slane %v9795_v6, 2  ;;  %v3807_v19 = vmul.f32 %v7092_v18, %v1385_v42  ;;  %v9811_v26 = vmul.f32 %v7092_v18, %v9786_v20  ;;  %v1389_v63 = vld [vmem:[#allocation2 + $0x358] sm:$0x3]  ;;  %v10408_v6 = vld [vmem:[#allocation5_spill] sm:$0xff] }
 0x410   : > { %v4191_v56 = vadd.f32 %v4057_v55, %v3709_v5  ;;  %v2969_v22 = vsel %vm1718_vm2, %v2967_v14, %v2968_v4  ;;  %v3449_v52 = vrot.slane %v3195_v27, 2  ;;  %v4289_v58 = vmul.f32 %v9239_v15, %v1385_v42 }
 0x411   : > { %v2617_v61 = vadd.f32 %v2553_v48, %v2487_v62  ;;  %v4061_v50 = vrot.slane %v3807_v19, 1  ;;  %v4062_v9 = vrot.slane %v9811_v26, 1  ;;  %v9818_v40 = vmul.f32 %v9239_v15, %v9786_v20 }
 0x412   : > { %v5060_v37 = vadd.f32 %v9582_v16, %v9693_v49  ;;  %v4673_v32 = vadd.f32 %v4539_v10, %v4191_v56  ;;  %v5239_v23 = vadd.f32 %v5170_v28, %v10404_v7  ;;  %v3451_v30 = vsel %vm2201_vm3, %v3449_v52, %v3450_v39  ;;  %v5068_v10 = vpop.f32.mrf.mxu2  ;;  %v10407_v7 = vld [vmem:[#allocation34_spill] sm:$0xff] }
 0x413   : > { %v3099_v55 = vadd.f32 %v2969_v22, %v2617_v61  ;;  %v3647_v21 = vmul.f32 %v7089_v29, %v1385_v42  ;;  %v4543_v34 = vrot.slane %v4289_v58, 2  ;;  %v4544_v11 = vrot.slane %v9818_v40, 2  ;;  %v10406_v58 = vld [vmem:[#allocation3_spill] sm:$0xff] }
 0x414   : > { %v4743_v31 = vadd.f32 %v6885_v13, %v4673_v32  ;;  %5271 = vxpose.xlu2.b32.cont [14/16] (narrow) %v5239_v23, 32  ;;  %v1621_v15 = vmul.f32 %v7024_v43, %v9612_v1  ;;  %v2104_v49 = vmul.f32 %v7029_v0, %v9612_v1  ;;  %v4063_v25 = vsel %vm1718_vm2, %v4061_v50, %v4062_v9 }
 0x415   : > { %v3581_v28 = vadd.f32 %v3451_v30, %v3099_v55  ;;  %v2717_v8 = vmul.f32 %v7052_v24, %v9722_v36  ;;  %v5173_v41 = vadd.f32 %v9753_v57, %v5060_v37  ;;  %v1459_v43 = vmul.f32 %v7022_v47, %v9559_v12  ;;  %v5178_v1 = vpop.f32.mrf.mxu3 }
 0x416   : > { %v4807_v33 = vmax.f32 %v4743_v31, 0.0  ;;  %v1877_v42 = vrot.slane %v1621_v15, 1  ;;  %v2360_v2 = vrot.slane %v2104_v49, 2  ;;  %v3199_v0 = vmul.f32 %v7055_v53, %v9722_v36 }
 0x417   : > { %v3711_v27 = vadd.f32 %v3647_v21, %v3581_v28  ;;  %v4545_v48 = vsel %vm2201_vm3, %v4543_v34, %v4544_v11  ;;  %v2972_v57 = vrot.slane %v2717_v8, 1  ;;  %v5063_v5 = vadd.f32 %v9582_v16, %v9741_v45 }
 0x418   : > { %v4871_v51 = vmin.f32 %v4807_v33, 6.0  ;;  %v1878_v24 = vsel %vm1718_vm2, %v1873_v38, %v1877_v42  ;;  %v2555_v47 = vmul.f32 %v7037_v54, %v9683_v35  ;;  %v5066_v53 = vadd.f32 %v9582_v16, %v5065_v3  ;;  %v5553_v54 = vld [vmem:[%s9928_s3 + $0x18] ss:$0 sm:$0xff] }
 0x419   : > { %v4193_v44 = vadd.f32 %v4063_v25, %v3711_v27  ;;  %v2006_v14 = vadd.f32 %v1878_v24, %v1459_v43  ;;  %v2361_v12 = vsel %vm2201_vm3, %v2356_v59, %v2360_v2  ;;  %v3811_v36 = vmul.f32 %v7092_v18, %v1389_v63  ;;  %v10410_v43 = vld [vmem:[#allocation9_spill] sm:$0xff] }
 0x41a   : > { %5487 = vmatmul.msk.f32.gmra.mxu3 %vm817_vm4, %v4871_v51  ;;  %v5240_v38 = vadd.f32 %v5173_v41, %v10405_v60  ;;  %v3454_v45 = vrot.slane %v3199_v0, 2  ;;  %v2973_v56 = vsel %vm1718_vm2, %v2968_v4, %v2972_v57  ;;  %v4293_v35 = vmul.f32 %v5553_v54, %v1389_v63  ;;  %v5071_v34 = vpop.f32.mrf.mxu2 }
 0x41b   : > { %v4675_v62 = vadd.f32 %v4545_v48, %v4193_v44  ;;  %v2489_v19 = vadd.f32 %v2361_v12, %v2006_v14  ;;  %v5176_v3 = vadd.f32 %v5175_v46, %v5063_v5  ;;  %v5179_v22 = vadd.f32 %v5178_v1, %v5066_v53  ;;  %v10411_v48 = vld [vmem:[#allocation11_spill] sm:$0xff] }
 0x41c   : > { %5272 = vxpose.xlu2.b32.cont [15/16] (narrow) %v5240_v38, 32  ;;  %v5069_v18 = vadd.f32 %v9582_v16, %v5068_v10  ;;  %v4066_v52 = vrot.slane %v3811_v36, 1  ;;  %v3649_v4 = vmul.f32 %v7089_v29, %v9786_v20  ;;  %v3455_v32 = vsel %vm2201_vm3, %v3450_v39, %v3454_v45 }
 0x41d   : > { %v4745_v17 = vadd.f32 %v6885_v13, %v4675_v62  ;;  %v2619_v59 = vadd.f32 %v2555_v47, %v2489_v19  ;;  %v5242_v61 = vadd.f32 %v5179_v22, %v10406_v58  ;;  %v5181_v37 = vpop.f32.mrf.mxu3  ;;  %v4548_v46 = vrot.slane %v4293_v35, 2  ;;  %v10412_v47 = vld [vmem:[#allocation13_spill] sm:$0xff]  ;;  %v10413_v62 = vld [vmem:[#allocation15_spill] sm:$0xff] }
 0x41e   : > { %v5241_v23 = vadd.f32 %v5176_v3, %v10407_v7  ;;  %v5182_v55 = vadd.f32 %v5181_v37, %v5069_v18  ;;  %v4067_v31 = vsel %vm1718_vm2, %v4062_v9, %v4066_v52  ;;  %v5072_v49 = vadd.f32 %v9582_v16, %v5071_v34  ;;  %v10409_v9 = vld [vmem:[#allocation7_spill] sm:$0xff]  ;;  %v10414_v3 = vld [vmem:[#allocation17_spill] sm:$0xff] }
 0x41f   : > { %v4809_v50 = vmax.f32 %v4745_v17, 0.0  ;;  %v3101_v40 = vadd.f32 %v2973_v56, %v2619_v59  ;;  %5290 = vxpose.xlu0.b32.start [1/16] (narrow) %v5242_v61, 32  ;;  %v4549_v20 = vsel %vm2201_vm3, %v4544_v11, %v4548_v46  ;;  %v10415_v58 = vld [vmem:[#allocation19_spill] sm:$0xff] }
 0x420   : > { %v5243_v39 = vadd.f32 %v5182_v55, %v10408_v6 }
 0x421   : > { %v4873_v30 = vmin.f32 %v4809_v50, 6.0  ;;  %v3583_v21 = vadd.f32 %v3455_v32, %v3101_v40  ;;  %v10416_v32 = vld [vmem:[#allocation21_spill] sm:$0xff] }
 0x422   : > { %v5074_v41 = vpop.f32.mrf.mxu2 }
 0x423   : > { %5488 = vmatmul.msk.f32.gmra.mxu3 %vm817_vm4, %v4873_v30  ;;  %v3713_v29 = vadd.f32 %v3649_v4, %v3583_v21  ;;  %v5075_v11 = vadd.f32 %v9582_v16, %v5074_v41  ;;  %v10417_v21 = vld [vmem:[#allocation23_spill] sm:$0xff] }
 0x424   : > { %5273 = vxpose.xlu2.b32.end [16/16] (narrow) %v5241_v23, 32 }
 0x425   : > { %v4195_v15 = vadd.f32 %v4067_v31, %v3713_v29  ;;  %v5184_v25 = vpop.f32.mrf.mxu3 }
 0x426   : > { %v5185_v8 = vadd.f32 %v5184_v25, %v5072_v49 }
 0x427   : > { %v4677_v28 = vadd.f32 %v4549_v20, %v4195_v15  ;;  %5291 = vxpose.xlu0.b32.cont [2/16] (narrow) %v5243_v39, 32  ;;  %v10418_v39 = vld [vmem:[#allocation25_spill] sm:$0xff] }
 0x428   : > { %v5244_v42 = vadd.f32 %v5185_v8, %v10409_v9 }
 0x429   : > { %v4747_v33 = vadd.f32 %v6885_v13, %v4677_v28 }
 0x42a   : > { %v5077_v1 = vpop.f32.mrf.mxu2 }
 0x42b   : > { %v4811_v26 = vmax.f32 %v4747_v33, 0.0  ;;  %v5078_v10 = vadd.f32 %v9582_v16, %v5077_v1  ;;  %v10419_v33 = vld [vmem:[#allocation27_spill] sm:$0xff] }
 0x42d   : > { %v4875_v2 = vmin.f32 %v4811_v26, 6.0 }
 0x42f   : > { %5489 = vmatmul.msk.f32.gmra.mxu3 %vm817_vm4, %v4875_v2  ;;  %5292 = vxpose.xlu0.b32.cont [3/16] (narrow) %v5244_v42, 32 }
 0x431   : > { %v5187_v27 = vpop.f32.mrf.mxu3 }
 0x432   : > { %v5188_v63 = vadd.f32 %v5187_v27, %v5075_v11  ;;  %v5080_v57 = vpop.f32.mrf.mxu2  ;;  %v10420_v27 = vld [vmem:[#allocation29_spill] sm:$0xff] }
 0x433   : > { %v5081_v5 = vadd.f32 %v9582_v16, %v5080_v57 }
 0x434   : > { %v5245_v0 = vadd.f32 %v5188_v63, %v10410_v43 }
 0x437   : > { %5293 = vxpose.xlu0.b32.cont [4/16] (narrow) %v5245_v0, 32 }
 0x43a   : > { %v5083_v12 = vpop.f32.mrf.mxu2 }
 0x43b   : > { %v5190_v51 = vpop.f32.mrf.mxu3  ;;  %v5084_v36 = vadd.f32 %v9582_v16, %v5083_v12 }
 0x43c   : > { %v5191_v13 = vadd.f32 %v5190_v51, %v5078_v10  ;;  %v10421_v51 = vld [vmem:[#allocation31_spill] sm:$0xff] }
 0x43e   : > { %v5246_v24 = vadd.f32 %v5191_v13, %v10411_v48 }
 0x440   : > { %5294 = vxpose.xlu0.b32.cont [5/16] (narrow) %v5246_v24, 32 }
 0x442   : > { %v5086_v45 = vpop.f32.mrf.mxu2 }
 0x443   : > { %v5087_v56 = vadd.f32 %v9582_v16, %v5086_v45 }
 0x445   : > { %v5274_v41 = vpop.trf.xlu2 }
 0x446   : > { %5322 = vst [vmem:[%s9906_s8] sm:$0xff] %v5274_v41 }
 0x448   : > { %v5193_v44 = vpop.f32.mrf.mxu3 }
 0x449   : > { %v5194_v14 = vadd.f32 %v5193_v44, %v5081_v5  ;;  %v10422_v44 = vld [vmem:[#allocation33_spill] sm:$0xff] }
 0x44a   : > { %v5089_v17 = vpop.f32.mrf.mxu2 }
 0x44b   : > { %v5247_v53 = vadd.f32 %v5194_v14, %v10412_v47  ;;  %v5090_v59 = vadd.f32 %v9582_v16, %v5089_v17 }
 0x44d   : > { %5295 = vxpose.xlu0.b32.cont [6/16] (narrow) %v5247_v53, 32  ;;  %v5275_v47 = vpop.trf.xlu2 }
 0x44e   : > { %5324 = vst [vmem:[%s9906_s8 + $0x10] sm:$0xff] %v5275_v47 }
 0x452   : > { %v5196_v60 = vpop.f32.mrf.mxu3  ;;  %v5092_v50 = vpop.f32.mrf.mxu2 }
 0x453   : > { %v5197_v38 = vadd.f32 %v5196_v60, %v5084_v36  ;;  %v5093_v40 = vadd.f32 %v9582_v16, %v5092_v50 }
 0x455   : > { %v5248_v19 = vadd.f32 %v5197_v38, %v10413_v62  ;;  %v5276_v53 = vpop.trf.xlu2 }
 0x456   : > { %5326 = vst [vmem:[%s9906_s8 + $0x20] sm:$0xff] %v5276_v53 }
 0x457   : > { %5296 = vxpose.xlu0.b32.cont [7/16] (narrow) %v5248_v19, 32 }
 0x45a   : > { %v5095_v7 = vpop.f32.mrf.mxu2 }
 0x45b   : > { %v5096_v23 = vadd.f32 %v9582_v16, %v5095_v7 }
 0x45d   : > { %v5277_v12 = vpop.trf.xlu2 }
 0x45e   : > { %5328 = vst [vmem:[%s9906_s8 + $0x30] sm:$0xff] %v5277_v12 }
 0x45f   : > { %v5199_v54 = vpop.f32.mrf.mxu3 }
 0x460   : > { %v5200_v35 = vadd.f32 %v5199_v54, %v5087_v56 }
 0x462   : > { %v5249_v22 = vadd.f32 %v5200_v35, %v10414_v3  ;;  %v5098_v31 = vpop.f32.mrf.mxu2 }
 0x463   : > { %v5099_v29 = vadd.f32 %v9582_v16, %v5098_v31 }
 0x464   : > { %5297 = vxpose.xlu0.b32.cont [8/16] (narrow) %v5249_v22, 32 }
 0x468   : > { %v5202_v18 = vpop.f32.mrf.mxu3 }
 0x469   : > { %v5203_v52 = vadd.f32 %v5202_v18, %v5090_v59 }
 0x46a   : > { %v5101_v49 = vpop.f32.mrf.mxu2 }
 0x46b   : > { %v5250_v61 = vadd.f32 %v5203_v52, %v10415_v58  ;;  %v5102_v28 = vadd.f32 %v9582_v16, %v5101_v49 }
 0x46d   : > { %5298 = vxpose.xlu0.b32.cont [9/16] (narrow) %v5250_v61, 32 }
 0x472   : > { %v5104_v9 = vpop.f32.mrf.mxu2 }
 0x473   : > { %v5105_v42 = vadd.f32 %v9582_v16, %v5104_v9 }
 0x475   : > { %v5205_v4 = vpop.f32.mrf.mxu3 }
 0x476   : > { %v5206_v37 = vadd.f32 %v5205_v4, %v5093_v40 }
 0x478   : > { %v5251_v46 = vadd.f32 %v5206_v37, %v10416_v32 }
 0x47a   : > { %5299 = vxpose.xlu0.b32.cont [10/16] (narrow) %v5251_v46, 32  ;;  %v5107_v43 = vpop.f32.mrf.mxu2 }
 0x47b   : > { %v5108_v0 = vadd.f32 %v9582_v16, %v5107_v43 }
 0x47d   : > { %v5208_v55 = vpop.f32.mrf.mxu3 }
 0x47e   : > { %v5209_v30 = vadd.f32 %v5208_v55, %v5096_v23 }
 0x480   : > { %v5252_v34 = vadd.f32 %v5209_v30, %v10417_v21 }
 0x482   : > { %5300 = vxpose.xlu0.b32.cont [11/16] (narrow) %v5252_v34, 32  ;;  %v5110_v48 = vpop.f32.mrf.mxu2 }
 0x483   : > { %v5111_v24 = vadd.f32 %v9582_v16, %v5110_v48 }
 0x489   : > { %v5211_v20 = vpop.f32.mrf.mxu3 }
 0x48a   : > { %v5212_v6 = vadd.f32 %v5211_v20, %v5099_v29 }
 0x48c   : > { %v5253_v15 = vadd.f32 %v5212_v6, %v10418_v39 }
 0x48e   : > { %5301 = vxpose.xlu0.b32.cont [12/16] (narrow) %v5253_v15, 32 }
 0x492   : > { %v5214_v25 = vpop.f32.mrf.mxu3 }
 0x493   : > { %v5215_v8 = vadd.f32 %v5214_v25, %v5102_v28 }
 0x495   : > { %v5254_v26 = vadd.f32 %v5215_v8, %v10419_v33 }
 0x497   : > { %5302 = vxpose.xlu0.b32.cont [13/16] (narrow) %v5254_v26, 32 }
 0x49d   : > { %v5217_v2 = vpop.f32.mrf.mxu3 }
 0x49e   : > { %v5218_v11 = vadd.f32 %v5217_v2, %v5105_v42 }
 0x4a0   : > { %v5255_v63 = vadd.f32 %v5218_v11, %v10420_v27 }
 0x4a2   : > { %5303 = vxpose.xlu0.b32.cont [14/16] (narrow) %v5255_v63, 32 }
 0x4a6   : > { %v5220_v1 = vpop.f32.mrf.mxu3 }
 0x4a7   : > { %v5221_v10 = vadd.f32 %v5220_v1, %v5108_v0 }
 0x4a9   : > { %v5256_v13 = vadd.f32 %v5221_v10, %v10421_v51 }
 0x4ab   : > { %5304 = vxpose.xlu0.b32.cont [15/16] (narrow) %v5256_v13, 32 }
 0x4b2   : > { %v5223_v57 = vpop.f32.mrf.mxu3 }
 0x4b3   : > { %v5224_v5 = vadd.f32 %v5223_v57, %v5111_v24 }
 0x4b5   : > { %v5257_v14 = vadd.f32 %v5224_v5, %v10422_v44 }
 0x4b7   : > { %5305 = vxpose.xlu0.b32.end [16/16] (narrow) %v5257_v14, 32 }
 0x4e3   : > { %v5306_v36 = vpop.trf.xlu0 }
 0x4e4   : > { %5323 = vst [vmem:[%s9906_s8 + $0x8] sm:$0xff] %v5306_v36 }
 0x4eb   : > { %v5307_v60 = vpop.trf.xlu0 }
 0x4ec   : > { %5325 = vst [vmem:[%s9906_s8 + $0x18] sm:$0xff] %v5307_v60 }
 0x4f3   : > { %v5308_v38 = vpop.trf.xlu0 }
 0x4f4   : > { %5327 = vst [vmem:[%s9906_s8 + $0x28] sm:$0xff] %v5308_v38 }
 0x4fb   : > { %v5309_v16 = vpop.trf.xlu0 }
 0x4fc   : > { %5329 = vst [vmem:[%s9906_s8 + $0x38] sm:$0xff] %v5309_v16 }
 0x4fd PF: > { %s17_s24 = sadd.s32 1, %s5560_s24  }
 0x4fe   : > { %p14_p4 = scmp.ge.s32.totalorder %s17_s24, 4  }
 0x500   :  { %16 = sbr.rel (!%p14_p4) target bundleno = 1 (0x1), region = 79 }

</bundles_post_ra>
